<compile_context>
chip_gen: v7x
topology: tpu7x:2x2x1
jax: 0.10.0
libtpu: 0.0.40
codegen_flags: <defaults>
</compile_context>

<pallas_src>
import jax
import jax.numpy as jnp
import numpy as np
from jax.experimental import pallas as pl
from jax.experimental.pallas import tpu as pltpu


# ----------------------------------------------------------------------------
# Pallas kernel
# ----------------------------------------------------------------------------
def pose_rnn_kernel(
    fv_ref, fva_ref, fi_ref, ts_ref, dec_ref,            # activations (B-first)
    wf_ref, bf_ref,                                      # fusion linear
    wih0f_ref, wih0t_ref, b0_ref,                        # LSTM L0 input gates
    whh0_ref,                                            # LSTM L0 recurrence
    wih1_ref, whh1_ref, b1_ref,                          # LSTM L1
    wr1_ref, br1_ref, wr2_ref, br2_ref,                  # regressor
    pose_ref, hn_ref, cn_ref,                            # outputs
):
    Bs, T, V = fv_ref.shape
    I = fi_ref.shape[-1]
    FLEN = V + I
    HP = whh0_ref.shape[0]          # lane-padded hidden size (128)
    H = hn_ref.shape[-1]            # true hidden size
    f32 = jnp.float32

    # ---- fusion module (fuse_method == 'soft') ------------------------------
    fv = fv_ref[...]
    fva = fva_ref[...]
    dec = dec_ref[...]
    # v_in = fv * dec[:, :, :1] + fv_alter * dec[:, :, -1:]
    v_in = fv * dec[:, :, 0:1] + fva * dec[:, :, 1:2]
    feat = jnp.concatenate([v_in, fi_ref[...]], axis=-1)          # (Bs,T,FLEN)
    flat = feat.reshape(Bs * T, FLEN)
    weights = jnp.dot(flat, wf_ref[...],
                      preferred_element_type=f32) + bf_ref[...]
    fused = flat * weights                                        # (Bs*T,FLEN)

    # ---- hoisted layer-0 input->hidden gates (one batched matmul) ----------
    # ts_diff enters as a rank-1 term instead of a 33-lane concat.
    ts = ts_ref[...].reshape(Bs * T, 1)
    gates0_all = (jnp.dot(fused, wih0f_ref[...], preferred_element_type=f32)
                  + ts * wih0t_ref[...]
                  + b0_ref[...])                                  # (Bs*T,4HP)
    gates0_all = gates0_all.reshape(Bs, T, 4 * HP)

    whh0 = whh0_ref[...]
    wih1 = wih1_ref[...]
    whh1 = whh1_ref[...]
    b1 = b1_ref[...]

    def cell(gates, c):
        # gate slices are full 128-lane tiles (HP-aligned), no masked extracts
        i_g = jax.nn.sigmoid(gates[:, 0 * HP:1 * HP])
        f_g = jax.nn.sigmoid(gates[:, 1 * HP:2 * HP])
        g_g = jnp.tanh(gates[:, 2 * HP:3 * HP])
        o_g = jax.nn.sigmoid(gates[:, 3 * HP:4 * HP])
        c_new = f_g * c + i_g * g_g
        h_new = o_g * jnp.tanh(c_new)
        return h_new, c_new

    h0 = c0 = h1 = c1 = jnp.zeros((Bs, HP), f32)
    outs = []
    # Static unroll: T is small; all indexing below is static, giving the LLO
    # scheduler full visibility of the (latency-bound) recurrence.
    # TODO(synk): for long sequences / production feature sizes, tile T on a
    # grid axis ("arbitrary") with h/c carried in VMEM scratch instead of a
    # full unroll, and re-derive the tile budget for v7x's 64 MiB VMEM.
    for t in range(T):
        g0 = gates0_all[:, t, :] + jnp.dot(h0, whh0,
                                           preferred_element_type=f32)
        h0, c0 = cell(g0, c0)
        # rnn_dropout_between / rnn_dropout_out: eval-mode no-ops.
        g1 = (jnp.dot(h0, wih1, preferred_element_type=f32)
              + jnp.dot(h1, whh1, preferred_element_type=f32)
              + b1)
        h1, c1 = cell(g1, c1)
        outs.append(h1)

    # ---- regressor: Linear(H,128) -> LeakyReLU(0.1) -> Linear(128,6) --------
    h_all = jnp.stack(outs, axis=1).reshape(Bs * T, HP)   # rows ordered b*T+t
    z = jnp.dot(h_all, wr1_ref[...], preferred_element_type=f32) + br1_ref[...]
    z = jnp.where(z > 0, z, 0.1 * z)
    p = jnp.dot(z, wr2_ref[...], preferred_element_type=f32) + br2_ref[...]
    pose_ref[...] = p.reshape(Bs, T, 6)                   # single store

    # ---- final hidden/cell state, (Bs, num_layers, H) — single stores -------
    hn_ref[...] = jnp.stack([h0[:, :H], h1[:, :H]], axis=1)
    cn_ref[...] = jnp.stack([c0[:, :H], c1[:, :H]], axis=1)


# ----------------------------------------------------------------------------
# Weight preparation helpers (PyTorch layout -> lane-padded kernel layout)
# ----------------------------------------------------------------------------
def _pad_gate_cols(w, h, hp):
    """w: (..., 4*h) with gate blocks [i|f|g|o]; zero-pad each block to hp."""
    blocks = [w[..., k * h:(k + 1) * h] for k in range(4)]
    pad = [(0, 0)] * (w.ndim - 1) + [(0, hp - h)]
    return jnp.concatenate([jnp.pad(b, pad) for b in blocks], axis=-1)


def _pad_rows(w, h, hp):
    """Zero-pad the leading (input) dim of a (h, N) weight to (hp, N)."""
    return jnp.pad(w, ((0, hp - h), (0, 0)))


# ----------------------------------------------------------------------------
# Wrapper
# ----------------------------------------------------------------------------
def pose_rnn_forward(fv, fv_alter, fi, ts_diff, dec, params, *, batch_shards=1):
    """Pose_RNN forward.  Set batch_shards>1 (divides B) on v7x to spread
    independent sequences across both TensorCores."""
    B, T, V = fv.shape
    I = fi.shape[-1]
    FLEN = V + I
    H = params["whh0"].shape[1]
    HP = ((H + 127) // 128) * 128          # lane-padded hidden size
    assert B % batch_shards == 0
    Bs = B // batch_shards
    f32 = jnp.float32

    # --- pre-transpose / zero-pad weights (PyTorch stores (out, in)) ---------
    wih0 = params["wih0"]                                    # (4H, FLEN+1)
    wih0_feat = _pad_gate_cols(wih0[:, 1:].T, H, HP)         # (FLEN, 4HP)
    wih0_ts = _pad_gate_cols(wih0[:, 0:1].T, H, HP)          # (1, 4HP)
    b0_p = _pad_gate_cols(params["b0"][None, :], H, HP)      # (1, 4HP)
    whh0_p = _pad_rows(_pad_gate_cols(params["whh0"].T, H, HP), H, HP)
    wih1_p = _pad_rows(_pad_gate_cols(params["wih1"].T, H, HP), H, HP)
    whh1_p = _pad_rows(_pad_gate_cols(params["whh1"].T, H, HP), H, HP)
    b1_p = _pad_gate_cols(params["b1"][None, :], H, HP)
    wr1_p = _pad_rows(params["wr1"].T, H, HP)                # (HP, 128)
    wr2_t = params["wr2"].T                                  # (128, 6)

    args = (
        fv, fv_alter, fi, ts_diff[..., None], dec,           # batch-first acts
        params["wf"].T, params["bf"][None, :],
        wih0_feat, wih0_ts, b0_p,
        whh0_p, wih1_p, whh1_p, b1_p,
        wr1_p, params["br1"][None, :], wr2_t, params["br2"][None, :],
    )

    def act_spec(a):        # shard batch dim across the (parallel) grid
        return pl.BlockSpec((Bs,) + a.shape[1:], lambda i: (i, 0, 0))

    def weight_spec(a):     # full weight block, replicated per grid point
        return pl.BlockSpec(a.shape, lambda i: (0, 0))

    in_specs = ([act_spec(a) for a in args[:5]]
                + [weight_spec(a) for a in args[5:]])

    out_shape = (
        jax.ShapeDtypeStruct((B, T, 6), f32),    # pose, batch-first
        jax.ShapeDtypeStruct((B, 2, H), f32),    # h_n (B, num_layers, H)
        jax.ShapeDtypeStruct((B, 2, H), f32),    # c_n (B, num_layers, H)
    )
    out_specs = (
        pl.BlockSpec((Bs, T, 6), lambda i: (i, 0, 0)),
        pl.BlockSpec((Bs, 2, H), lambda i: (i, 0, 0)),
        pl.BlockSpec((Bs, 2, H), lambda i: (i, 0, 0)),
    )

    pose, hn, cn = pl.pallas_call(
        pose_rnn_kernel,
        out_shape=out_shape,
        grid=(batch_shards,),
        in_specs=in_specs,
        out_specs=out_specs,
        compiler_params=pltpu.CompilerParams(
            dimension_semantics=("parallel",)),
    )(*args)

    # TODO(synk): `prev` (caller-supplied initial LSTM state) path not wired;
    # zero initial state (prev=None) is implemented.
    # TODO(synk): only fuse_method='soft' with fv_alter provided is implemented
    # ('hard' gumbel-softmax / 'cat' paths omitted).
    return pose, (hn, cn)


# ----------------------------------------------------------------------------
# Pure-JAX reference (mirrors PyTorch semantics) for a sanity check
# ----------------------------------------------------------------------------
def reference_forward(fv, fv_alter, fi, ts_diff, dec, params):
    H = params["whh0"].shape[1]
    B = fv.shape[0]
    v_in = fv * dec[:, :, 0:1] + fv_alter * dec[:, :, 1:2]
    feat_cat = jnp.concatenate([v_in, fi], axis=-1)
    weights = feat_cat @ params["wf"].T + params["bf"]
    fused = feat_cat * weights
    fused = jnp.concatenate([ts_diff[..., None], fused], axis=-1)

    def cell(x, h, c, wih, whh, b):
        g = x @ wih.T + h @ whh.T + b
        i = jax.nn.sigmoid(g[:, :H]); f = jax.nn.sigmoid(g[:, H:2 * H])
        gg = jnp.tanh(g[:, 2 * H:3 * H]); o = jax.nn.sigmoid(g[:, 3 * H:])
        c = f * c + i * gg
        return o * jnp.tanh(c), c

    h0 = c0 = h1 = c1 = jnp.zeros((B, H), jnp.float32)
    outs = []
    for t in range(fv.shape[1]):
        x = fused[:, t, :]
        h0, c0 = cell(x, h0, c0, params["wih0"], params["whh0"], params["b0"])
        h1, c1 = cell(h0, h1, c1, params["wih1"], params["whh1"], params["b1"])
        outs.append(h1)
    out = jnp.stack(outs, axis=1)
    z = out @ params["wr1"].T + params["br1"]
    z = jnp.where(z > 0, z, 0.1 * z)
    pose = z @ params["wr2"].T + params["br2"]
    return pose, (jnp.stack([h0, h1], 1), jnp.stack([c0, c1], 1))


if __name__ == "__main__":
    B, T = 2, 8
    V_LEN, I_LEN, H = 24, 8, 32          # opt.v_f_len, opt.i_f_len, rnn_hidden_size
    FLEN = V_LEN + I_LEN
    IN = FLEN + 1                        # with_time = True

    key = jax.random.PRNGKey(0)
    ks = jax.random.split(key, 20)

    fv = jax.random.normal(ks[0], (B, T, V_LEN), jnp.float32)
    fv_alter = jax.random.normal(ks[1], (B, T, V_LEN), jnp.float32)
    fi = jax.random.normal(ks[2], (B, T, I_LEN), jnp.float32)
    ts_diff = jax.random.uniform(ks[3], (B, T), jnp.float32)
    dec = jax.nn.softmax(jax.random.normal(ks[4], (B, T, 2), jnp.float32), -1)

    s = 0.1
    params = {
        "wf":   s * jax.random.normal(ks[5],  (FLEN, FLEN), jnp.float32),
        "bf":   s * jax.random.normal(ks[6],  (FLEN,), jnp.float32),
        "wih0": s * jax.random.normal(ks[7],  (4 * H, IN), jnp.float32),
        "whh0": s * jax.random.normal(ks[8],  (4 * H, H), jnp.float32),
        "b0":   s * jax.random.normal(ks[9],  (4 * H,), jnp.float32),
        "wih1": s * jax.random.normal(ks[10], (4 * H, H), jnp.float32),
        "whh1": s * jax.random.normal(ks[11], (4 * H, H), jnp.float32),
        "b1":   s * jax.random.normal(ks[12], (4 * H,), jnp.float32),
        "wr1":  s * jax.random.normal(ks[13], (128, H), jnp.float32),
        "br1":  s * jax.random.normal(ks[14], (128,), jnp.float32),
        "wr2":  s * jax.random.normal(ks[15], (6, 128), jnp.float32),
        "br2":  s * jax.random.normal(ks[16], (6,), jnp.float32),
    }

    pose, (hn, cn) = pose_rnn_forward(fv, fv_alter, fi, ts_diff, dec, params)
    jax.block_until_ready((pose, hn, cn))

    pose_r, (hn_r, cn_r) = reference_forward(fv, fv_alter, fi, ts_diff, dec, params)
    assert pose.shape == (B, T, 6) and hn.shape == (B, 2, H) and cn.shape == (B, 2, H)
    assert np.allclose(np.asarray(pose), np.asarray(pose_r), atol=1e-2, rtol=1e-2)
    assert np.allclose(np.asarray(hn), np.asarray(hn_r), atol=1e-2, rtol=1e-2)
    assert np.allclose(np.asarray(cn), np.asarray(cn_r), atol=1e-2, rtol=1e-2)

    print("KERNEL_OK")
</pallas_src>

<mosaic_0001>
module attributes {stable_mosaic.version = 11 : i64} {
  func.func @pose_rnn_kernel(%arg0: i32, %arg1: memref<2x8x24xf32, #tpu.memory_space<vmem>>, %arg2: memref<2x8x24xf32, #tpu.memory_space<vmem>>, %arg3: memref<2x8x8xf32, #tpu.memory_space<vmem>>, %arg4: memref<2x8x1xf32, #tpu.memory_space<vmem>>, %arg5: memref<2x8x2xf32, #tpu.memory_space<vmem>>, %arg6: memref<32x32xf32, #tpu.memory_space<vmem>>, %arg7: memref<1x32xf32, #tpu.memory_space<vmem>>, %arg8: memref<32x512xf32, #tpu.memory_space<vmem>>, %arg9: memref<1x512xf32, #tpu.memory_space<vmem>>, %arg10: memref<1x512xf32, #tpu.memory_space<vmem>>, %arg11: memref<128x512xf32, #tpu.memory_space<vmem>>, %arg12: memref<128x512xf32, #tpu.memory_space<vmem>>, %arg13: memref<128x512xf32, #tpu.memory_space<vmem>>, %arg14: memref<1x512xf32, #tpu.memory_space<vmem>>, %arg15: memref<128x128xf32, #tpu.memory_space<vmem>>, %arg16: memref<1x128xf32, #tpu.memory_space<vmem>>, %arg17: memref<128x6xf32, #tpu.memory_space<vmem>>, %arg18: memref<1x6xf32, #tpu.memory_space<vmem>>, %arg19: memref<2x8x6xf32, #tpu.memory_space<vmem>>, %arg20: memref<2x2x32xf32, #tpu.memory_space<vmem>>, %arg21: memref<2x2x32xf32, #tpu.memory_space<vmem>>) attributes {dimension_semantics = [#tpu.dimension_semantics<parallel>], iteration_bounds = array<i64: 1>, scalar_prefetch = 0 : i64, scratch_operands = 0 : i64, tpu.core_type = #tpu.core_type<tc>, window_params = [{transform_indices = @transform_0, window_bounds = array<i64: 2, 8, 24>}, {transform_indices = @transform_1, window_bounds = array<i64: 2, 8, 24>}, {transform_indices = @transform_2, window_bounds = array<i64: 2, 8, 8>}, {transform_indices = @transform_3, window_bounds = array<i64: 2, 8, 1>}, {transform_indices = @transform_4, window_bounds = array<i64: 2, 8, 2>}, {pipeline_mode = #tpu.pipeline_mode<synchronous>, transform_indices = @transform_5, window_bounds = array<i64: 32, 32>}, {pipeline_mode = #tpu.pipeline_mode<synchronous>, transform_indices = @transform_6, window_bounds = array<i64: 1, 32>}, {pipeline_mode = #tpu.pipeline_mode<synchronous>, transform_indices = @transform_7, window_bounds = array<i64: 32, 512>}, {pipeline_mode = #tpu.pipeline_mode<synchronous>, transform_indices = @transform_8, window_bounds = array<i64: 1, 512>}, {pipeline_mode = #tpu.pipeline_mode<synchronous>, transform_indices = @transform_9, window_bounds = array<i64: 1, 512>}, {pipeline_mode = #tpu.pipeline_mode<synchronous>, transform_indices = @transform_10, window_bounds = array<i64: 128, 512>}, {pipeline_mode = #tpu.pipeline_mode<synchronous>, transform_indices = @transform_11, window_bounds = array<i64: 128, 512>}, {pipeline_mode = #tpu.pipeline_mode<synchronous>, transform_indices = @transform_12, window_bounds = array<i64: 128, 512>}, {pipeline_mode = #tpu.pipeline_mode<synchronous>, transform_indices = @transform_13, window_bounds = array<i64: 1, 512>}, {pipeline_mode = #tpu.pipeline_mode<synchronous>, transform_indices = @transform_14, window_bounds = array<i64: 128, 128>}, {pipeline_mode = #tpu.pipeline_mode<synchronous>, transform_indices = @transform_15, window_bounds = array<i64: 1, 128>}, {pipeline_mode = #tpu.pipeline_mode<synchronous>, transform_indices = @transform_16, window_bounds = array<i64: 128, 6>}, {pipeline_mode = #tpu.pipeline_mode<synchronous>, transform_indices = @transform_17, window_bounds = array<i64: 1, 6>}, {transform_indices = @transform_18, window_bounds = array<i64: 2, 8, 6>}, {transform_indices = @transform_19, window_bounds = array<i64: 2, 2, 32>}, {transform_indices = @transform_20, window_bounds = array<i64: 2, 2, 32>}]} {
    %c0 = arith.constant 0 : index
    %c0_0 = arith.constant 0 : index
    %c0_1 = arith.constant 0 : index
    %0 = vector.load %arg1[%c0, %c0_0, %c0_1] : memref<2x8x24xf32, #tpu.memory_space<vmem>>, vector<2x8x24xf32>
    %c0_2 = arith.constant 0 : index
    %c0_3 = arith.constant 0 : index
    %c0_4 = arith.constant 0 : index
    %1 = vector.load %arg2[%c0_2, %c0_3, %c0_4] : memref<2x8x24xf32, #tpu.memory_space<vmem>>, vector<2x8x24xf32>
    %c0_5 = arith.constant 0 : index
    %c0_6 = arith.constant 0 : index
    %c0_7 = arith.constant 0 : index
    %2 = vector.load %arg5[%c0_5, %c0_6, %c0_7] : memref<2x8x2xf32, #tpu.memory_space<vmem>>, vector<2x8x2xf32>
    %3 = vector.extract_strided_slice %2 {offsets = [0, 0, 0], sizes = [2, 8, 1], strides = [1, 1, 1]} : vector<2x8x2xf32> to vector<2x8x1xf32>
    %4 = vector.broadcast %3 : vector<2x8x1xf32> to vector<2x8x24xf32>
    %5 = arith.mulf %0, %4 : vector<2x8x24xf32>
    %6 = vector.extract_strided_slice %2 {offsets = [0, 0, 1], sizes = [2, 8, 1], strides = [1, 1, 1]} : vector<2x8x2xf32> to vector<2x8x1xf32>
    %7 = vector.broadcast %6 : vector<2x8x1xf32> to vector<2x8x24xf32>
    %8 = arith.mulf %1, %7 : vector<2x8x24xf32>
    %9 = arith.addf %5, %8 : vector<2x8x24xf32>
    %c0_8 = arith.constant 0 : index
    %c0_9 = arith.constant 0 : index
    %c0_10 = arith.constant 0 : index
    %10 = vector.load %arg3[%c0_8, %c0_9, %c0_10] : memref<2x8x8xf32, #tpu.memory_space<vmem>>, vector<2x8x8xf32>
    %11 = tpu.concatenate %9, %10 in 2 : vector<2x8x24xf32>, vector<2x8x8xf32> -> vector<2x8x32xf32>
    %12 = vector.shape_cast %11 : vector<2x8x32xf32> to vector<16x32xf32>
    %c0_11 = arith.constant 0 : index
    %c0_12 = arith.constant 0 : index
    %13 = vector.load %arg6[%c0_11, %c0_12] : memref<32x32xf32, #tpu.memory_space<vmem>>, vector<32x32xf32>
    %cst = arith.constant dense<0.000000e+00> : vector<16x32xf32>
    %14 = tpu.matmul %12, %13, %cst {dimension_numbers = #tpu.dot_dimension_numbers<[1], [0], [0], [1], [0, 0, 1, 1], [], []>} : vector<16x32xf32>, vector<32x32xf32>, vector<16x32xf32> -> vector<16x32xf32>
    %c0_13 = arith.constant 0 : index
    %c0_14 = arith.constant 0 : index
    %15 = vector.load %arg7[%c0_13, %c0_14] : memref<1x32xf32, #tpu.memory_space<vmem>>, vector<1x32xf32>
    %16 = vector.broadcast %15 : vector<1x32xf32> to vector<16x32xf32>
    %17 = arith.addf %14, %16 : vector<16x32xf32>
    %18 = arith.mulf %12, %17 : vector<16x32xf32>
    %c0_15 = arith.constant 0 : index
    %c0_16 = arith.constant 0 : index
    %c0_17 = arith.constant 0 : index
    %19 = vector.load %arg4[%c0_15, %c0_16, %c0_17] : memref<2x8x1xf32, #tpu.memory_space<vmem>>, vector<2x8x1xf32>
    %20 = vector.shape_cast %19 : vector<2x8x1xf32> to vector<16x1xf32>
    %c0_18 = arith.constant 0 : index
    %c0_19 = arith.constant 0 : index
    %21 = vector.load %arg8[%c0_18, %c0_19] : memref<32x512xf32, #tpu.memory_space<vmem>>, vector<32x512xf32>
    %cst_20 = arith.constant dense<0.000000e+00> : vector<16x512xf32>
    %22 = tpu.matmul %18, %21, %cst_20 {dimension_numbers = #tpu.dot_dimension_numbers<[1], [0], [0], [1], [0, 0, 1, 1], [], []>} : vector<16x32xf32>, vector<32x512xf32>, vector<16x512xf32> -> vector<16x512xf32>
    %c0_21 = arith.constant 0 : index
    %c0_22 = arith.constant 0 : index
    %23 = vector.load %arg9[%c0_21, %c0_22] : memref<1x512xf32, #tpu.memory_space<vmem>>, vector<1x512xf32>
    %24 = vector.broadcast %20 : vector<16x1xf32> to vector<16x512xf32>
    %25 = vector.broadcast %23 : vector<1x512xf32> to vector<16x512xf32>
    %26 = arith.mulf %24, %25 : vector<16x512xf32>
    %27 = arith.addf %22, %26 : vector<16x512xf32>
    %c0_23 = arith.constant 0 : index
    %c0_24 = arith.constant 0 : index
    %28 = vector.load %arg10[%c0_23, %c0_24] : memref<1x512xf32, #tpu.memory_space<vmem>>, vector<1x512xf32>
    %29 = vector.broadcast %28 : vector<1x512xf32> to vector<16x512xf32>
    %30 = arith.addf %27, %29 : vector<16x512xf32>
    %31 = vector.shape_cast %30 : vector<16x512xf32> to vector<2x8x512xf32>
    %c0_25 = arith.constant 0 : index
    %c0_26 = arith.constant 0 : index
    %32 = vector.load %arg11[%c0_25, %c0_26] : memref<128x512xf32, #tpu.memory_space<vmem>>, vector<128x512xf32>
    %c0_27 = arith.constant 0 : index
    %c0_28 = arith.constant 0 : index
    %33 = vector.load %arg12[%c0_27, %c0_28] : memref<128x512xf32, #tpu.memory_space<vmem>>, vector<128x512xf32>
    %c0_29 = arith.constant 0 : index
    %c0_30 = arith.constant 0 : index
    %34 = vector.load %arg13[%c0_29, %c0_30] : memref<128x512xf32, #tpu.memory_space<vmem>>, vector<128x512xf32>
    %c0_31 = arith.constant 0 : index
    %c0_32 = arith.constant 0 : index
    %35 = vector.load %arg14[%c0_31, %c0_32] : memref<1x512xf32, #tpu.memory_space<vmem>>, vector<1x512xf32>
    %cst_33 = arith.constant 0.000000e+00 : f32
    %36 = vector.broadcast %cst_33 : f32 to vector<2x128xf32>
    %37 = vector.extract_strided_slice %31 {offsets = [0, 0, 0], sizes = [2, 1, 512], strides = [1, 1, 1]} : vector<2x8x512xf32> to vector<2x1x512xf32>
    %38 = vector.shape_cast %37 : vector<2x1x512xf32> to vector<2x512xf32>
    %cst_34 = arith.constant dense<0.000000e+00> : vector<2x512xf32>
    %39 = tpu.matmul %36, %32, %cst_34 {dimension_numbers = #tpu.dot_dimension_numbers<[1], [0], [0], [1], [0, 0, 1, 1], [], []>} : vector<2x128xf32>, vector<128x512xf32>, vector<2x512xf32> -> vector<2x512xf32>
    %40 = arith.addf %38, %39 : vector<2x512xf32>
    %41 = vector.extract_strided_slice %40 {offsets = [0, 0], sizes = [2, 128], strides = [1, 1]} : vector<2x512xf32> to vector<2x128xf32>
    %42 = arith.negf %41 : vector<2x128xf32>
    %43 = math.exp %42 : vector<2x128xf32>
    %cst_35 = arith.constant 1.000000e+00 : f32
    %44 = vector.broadcast %cst_35 : f32 to vector<2x128xf32>
    %45 = arith.addf %44, %43 : vector<2x128xf32>
    %46 = arith.divf %44, %45 : vector<2x128xf32>
    %47 = vector.extract_strided_slice %40 {offsets = [0, 128], sizes = [2, 128], strides = [1, 1]} : vector<2x512xf32> to vector<2x128xf32>
    %48 = arith.negf %47 : vector<2x128xf32>
    %49 = math.exp %48 : vector<2x128xf32>
    %cst_36 = arith.constant 1.000000e+00 : f32
    %50 = vector.broadcast %cst_36 : f32 to vector<2x128xf32>
    %51 = arith.addf %50, %49 : vector<2x128xf32>
    %52 = arith.divf %50, %51 : vector<2x128xf32>
    %53 = vector.extract_strided_slice %40 {offsets = [0, 256], sizes = [2, 128], strides = [1, 1]} : vector<2x512xf32> to vector<2x128xf32>
    %54 = math.tanh %53 : vector<2x128xf32>
    %55 = vector.extract_strided_slice %40 {offsets = [0, 384], sizes = [2, 128], strides = [1, 1]} : vector<2x512xf32> to vector<2x128xf32>
    %56 = arith.negf %55 : vector<2x128xf32>
    %57 = math.exp %56 : vector<2x128xf32>
    %cst_37 = arith.constant 1.000000e+00 : f32
    %58 = vector.broadcast %cst_37 : f32 to vector<2x128xf32>
    %59 = arith.addf %58, %57 : vector<2x128xf32>
    %60 = arith.divf %58, %59 : vector<2x128xf32>
    %61 = arith.mulf %52, %36 : vector<2x128xf32>
    %62 = arith.mulf %46, %54 : vector<2x128xf32>
    %63 = arith.addf %61, %62 : vector<2x128xf32>
    %64 = math.tanh %63 : vector<2x128xf32>
    %65 = arith.mulf %60, %64 : vector<2x128xf32>
    %cst_38 = arith.constant dense<0.000000e+00> : vector<2x512xf32>
    %66 = tpu.matmul %65, %33, %cst_38 {dimension_numbers = #tpu.dot_dimension_numbers<[1], [0], [0], [1], [0, 0, 1, 1], [], []>} : vector<2x128xf32>, vector<128x512xf32>, vector<2x512xf32> -> vector<2x512xf32>
    %cst_39 = arith.constant dense<0.000000e+00> : vector<2x512xf32>
    %67 = tpu.matmul %36, %34, %cst_39 {dimension_numbers = #tpu.dot_dimension_numbers<[1], [0], [0], [1], [0, 0, 1, 1], [], []>} : vector<2x128xf32>, vector<128x512xf32>, vector<2x512xf32> -> vector<2x512xf32>
    %68 = arith.addf %66, %67 : vector<2x512xf32>
    %69 = vector.broadcast %35 : vector<1x512xf32> to vector<2x512xf32>
    %70 = arith.addf %68, %69 : vector<2x512xf32>
    %71 = vector.extract_strided_slice %70 {offsets = [0, 0], sizes = [2, 128], strides = [1, 1]} : vector<2x512xf32> to vector<2x128xf32>
    %72 = arith.negf %71 : vector<2x128xf32>
    %73 = math.exp %72 : vector<2x128xf32>
    %cst_40 = arith.constant 1.000000e+00 : f32
    %74 = vector.broadcast %cst_40 : f32 to vector<2x128xf32>
    %75 = arith.addf %74, %73 : vector<2x128xf32>
    %76 = arith.divf %74, %75 : vector<2x128xf32>
    %77 = vector.extract_strided_slice %70 {offsets = [0, 128], sizes = [2, 128], strides = [1, 1]} : vector<2x512xf32> to vector<2x128xf32>
    %78 = arith.negf %77 : vector<2x128xf32>
    %79 = math.exp %78 : vector<2x128xf32>
    %cst_41 = arith.constant 1.000000e+00 : f32
    %80 = vector.broadcast %cst_41 : f32 to vector<2x128xf32>
    %81 = arith.addf %80, %79 : vector<2x128xf32>
    %82 = arith.divf %80, %81 : vector<2x128xf32>
    %83 = vector.extract_strided_slice %70 {offsets = [0, 256], sizes = [2, 128], strides = [1, 1]} : vector<2x512xf32> to vector<2x128xf32>
    %84 = math.tanh %83 : vector<2x128xf32>
    %85 = vector.extract_strided_slice %70 {offsets = [0, 384], sizes = [2, 128], strides = [1, 1]} : vector<2x512xf32> to vector<2x128xf32>
    %86 = arith.negf %85 : vector<2x128xf32>
    %87 = math.exp %86 : vector<2x128xf32>
    %cst_42 = arith.constant 1.000000e+00 : f32
    %88 = vector.broadcast %cst_42 : f32 to vector<2x128xf32>
    %89 = arith.addf %88, %87 : vector<2x128xf32>
    %90 = arith.divf %88, %89 : vector<2x128xf32>
    %91 = arith.mulf %82, %36 : vector<2x128xf32>
    %92 = arith.mulf %76, %84 : vector<2x128xf32>
    %93 = arith.addf %91, %92 : vector<2x128xf32>
    %94 = math.tanh %93 : vector<2x128xf32>
    %95 = arith.mulf %90, %94 : vector<2x128xf32>
    %96 = vector.extract_strided_slice %31 {offsets = [0, 1, 0], sizes = [2, 1, 512], strides = [1, 1, 1]} : vector<2x8x512xf32> to vector<2x1x512xf32>
    %97 = vector.shape_cast %96 : vector<2x1x512xf32> to vector<2x512xf32>
    %cst_43 = arith.constant dense<0.000000e+00> : vector<2x512xf32>
    %98 = tpu.matmul %65, %32, %cst_43 {dimension_numbers = #tpu.dot_dimension_numbers<[1], [0], [0], [1], [0, 0, 1, 1], [], []>} : vector<2x128xf32>, vector<128x512xf32>, vector<2x512xf32> -> vector<2x512xf32>
    %99 = arith.addf %97, %98 : vector<2x512xf32>
    %100 = vector.extract_strided_slice %99 {offsets = [0, 0], sizes = [2, 128], strides = [1, 1]} : vector<2x512xf32> to vector<2x128xf32>
    %101 = arith.negf %100 : vector<2x128xf32>
    %102 = math.exp %101 : vector<2x128xf32>
    %cst_44 = arith.constant 1.000000e+00 : f32
    %103 = vector.broadcast %cst_44 : f32 to vector<2x128xf32>
    %104 = arith.addf %103, %102 : vector<2x128xf32>
    %105 = arith.divf %103, %104 : vector<2x128xf32>
    %106 = vector.extract_strided_slice %99 {offsets = [0, 128], sizes = [2, 128], strides = [1, 1]} : vector<2x512xf32> to vector<2x128xf32>
    %107 = arith.negf %106 : vector<2x128xf32>
    %108 = math.exp %107 : vector<2x128xf32>
    %cst_45 = arith.constant 1.000000e+00 : f32
    %109 = vector.broadcast %cst_45 : f32 to vector<2x128xf32>
    %110 = arith.addf %109, %108 : vector<2x128xf32>
    %111 = arith.divf %109, %110 : vector<2x128xf32>
    %112 = vector.extract_strided_slice %99 {offsets = [0, 256], sizes = [2, 128], strides = [1, 1]} : vector<2x512xf32> to vector<2x128xf32>
    %113 = math.tanh %112 : vector<2x128xf32>
    %114 = vector.extract_strided_slice %99 {offsets = [0, 384], sizes = [2, 128], strides = [1, 1]} : vector<2x512xf32> to vector<2x128xf32>
    %115 = arith.negf %114 : vector<2x128xf32>
    %116 = math.exp %115 : vector<2x128xf32>
    %cst_46 = arith.constant 1.000000e+00 : f32
    %117 = vector.broadcast %cst_46 : f32 to vector<2x128xf32>
    %118 = arith.addf %117, %116 : vector<2x128xf32>
    %119 = arith.divf %117, %118 : vector<2x128xf32>
    %120 = arith.mulf %111, %63 : vector<2x128xf32>
    %121 = arith.mulf %105, %113 : vector<2x128xf32>
    %122 = arith.addf %120, %121 : vector<2x128xf32>
    %123 = math.tanh %122 : vector<2x128xf32>
    %124 = arith.mulf %119, %123 : vector<2x128xf32>
    %cst_47 = arith.constant dense<0.000000e+00> : vector<2x512xf32>
    %125 = tpu.matmul %124, %33, %cst_47 {dimension_numbers = #tpu.dot_dimension_numbers<[1], [0], [0], [1], [0, 0, 1, 1], [], []>} : vector<2x128xf32>, vector<128x512xf32>, vector<2x512xf32> -> vector<2x512xf32>
    %cst_48 = arith.constant dense<0.000000e+00> : vector<2x512xf32>
    %126 = tpu.matmul %95, %34, %cst_48 {dimension_numbers = #tpu.dot_dimension_numbers<[1], [0], [0], [1], [0, 0, 1, 1], [], []>} : vector<2x128xf32>, vector<128x512xf32>, vector<2x512xf32> -> vector<2x512xf32>
    %127 = arith.addf %125, %126 : vector<2x512xf32>
    %128 = vector.broadcast %35 : vector<1x512xf32> to vector<2x512xf32>
    %129 = arith.addf %127, %128 : vector<2x512xf32>
    %130 = vector.extract_strided_slice %129 {offsets = [0, 0], sizes = [2, 128], strides = [1, 1]} : vector<2x512xf32> to vector<2x128xf32>
    %131 = arith.negf %130 : vector<2x128xf32>
    %132 = math.exp %131 : vector<2x128xf32>
    %cst_49 = arith.constant 1.000000e+00 : f32
    %133 = vector.broadcast %cst_49 : f32 to vector<2x128xf32>
    %134 = arith.addf %133, %132 : vector<2x128xf32>
    %135 = arith.divf %133, %134 : vector<2x128xf32>
    %136 = vector.extract_strided_slice %129 {offsets = [0, 128], sizes = [2, 128], strides = [1, 1]} : vector<2x512xf32> to vector<2x128xf32>
    %137 = arith.negf %136 : vector<2x128xf32>
    %138 = math.exp %137 : vector<2x128xf32>
    %cst_50 = arith.constant 1.000000e+00 : f32
    %139 = vector.broadcast %cst_50 : f32 to vector<2x128xf32>
    %140 = arith.addf %139, %138 : vector<2x128xf32>
    %141 = arith.divf %139, %140 : vector<2x128xf32>
    %142 = vector.extract_strided_slice %129 {offsets = [0, 256], sizes = [2, 128], strides = [1, 1]} : vector<2x512xf32> to vector<2x128xf32>
    %143 = math.tanh %142 : vector<2x128xf32>
    %144 = vector.extract_strided_slice %129 {offsets = [0, 384], sizes = [2, 128], strides = [1, 1]} : vector<2x512xf32> to vector<2x128xf32>
    %145 = arith.negf %144 : vector<2x128xf32>
    %146 = math.exp %145 : vector<2x128xf32>
    %cst_51 = arith.constant 1.000000e+00 : f32
    %147 = vector.broadcast %cst_51 : f32 to vector<2x128xf32>
    %148 = arith.addf %147, %146 : vector<2x128xf32>
    %149 = arith.divf %147, %148 : vector<2x128xf32>
    %150 = arith.mulf %141, %93 : vector<2x128xf32>
    %151 = arith.mulf %135, %143 : vector<2x128xf32>
    %152 = arith.addf %150, %151 : vector<2x128xf32>
    %153 = math.tanh %152 : vector<2x128xf32>
    %154 = arith.mulf %149, %153 : vector<2x128xf32>
    %155 = vector.extract_strided_slice %31 {offsets = [0, 2, 0], sizes = [2, 1, 512], strides = [1, 1, 1]} : vector<2x8x512xf32> to vector<2x1x512xf32>
    %156 = vector.shape_cast %155 : vector<2x1x512xf32> to vector<2x512xf32>
    %cst_52 = arith.constant dense<0.000000e+00> : vector<2x512xf32>
    %157 = tpu.matmul %124, %32, %cst_52 {dimension_numbers = #tpu.dot_dimension_numbers<[1], [0], [0], [1], [0, 0, 1, 1], [], []>} : vector<2x128xf32>, vector<128x512xf32>, vector<2x512xf32> -> vector<2x512xf32>
    %158 = arith.addf %156, %157 : vector<2x512xf32>
    %159 = vector.extract_strided_slice %158 {offsets = [0, 0], sizes = [2, 128], strides = [1, 1]} : vector<2x512xf32> to vector<2x128xf32>
    %160 = arith.negf %159 : vector<2x128xf32>
    %161 = math.exp %160 : vector<2x128xf32>
    %cst_53 = arith.constant 1.000000e+00 : f32
    %162 = vector.broadcast %cst_53 : f32 to vector<2x128xf32>
    %163 = arith.addf %162, %161 : vector<2x128xf32>
    %164 = arith.divf %162, %163 : vector<2x128xf32>
    %165 = vector.extract_strided_slice %158 {offsets = [0, 128], sizes = [2, 128], strides = [1, 1]} : vector<2x512xf32> to vector<2x128xf32>
    %166 = arith.negf %165 : vector<2x128xf32>
    %167 = math.exp %166 : vector<2x128xf32>
    %cst_54 = arith.constant 1.000000e+00 : f32
    %168 = vector.broadcast %cst_54 : f32 to vector<2x128xf32>
    %169 = arith.addf %168, %167 : vector<2x128xf32>
    %170 = arith.divf %168, %169 : vector<2x128xf32>
    %171 = vector.extract_strided_slice %158 {offsets = [0, 256], sizes = [2, 128], strides = [1, 1]} : vector<2x512xf32> to vector<2x128xf32>
    %172 = math.tanh %171 : vector<2x128xf32>
    %173 = vector.extract_strided_slice %158 {offsets = [0, 384], sizes = [2, 128], strides = [1, 1]} : vector<2x512xf32> to vector<2x128xf32>
    %174 = arith.negf %173 : vector<2x128xf32>
    %175 = math.exp %174 : vector<2x128xf32>
    %cst_55 = arith.constant 1.000000e+00 : f32
    %176 = vector.broadcast %cst_55 : f32 to vector<2x128xf32>
    %177 = arith.addf %176, %175 : vector<2x128xf32>
    %178 = arith.divf %176, %177 : vector<2x128xf32>
    %179 = arith.mulf %170, %122 : vector<2x128xf32>
    %180 = arith.mulf %164, %172 : vector<2x128xf32>
    %181 = arith.addf %179, %180 : vector<2x128xf32>
    %182 = math.tanh %181 : vector<2x128xf32>
    %183 = arith.mulf %178, %182 : vector<2x128xf32>
    %cst_56 = arith.constant dense<0.000000e+00> : vector<2x512xf32>
    %184 = tpu.matmul %183, %33, %cst_56 {dimension_numbers = #tpu.dot_dimension_numbers<[1], [0], [0], [1], [0, 0, 1, 1], [], []>} : vector<2x128xf32>, vector<128x512xf32>, vector<2x512xf32> -> vector<2x512xf32>
    %cst_57 = arith.constant dense<0.000000e+00> : vector<2x512xf32>
    %185 = tpu.matmul %154, %34, %cst_57 {dimension_numbers = #tpu.dot_dimension_numbers<[1], [0], [0], [1], [0, 0, 1, 1], [], []>} : vector<2x128xf32>, vector<128x512xf32>, vector<2x512xf32> -> vector<2x512xf32>
    %186 = arith.addf %184, %185 : vector<2x512xf32>
    %187 = vector.broadcast %35 : vector<1x512xf32> to vector<2x512xf32>
    %188 = arith.addf %186, %187 : vector<2x512xf32>
    %189 = vector.extract_strided_slice %188 {offsets = [0, 0], sizes = [2, 128], strides = [1, 1]} : vector<2x512xf32> to vector<2x128xf32>
    %190 = arith.negf %189 : vector<2x128xf32>
    %191 = math.exp %190 : vector<2x128xf32>
    %cst_58 = arith.constant 1.000000e+00 : f32
    %192 = vector.broadcast %cst_58 : f32 to vector<2x128xf32>
    %193 = arith.addf %192, %191 : vector<2x128xf32>
    %194 = arith.divf %192, %193 : vector<2x128xf32>
    %195 = vector.extract_strided_slice %188 {offsets = [0, 128], sizes = [2, 128], strides = [1, 1]} : vector<2x512xf32> to vector<2x128xf32>
    %196 = arith.negf %195 : vector<2x128xf32>
    %197 = math.exp %196 : vector<2x128xf32>
    %cst_59 = arith.constant 1.000000e+00 : f32
    %198 = vector.broadcast %cst_59 : f32 to vector<2x128xf32>
    %199 = arith.addf %198, %197 : vector<2x128xf32>
    %200 = arith.divf %198, %199 : vector<2x128xf32>
    %201 = vector.extract_strided_slice %188 {offsets = [0, 256], sizes = [2, 128], strides = [1, 1]} : vector<2x512xf32> to vector<2x128xf32>
    %202 = math.tanh %201 : vector<2x128xf32>
    %203 = vector.extract_strided_slice %188 {offsets = [0, 384], sizes = [2, 128], strides = [1, 1]} : vector<2x512xf32> to vector<2x128xf32>
    %204 = arith.negf %203 : vector<2x128xf32>
    %205 = math.exp %204 : vector<2x128xf32>
    %cst_60 = arith.constant 1.000000e+00 : f32
    %206 = vector.broadcast %cst_60 : f32 to vector<2x128xf32>
    %207 = arith.addf %206, %205 : vector<2x128xf32>
    %208 = arith.divf %206, %207 : vector<2x128xf32>
    %209 = arith.mulf %200, %152 : vector<2x128xf32>
    %210 = arith.mulf %194, %202 : vector<2x128xf32>
    %211 = arith.addf %209, %210 : vector<2x128xf32>
    %212 = math.tanh %211 : vector<2x128xf32>
    %213 = arith.mulf %208, %212 : vector<2x128xf32>
    %214 = vector.extract_strided_slice %31 {offsets = [0, 3, 0], sizes = [2, 1, 512], strides = [1, 1, 1]} : vector<2x8x512xf32> to vector<2x1x512xf32>
    %215 = vector.shape_cast %214 : vector<2x1x512xf32> to vector<2x512xf32>
    %cst_61 = arith.constant dense<0.000000e+00> : vector<2x512xf32>
    %216 = tpu.matmul %183, %32, %cst_61 {dimension_numbers = #tpu.dot_dimension_numbers<[1], [0], [0], [1], [0, 0, 1, 1], [], []>} : vector<2x128xf32>, vector<128x512xf32>, vector<2x512xf32> -> vector<2x512xf32>
    %217 = arith.addf %215, %216 : vector<2x512xf32>
    %218 = vector.extract_strided_slice %217 {offsets = [0, 0], sizes = [2, 128], strides = [1, 1]} : vector<2x512xf32> to vector<2x128xf32>
    %219 = arith.negf %218 : vector<2x128xf32>
    %220 = math.exp %219 : vector<2x128xf32>
    %cst_62 = arith.constant 1.000000e+00 : f32
    %221 = vector.broadcast %cst_62 : f32 to vector<2x128xf32>
    %222 = arith.addf %221, %220 : vector<2x128xf32>
    %223 = arith.divf %221, %222 : vector<2x128xf32>
    %224 = vector.extract_strided_slice %217 {offsets = [0, 128], sizes = [2, 128], strides = [1, 1]} : vector<2x512xf32> to vector<2x128xf32>
    %225 = arith.negf %224 : vector<2x128xf32>
    %226 = math.exp %225 : vector<2x128xf32>
    %cst_63 = arith.constant 1.000000e+00 : f32
    %227 = vector.broadcast %cst_63 : f32 to vector<2x128xf32>
    %228 = arith.addf %227, %226 : vector<2x128xf32>
    %229 = arith.divf %227, %228 : vector<2x128xf32>
    %230 = vector.extract_strided_slice %217 {offsets = [0, 256], sizes = [2, 128], strides = [1, 1]} : vector<2x512xf32> to vector<2x128xf32>
    %231 = math.tanh %230 : vector<2x128xf32>
    %232 = vector.extract_strided_slice %217 {offsets = [0, 384], sizes = [2, 128], strides = [1, 1]} : vector<2x512xf32> to vector<2x128xf32>
    %233 = arith.negf %232 : vector<2x128xf32>
    %234 = math.exp %233 : vector<2x128xf32>
    %cst_64 = arith.constant 1.000000e+00 : f32
    %235 = vector.broadcast %cst_64 : f32 to vector<2x128xf32>
    %236 = arith.addf %235, %234 : vector<2x128xf32>
    %237 = arith.divf %235, %236 : vector<2x128xf32>
    %238 = arith.mulf %229, %181 : vector<2x128xf32>
    %239 = arith.mulf %223, %231 : vector<2x128xf32>
    %240 = arith.addf %238, %239 : vector<2x128xf32>
    %241 = math.tanh %240 : vector<2x128xf32>
    %242 = arith.mulf %237, %241 : vector<2x128xf32>
    %cst_65 = arith.constant dense<0.000000e+00> : vector<2x512xf32>
    %243 = tpu.matmul %242, %33, %cst_65 {dimension_numbers = #tpu.dot_dimension_numbers<[1], [0], [0], [1], [0, 0, 1, 1], [], []>} : vector<2x128xf32>, vector<128x512xf32>, vector<2x512xf32> -> vector<2x512xf32>
    %cst_66 = arith.constant dense<0.000000e+00> : vector<2x512xf32>
    %244 = tpu.matmul %213, %34, %cst_66 {dimension_numbers = #tpu.dot_dimension_numbers<[1], [0], [0], [1], [0, 0, 1, 1], [], []>} : vector<2x128xf32>, vector<128x512xf32>, vector<2x512xf32> -> vector<2x512xf32>
    %245 = arith.addf %243, %244 : vector<2x512xf32>
    %246 = vector.broadcast %35 : vector<1x512xf32> to vector<2x512xf32>
    %247 = arith.addf %245, %246 : vector<2x512xf32>
    %248 = vector.extract_strided_slice %247 {offsets = [0, 0], sizes = [2, 128], strides = [1, 1]} : vector<2x512xf32> to vector<2x128xf32>
    %249 = arith.negf %248 : vector<2x128xf32>
    %250 = math.exp %249 : vector<2x128xf32>
    %cst_67 = arith.constant 1.000000e+00 : f32
    %251 = vector.broadcast %cst_67 : f32 to vector<2x128xf32>
    %252 = arith.addf %251, %250 : vector<2x128xf32>
    %253 = arith.divf %251, %252 : vector<2x128xf32>
    %254 = vector.extract_strided_slice %247 {offsets = [0, 128], sizes = [2, 128], strides = [1, 1]} : vector<2x512xf32> to vector<2x128xf32>
    %255 = arith.negf %254 : vector<2x128xf32>
    %256 = math.exp %255 : vector<2x128xf32>
    %cst_68 = arith.constant 1.000000e+00 : f32
    %257 = vector.broadcast %cst_68 : f32 to vector<2x128xf32>
    %258 = arith.addf %257, %256 : vector<2x128xf32>
    %259 = arith.divf %257, %258 : vector<2x128xf32>
    %260 = vector.extract_strided_slice %247 {offsets = [0, 256], sizes = [2, 128], strides = [1, 1]} : vector<2x512xf32> to vector<2x128xf32>
    %261 = math.tanh %260 : vector<2x128xf32>
    %262 = vector.extract_strided_slice %247 {offsets = [0, 384], sizes = [2, 128], strides = [1, 1]} : vector<2x512xf32> to vector<2x128xf32>
    %263 = arith.negf %262 : vector<2x128xf32>
    %264 = math.exp %263 : vector<2x128xf32>
    %cst_69 = arith.constant 1.000000e+00 : f32
    %265 = vector.broadcast %cst_69 : f32 to vector<2x128xf32>
    %266 = arith.addf %265, %264 : vector<2x128xf32>
    %267 = arith.divf %265, %266 : vector<2x128xf32>
    %268 = arith.mulf %259, %211 : vector<2x128xf32>
    %269 = arith.mulf %253, %261 : vector<2x128xf32>
    %270 = arith.addf %268, %269 : vector<2x128xf32>
    %271 = math.tanh %270 : vector<2x128xf32>
    %272 = arith.mulf %267, %271 : vector<2x128xf32>
    %273 = vector.extract_strided_slice %31 {offsets = [0, 4, 0], sizes = [2, 1, 512], strides = [1, 1, 1]} : vector<2x8x512xf32> to vector<2x1x512xf32>
    %274 = vector.shape_cast %273 : vector<2x1x512xf32> to vector<2x512xf32>
    %cst_70 = arith.constant dense<0.000000e+00> : vector<2x512xf32>
    %275 = tpu.matmul %242, %32, %cst_70 {dimension_numbers = #tpu.dot_dimension_numbers<[1], [0], [0], [1], [0, 0, 1, 1], [], []>} : vector<2x128xf32>, vector<128x512xf32>, vector<2x512xf32> -> vector<2x512xf32>
    %276 = arith.addf %274, %275 : vector<2x512xf32>
    %277 = vector.extract_strided_slice %276 {offsets = [0, 0], sizes = [2, 128], strides = [1, 1]} : vector<2x512xf32> to vector<2x128xf32>
    %278 = arith.negf %277 : vector<2x128xf32>
    %279 = math.exp %278 : vector<2x128xf32>
    %cst_71 = arith.constant 1.000000e+00 : f32
    %280 = vector.broadcast %cst_71 : f32 to vector<2x128xf32>
    %281 = arith.addf %280, %279 : vector<2x128xf32>
    %282 = arith.divf %280, %281 : vector<2x128xf32>
    %283 = vector.extract_strided_slice %276 {offsets = [0, 128], sizes = [2, 128], strides = [1, 1]} : vector<2x512xf32> to vector<2x128xf32>
    %284 = arith.negf %283 : vector<2x128xf32>
    %285 = math.exp %284 : vector<2x128xf32>
    %cst_72 = arith.constant 1.000000e+00 : f32
    %286 = vector.broadcast %cst_72 : f32 to vector<2x128xf32>
    %287 = arith.addf %286, %285 : vector<2x128xf32>
    %288 = arith.divf %286, %287 : vector<2x128xf32>
    %289 = vector.extract_strided_slice %276 {offsets = [0, 256], sizes = [2, 128], strides = [1, 1]} : vector<2x512xf32> to vector<2x128xf32>
    %290 = math.tanh %289 : vector<2x128xf32>
    %291 = vector.extract_strided_slice %276 {offsets = [0, 384], sizes = [2, 128], strides = [1, 1]} : vector<2x512xf32> to vector<2x128xf32>
    %292 = arith.negf %291 : vector<2x128xf32>
    %293 = math.exp %292 : vector<2x128xf32>
    %cst_73 = arith.constant 1.000000e+00 : f32
    %294 = vector.broadcast %cst_73 : f32 to vector<2x128xf32>
    %295 = arith.addf %294, %293 : vector<2x128xf32>
    %296 = arith.divf %294, %295 : vector<2x128xf32>
    %297 = arith.mulf %288, %240 : vector<2x128xf32>
    %298 = arith.mulf %282, %290 : vector<2x128xf32>
    %299 = arith.addf %297, %298 : vector<2x128xf32>
    %300 = math.tanh %299 : vector<2x128xf32>
    %301 = arith.mulf %296, %300 : vector<2x128xf32>
    %cst_74 = arith.constant dense<0.000000e+00> : vector<2x512xf32>
    %302 = tpu.matmul %301, %33, %cst_74 {dimension_numbers = #tpu.dot_dimension_numbers<[1], [0], [0], [1], [0, 0, 1, 1], [], []>} : vector<2x128xf32>, vector<128x512xf32>, vector<2x512xf32> -> vector<2x512xf32>
    %cst_75 = arith.constant dense<0.000000e+00> : vector<2x512xf32>
    %303 = tpu.matmul %272, %34, %cst_75 {dimension_numbers = #tpu.dot_dimension_numbers<[1], [0], [0], [1], [0, 0, 1, 1], [], []>} : vector<2x128xf32>, vector<128x512xf32>, vector<2x512xf32> -> vector<2x512xf32>
    %304 = arith.addf %302, %303 : vector<2x512xf32>
    %305 = vector.broadcast %35 : vector<1x512xf32> to vector<2x512xf32>
    %306 = arith.addf %304, %305 : vector<2x512xf32>
    %307 = vector.extract_strided_slice %306 {offsets = [0, 0], sizes = [2, 128], strides = [1, 1]} : vector<2x512xf32> to vector<2x128xf32>
    %308 = arith.negf %307 : vector<2x128xf32>
    %309 = math.exp %308 : vector<2x128xf32>
    %cst_76 = arith.constant 1.000000e+00 : f32
    %310 = vector.broadcast %cst_76 : f32 to vector<2x128xf32>
    %311 = arith.addf %310, %309 : vector<2x128xf32>
    %312 = arith.divf %310, %311 : vector<2x128xf32>
    %313 = vector.extract_strided_slice %306 {offsets = [0, 128], sizes = [2, 128], strides = [1, 1]} : vector<2x512xf32> to vector<2x128xf32>
    %314 = arith.negf %313 : vector<2x128xf32>
    %315 = math.exp %314 : vector<2x128xf32>
    %cst_77 = arith.constant 1.000000e+00 : f32
    %316 = vector.broadcast %cst_77 : f32 to vector<2x128xf32>
    %317 = arith.addf %316, %315 : vector<2x128xf32>
    %318 = arith.divf %316, %317 : vector<2x128xf32>
    %319 = vector.extract_strided_slice %306 {offsets = [0, 256], sizes = [2, 128], strides = [1, 1]} : vector<2x512xf32> to vector<2x128xf32>
    %320 = math.tanh %319 : vector<2x128xf32>
    %321 = vector.extract_strided_slice %306 {offsets = [0, 384], sizes = [2, 128], strides = [1, 1]} : vector<2x512xf32> to vector<2x128xf32>
    %322 = arith.negf %321 : vector<2x128xf32>
    %323 = math.exp %322 : vector<2x128xf32>
    %cst_78 = arith.constant 1.000000e+00 : f32
    %324 = vector.broadcast %cst_78 : f32 to vector<2x128xf32>
    %325 = arith.addf %324, %323 : vector<2x128xf32>
    %326 = arith.divf %324, %325 : vector<2x128xf32>
    %327 = arith.mulf %318, %270 : vector<2x128xf32>
    %328 = arith.mulf %312, %320 : vector<2x128xf32>
    %329 = arith.addf %327, %328 : vector<2x128xf32>
    %330 = math.tanh %329 : vector<2x128xf32>
    %331 = arith.mulf %326, %330 : vector<2x128xf32>
    %332 = vector.extract_strided_slice %31 {offsets = [0, 5, 0], sizes = [2, 1, 512], strides = [1, 1, 1]} : vector<2x8x512xf32> to vector<2x1x512xf32>
    %333 = vector.shape_cast %332 : vector<2x1x512xf32> to vector<2x512xf32>
    %cst_79 = arith.constant dense<0.000000e+00> : vector<2x512xf32>
    %334 = tpu.matmul %301, %32, %cst_79 {dimension_numbers = #tpu.dot_dimension_numbers<[1], [0], [0], [1], [0, 0, 1, 1], [], []>} : vector<2x128xf32>, vector<128x512xf32>, vector<2x512xf32> -> vector<2x512xf32>
    %335 = arith.addf %333, %334 : vector<2x512xf32>
    %336 = vector.extract_strided_slice %335 {offsets = [0, 0], sizes = [2, 128], strides = [1, 1]} : vector<2x512xf32> to vector<2x128xf32>
    %337 = arith.negf %336 : vector<2x128xf32>
    %338 = math.exp %337 : vector<2x128xf32>
    %cst_80 = arith.constant 1.000000e+00 : f32
    %339 = vector.broadcast %cst_80 : f32 to vector<2x128xf32>
    %340 = arith.addf %339, %338 : vector<2x128xf32>
    %341 = arith.divf %339, %340 : vector<2x128xf32>
    %342 = vector.extract_strided_slice %335 {offsets = [0, 128], sizes = [2, 128], strides = [1, 1]} : vector<2x512xf32> to vector<2x128xf32>
    %343 = arith.negf %342 : vector<2x128xf32>
    %344 = math.exp %343 : vector<2x128xf32>
    %cst_81 = arith.constant 1.000000e+00 : f32
    %345 = vector.broadcast %cst_81 : f32 to vector<2x128xf32>
    %346 = arith.addf %345, %344 : vector<2x128xf32>
    %347 = arith.divf %345, %346 : vector<2x128xf32>
    %348 = vector.extract_strided_slice %335 {offsets = [0, 256], sizes = [2, 128], strides = [1, 1]} : vector<2x512xf32> to vector<2x128xf32>
    %349 = math.tanh %348 : vector<2x128xf32>
    %350 = vector.extract_strided_slice %335 {offsets = [0, 384], sizes = [2, 128], strides = [1, 1]} : vector<2x512xf32> to vector<2x128xf32>
    %351 = arith.negf %350 : vector<2x128xf32>
    %352 = math.exp %351 : vector<2x128xf32>
    %cst_82 = arith.constant 1.000000e+00 : f32
    %353 = vector.broadcast %cst_82 : f32 to vector<2x128xf32>
    %354 = arith.addf %353, %352 : vector<2x128xf32>
    %355 = arith.divf %353, %354 : vector<2x128xf32>
    %356 = arith.mulf %347, %299 : vector<2x128xf32>
    %357 = arith.mulf %341, %349 : vector<2x128xf32>
    %358 = arith.addf %356, %357 : vector<2x128xf32>
    %359 = math.tanh %358 : vector<2x128xf32>
    %360 = arith.mulf %355, %359 : vector<2x128xf32>
    %cst_83 = arith.constant dense<0.000000e+00> : vector<2x512xf32>
    %361 = tpu.matmul %360, %33, %cst_83 {dimension_numbers = #tpu.dot_dimension_numbers<[1], [0], [0], [1], [0, 0, 1, 1], [], []>} : vector<2x128xf32>, vector<128x512xf32>, vector<2x512xf32> -> vector<2x512xf32>
    %cst_84 = arith.constant dense<0.000000e+00> : vector<2x512xf32>
    %362 = tpu.matmul %331, %34, %cst_84 {dimension_numbers = #tpu.dot_dimension_numbers<[1], [0], [0], [1], [0, 0, 1, 1], [], []>} : vector<2x128xf32>, vector<128x512xf32>, vector<2x512xf32> -> vector<2x512xf32>
    %363 = arith.addf %361, %362 : vector<2x512xf32>
    %364 = vector.broadcast %35 : vector<1x512xf32> to vector<2x512xf32>
    %365 = arith.addf %363, %364 : vector<2x512xf32>
    %366 = vector.extract_strided_slice %365 {offsets = [0, 0], sizes = [2, 128], strides = [1, 1]} : vector<2x512xf32> to vector<2x128xf32>
    %367 = arith.negf %366 : vector<2x128xf32>
    %368 = math.exp %367 : vector<2x128xf32>
    %cst_85 = arith.constant 1.000000e+00 : f32
    %369 = vector.broadcast %cst_85 : f32 to vector<2x128xf32>
    %370 = arith.addf %369, %368 : vector<2x128xf32>
    %371 = arith.divf %369, %370 : vector<2x128xf32>
    %372 = vector.extract_strided_slice %365 {offsets = [0, 128], sizes = [2, 128], strides = [1, 1]} : vector<2x512xf32> to vector<2x128xf32>
    %373 = arith.negf %372 : vector<2x128xf32>
    %374 = math.exp %373 : vector<2x128xf32>
    %cst_86 = arith.constant 1.000000e+00 : f32
    %375 = vector.broadcast %cst_86 : f32 to vector<2x128xf32>
    %376 = arith.addf %375, %374 : vector<2x128xf32>
    %377 = arith.divf %375, %376 : vector<2x128xf32>
    %378 = vector.extract_strided_slice %365 {offsets = [0, 256], sizes = [2, 128], strides = [1, 1]} : vector<2x512xf32> to vector<2x128xf32>
    %379 = math.tanh %378 : vector<2x128xf32>
    %380 = vector.extract_strided_slice %365 {offsets = [0, 384], sizes = [2, 128], strides = [1, 1]} : vector<2x512xf32> to vector<2x128xf32>
    %381 = arith.negf %380 : vector<2x128xf32>
    %382 = math.exp %381 : vector<2x128xf32>
    %cst_87 = arith.constant 1.000000e+00 : f32
    %383 = vector.broadcast %cst_87 : f32 to vector<2x128xf32>
    %384 = arith.addf %383, %382 : vector<2x128xf32>
    %385 = arith.divf %383, %384 : vector<2x128xf32>
    %386 = arith.mulf %377, %329 : vector<2x128xf32>
    %387 = arith.mulf %371, %379 : vector<2x128xf32>
    %388 = arith.addf %386, %387 : vector<2x128xf32>
    %389 = math.tanh %388 : vector<2x128xf32>
    %390 = arith.mulf %385, %389 : vector<2x128xf32>
    %391 = vector.extract_strided_slice %31 {offsets = [0, 6, 0], sizes = [2, 1, 512], strides = [1, 1, 1]} : vector<2x8x512xf32> to vector<2x1x512xf32>
    %392 = vector.shape_cast %391 : vector<2x1x512xf32> to vector<2x512xf32>
    %cst_88 = arith.constant dense<0.000000e+00> : vector<2x512xf32>
    %393 = tpu.matmul %360, %32, %cst_88 {dimension_numbers = #tpu.dot_dimension_numbers<[1], [0], [0], [1], [0, 0, 1, 1], [], []>} : vector<2x128xf32>, vector<128x512xf32>, vector<2x512xf32> -> vector<2x512xf32>
    %394 = arith.addf %392, %393 : vector<2x512xf32>
    %395 = vector.extract_strided_slice %394 {offsets = [0, 0], sizes = [2, 128], strides = [1, 1]} : vector<2x512xf32> to vector<2x128xf32>
    %396 = arith.negf %395 : vector<2x128xf32>
    %397 = math.exp %396 : vector<2x128xf32>
    %cst_89 = arith.constant 1.000000e+00 : f32
    %398 = vector.broadcast %cst_89 : f32 to vector<2x128xf32>
    %399 = arith.addf %398, %397 : vector<2x128xf32>
    %400 = arith.divf %398, %399 : vector<2x128xf32>
    %401 = vector.extract_strided_slice %394 {offsets = [0, 128], sizes = [2, 128], strides = [1, 1]} : vector<2x512xf32> to vector<2x128xf32>
    %402 = arith.negf %401 : vector<2x128xf32>
    %403 = math.exp %402 : vector<2x128xf32>
    %cst_90 = arith.constant 1.000000e+00 : f32
    %404 = vector.broadcast %cst_90 : f32 to vector<2x128xf32>
    %405 = arith.addf %404, %403 : vector<2x128xf32>
    %406 = arith.divf %404, %405 : vector<2x128xf32>
    %407 = vector.extract_strided_slice %394 {offsets = [0, 256], sizes = [2, 128], strides = [1, 1]} : vector<2x512xf32> to vector<2x128xf32>
    %408 = math.tanh %407 : vector<2x128xf32>
    %409 = vector.extract_strided_slice %394 {offsets = [0, 384], sizes = [2, 128], strides = [1, 1]} : vector<2x512xf32> to vector<2x128xf32>
    %410 = arith.negf %409 : vector<2x128xf32>
    %411 = math.exp %410 : vector<2x128xf32>
    %cst_91 = arith.constant 1.000000e+00 : f32
    %412 = vector.broadcast %cst_91 : f32 to vector<2x128xf32>
    %413 = arith.addf %412, %411 : vector<2x128xf32>
    %414 = arith.divf %412, %413 : vector<2x128xf32>
    %415 = arith.mulf %406, %358 : vector<2x128xf32>
    %416 = arith.mulf %400, %408 : vector<2x128xf32>
    %417 = arith.addf %415, %416 : vector<2x128xf32>
    %418 = math.tanh %417 : vector<2x128xf32>
    %419 = arith.mulf %414, %418 : vector<2x128xf32>
    %cst_92 = arith.constant dense<0.000000e+00> : vector<2x512xf32>
    %420 = tpu.matmul %419, %33, %cst_92 {dimension_numbers = #tpu.dot_dimension_numbers<[1], [0], [0], [1], [0, 0, 1, 1], [], []>} : vector<2x128xf32>, vector<128x512xf32>, vector<2x512xf32> -> vector<2x512xf32>
    %cst_93 = arith.constant dense<0.000000e+00> : vector<2x512xf32>
    %421 = tpu.matmul %390, %34, %cst_93 {dimension_numbers = #tpu.dot_dimension_numbers<[1], [0], [0], [1], [0, 0, 1, 1], [], []>} : vector<2x128xf32>, vector<128x512xf32>, vector<2x512xf32> -> vector<2x512xf32>
    %422 = arith.addf %420, %421 : vector<2x512xf32>
    %423 = vector.broadcast %35 : vector<1x512xf32> to vector<2x512xf32>
    %424 = arith.addf %422, %423 : vector<2x512xf32>
    %425 = vector.extract_strided_slice %424 {offsets = [0, 0], sizes = [2, 128], strides = [1, 1]} : vector<2x512xf32> to vector<2x128xf32>
    %426 = arith.negf %425 : vector<2x128xf32>
    %427 = math.exp %426 : vector<2x128xf32>
    %cst_94 = arith.constant 1.000000e+00 : f32
    %428 = vector.broadcast %cst_94 : f32 to vector<2x128xf32>
    %429 = arith.addf %428, %427 : vector<2x128xf32>
    %430 = arith.divf %428, %429 : vector<2x128xf32>
    %431 = vector.extract_strided_slice %424 {offsets = [0, 128], sizes = [2, 128], strides = [1, 1]} : vector<2x512xf32> to vector<2x128xf32>
    %432 = arith.negf %431 : vector<2x128xf32>
    %433 = math.exp %432 : vector<2x128xf32>
    %cst_95 = arith.constant 1.000000e+00 : f32
    %434 = vector.broadcast %cst_95 : f32 to vector<2x128xf32>
    %435 = arith.addf %434, %433 : vector<2x128xf32>
    %436 = arith.divf %434, %435 : vector<2x128xf32>
    %437 = vector.extract_strided_slice %424 {offsets = [0, 256], sizes = [2, 128], strides = [1, 1]} : vector<2x512xf32> to vector<2x128xf32>
    %438 = math.tanh %437 : vector<2x128xf32>
    %439 = vector.extract_strided_slice %424 {offsets = [0, 384], sizes = [2, 128], strides = [1, 1]} : vector<2x512xf32> to vector<2x128xf32>
    %440 = arith.negf %439 : vector<2x128xf32>
    %441 = math.exp %440 : vector<2x128xf32>
    %cst_96 = arith.constant 1.000000e+00 : f32
    %442 = vector.broadcast %cst_96 : f32 to vector<2x128xf32>
    %443 = arith.addf %442, %441 : vector<2x128xf32>
    %444 = arith.divf %442, %443 : vector<2x128xf32>
    %445 = arith.mulf %436, %388 : vector<2x128xf32>
    %446 = arith.mulf %430, %438 : vector<2x128xf32>
    %447 = arith.addf %445, %446 : vector<2x128xf32>
    %448 = math.tanh %447 : vector<2x128xf32>
    %449 = arith.mulf %444, %448 : vector<2x128xf32>
    %450 = vector.extract_strided_slice %31 {offsets = [0, 7, 0], sizes = [2, 1, 512], strides = [1, 1, 1]} : vector<2x8x512xf32> to vector<2x1x512xf32>
    %451 = vector.shape_cast %450 : vector<2x1x512xf32> to vector<2x512xf32>
    %cst_97 = arith.constant dense<0.000000e+00> : vector<2x512xf32>
    %452 = tpu.matmul %419, %32, %cst_97 {dimension_numbers = #tpu.dot_dimension_numbers<[1], [0], [0], [1], [0, 0, 1, 1], [], []>} : vector<2x128xf32>, vector<128x512xf32>, vector<2x512xf32> -> vector<2x512xf32>
    %453 = arith.addf %451, %452 : vector<2x512xf32>
    %454 = vector.extract_strided_slice %453 {offsets = [0, 0], sizes = [2, 128], strides = [1, 1]} : vector<2x512xf32> to vector<2x128xf32>
    %455 = arith.negf %454 : vector<2x128xf32>
    %456 = math.exp %455 : vector<2x128xf32>
    %cst_98 = arith.constant 1.000000e+00 : f32
    %457 = vector.broadcast %cst_98 : f32 to vector<2x128xf32>
    %458 = arith.addf %457, %456 : vector<2x128xf32>
    %459 = arith.divf %457, %458 : vector<2x128xf32>
    %460 = vector.extract_strided_slice %453 {offsets = [0, 128], sizes = [2, 128], strides = [1, 1]} : vector<2x512xf32> to vector<2x128xf32>
    %461 = arith.negf %460 : vector<2x128xf32>
    %462 = math.exp %461 : vector<2x128xf32>
    %cst_99 = arith.constant 1.000000e+00 : f32
    %463 = vector.broadcast %cst_99 : f32 to vector<2x128xf32>
    %464 = arith.addf %463, %462 : vector<2x128xf32>
    %465 = arith.divf %463, %464 : vector<2x128xf32>
    %466 = vector.extract_strided_slice %453 {offsets = [0, 256], sizes = [2, 128], strides = [1, 1]} : vector<2x512xf32> to vector<2x128xf32>
    %467 = math.tanh %466 : vector<2x128xf32>
    %468 = vector.extract_strided_slice %453 {offsets = [0, 384], sizes = [2, 128], strides = [1, 1]} : vector<2x512xf32> to vector<2x128xf32>
    %469 = arith.negf %468 : vector<2x128xf32>
    %470 = math.exp %469 : vector<2x128xf32>
    %cst_100 = arith.constant 1.000000e+00 : f32
    %471 = vector.broadcast %cst_100 : f32 to vector<2x128xf32>
    %472 = arith.addf %471, %470 : vector<2x128xf32>
    %473 = arith.divf %471, %472 : vector<2x128xf32>
    %474 = arith.mulf %465, %417 : vector<2x128xf32>
    %475 = arith.mulf %459, %467 : vector<2x128xf32>
    %476 = arith.addf %474, %475 : vector<2x128xf32>
    %477 = math.tanh %476 : vector<2x128xf32>
    %478 = arith.mulf %473, %477 : vector<2x128xf32>
    %cst_101 = arith.constant dense<0.000000e+00> : vector<2x512xf32>
    %479 = tpu.matmul %478, %33, %cst_101 {dimension_numbers = #tpu.dot_dimension_numbers<[1], [0], [0], [1], [0, 0, 1, 1], [], []>} : vector<2x128xf32>, vector<128x512xf32>, vector<2x512xf32> -> vector<2x512xf32>
    %cst_102 = arith.constant dense<0.000000e+00> : vector<2x512xf32>
    %480 = tpu.matmul %449, %34, %cst_102 {dimension_numbers = #tpu.dot_dimension_numbers<[1], [0], [0], [1], [0, 0, 1, 1], [], []>} : vector<2x128xf32>, vector<128x512xf32>, vector<2x512xf32> -> vector<2x512xf32>
    %481 = arith.addf %479, %480 : vector<2x512xf32>
    %482 = vector.broadcast %35 : vector<1x512xf32> to vector<2x512xf32>
    %483 = arith.addf %481, %482 : vector<2x512xf32>
    %484 = vector.extract_strided_slice %483 {offsets = [0, 0], sizes = [2, 128], strides = [1, 1]} : vector<2x512xf32> to vector<2x128xf32>
    %485 = arith.negf %484 : vector<2x128xf32>
    %486 = math.exp %485 : vector<2x128xf32>
    %cst_103 = arith.constant 1.000000e+00 : f32
    %487 = vector.broadcast %cst_103 : f32 to vector<2x128xf32>
    %488 = arith.addf %487, %486 : vector<2x128xf32>
    %489 = arith.divf %487, %488 : vector<2x128xf32>
    %490 = vector.extract_strided_slice %483 {offsets = [0, 128], sizes = [2, 128], strides = [1, 1]} : vector<2x512xf32> to vector<2x128xf32>
    %491 = arith.negf %490 : vector<2x128xf32>
    %492 = math.exp %491 : vector<2x128xf32>
    %cst_104 = arith.constant 1.000000e+00 : f32
    %493 = vector.broadcast %cst_104 : f32 to vector<2x128xf32>
    %494 = arith.addf %493, %492 : vector<2x128xf32>
    %495 = arith.divf %493, %494 : vector<2x128xf32>
    %496 = vector.extract_strided_slice %483 {offsets = [0, 256], sizes = [2, 128], strides = [1, 1]} : vector<2x512xf32> to vector<2x128xf32>
    %497 = math.tanh %496 : vector<2x128xf32>
    %498 = vector.extract_strided_slice %483 {offsets = [0, 384], sizes = [2, 128], strides = [1, 1]} : vector<2x512xf32> to vector<2x128xf32>
    %499 = arith.negf %498 : vector<2x128xf32>
    %500 = math.exp %499 : vector<2x128xf32>
    %cst_105 = arith.constant 1.000000e+00 : f32
    %501 = vector.broadcast %cst_105 : f32 to vector<2x128xf32>
    %502 = arith.addf %501, %500 : vector<2x128xf32>
    %503 = arith.divf %501, %502 : vector<2x128xf32>
    %504 = arith.mulf %495, %447 : vector<2x128xf32>
    %505 = arith.mulf %489, %497 : vector<2x128xf32>
    %506 = arith.addf %504, %505 : vector<2x128xf32>
    %507 = math.tanh %506 : vector<2x128xf32>
    %508 = arith.mulf %503, %507 : vector<2x128xf32>
    %509 = vector.shape_cast %95 : vector<2x128xf32> to vector<2x1x128xf32>
    %510 = vector.shape_cast %154 : vector<2x128xf32> to vector<2x1x128xf32>
    %511 = vector.shape_cast %213 : vector<2x128xf32> to vector<2x1x128xf32>
    %512 = vector.shape_cast %272 : vector<2x128xf32> to vector<2x1x128xf32>
    %513 = vector.shape_cast %331 : vector<2x128xf32> to vector<2x1x128xf32>
    %514 = vector.shape_cast %390 : vector<2x128xf32> to vector<2x1x128xf32>
    %515 = vector.shape_cast %449 : vector<2x128xf32> to vector<2x1x128xf32>
    %516 = vector.shape_cast %508 : vector<2x128xf32> to vector<2x1x128xf32>
    %517 = tpu.concatenate %509, %510, %511, %512, %513, %514, %515, %516 in 1 : vector<2x1x128xf32>, vector<2x1x128xf32>, vector<2x1x128xf32>, vector<2x1x128xf32>, vector<2x1x128xf32>, vector<2x1x128xf32>, vector<2x1x128xf32>, vector<2x1x128xf32> -> vector<2x8x128xf32>
    %518 = vector.shape_cast %517 : vector<2x8x128xf32> to vector<16x128xf32>
    %c0_106 = arith.constant 0 : index
    %c0_107 = arith.constant 0 : index
    %519 = vector.load %arg15[%c0_106, %c0_107] : memref<128x128xf32, #tpu.memory_space<vmem>>, vector<128x128xf32>
    %cst_108 = arith.constant dense<0.000000e+00> : vector<16x128xf32>
    %520 = tpu.matmul %518, %519, %cst_108 {dimension_numbers = #tpu.dot_dimension_numbers<[1], [0], [0], [1], [0, 0, 1, 1], [], []>} : vector<16x128xf32>, vector<128x128xf32>, vector<16x128xf32> -> vector<16x128xf32>
    %c0_109 = arith.constant 0 : index
    %c0_110 = arith.constant 0 : index
    %521 = vector.load %arg16[%c0_109, %c0_110] : memref<1x128xf32, #tpu.memory_space<vmem>>, vector<1x128xf32>
    %522 = vector.broadcast %521 : vector<1x128xf32> to vector<16x128xf32>
    %523 = arith.addf %520, %522 : vector<16x128xf32>
    %cst_111 = arith.constant 0.000000e+00 : f32
    %524 = vector.broadcast %cst_111 : f32 to vector<16x128xf32>
    %525 = arith.cmpf ogt, %523, %524 : vector<16x128xf32>
    %cst_112 = arith.constant 1.000000e-01 : f32
    %526 = vector.broadcast %cst_112 : f32 to vector<16x128xf32>
    %527 = arith.mulf %526, %523 : vector<16x128xf32>
    %528 = arith.select %525, %523, %527 : vector<16x128xi1>, vector<16x128xf32>
    %c0_113 = arith.constant 0 : index
    %c0_114 = arith.constant 0 : index
    %529 = vector.load %arg17[%c0_113, %c0_114] : memref<128x6xf32, #tpu.memory_space<vmem>>, vector<128x6xf32>
    %cst_115 = arith.constant dense<0.000000e+00> : vector<16x6xf32>
    %530 = tpu.matmul %528, %529, %cst_115 {dimension_numbers = #tpu.dot_dimension_numbers<[1], [0], [0], [1], [0, 0, 1, 1], [], []>} : vector<16x128xf32>, vector<128x6xf32>, vector<16x6xf32> -> vector<16x6xf32>
    %c0_116 = arith.constant 0 : index
    %c0_117 = arith.constant 0 : index
    %531 = vector.load %arg18[%c0_116, %c0_117] : memref<1x6xf32, #tpu.memory_space<vmem>>, vector<1x6xf32>
    %532 = vector.broadcast %531 : vector<1x6xf32> to vector<16x6xf32>
    %533 = arith.addf %530, %532 : vector<16x6xf32>
    %534 = vector.shape_cast %533 : vector<16x6xf32> to vector<2x8x6xf32>
    %c0_118 = arith.constant 0 : index
    %c0_119 = arith.constant 0 : index
    %c0_120 = arith.constant 0 : index
    %535 = vector.load %arg19[%c0_118, %c0_119, %c0_120] : memref<2x8x6xf32, #tpu.memory_space<vmem>>, vector<2x8x6xf32>
    tpu.vector_store %arg19[%c0_118, %c0_119, %c0_120], %534 {strides = array<i32>} : memref<2x8x6xf32, #tpu.memory_space<vmem>>, vector<2x8x6xf32>,
    %536 = vector.extract_strided_slice %478 {offsets = [0, 0], sizes = [2, 32], strides = [1, 1]} : vector<2x128xf32> to vector<2x32xf32>
    %537 = vector.extract_strided_slice %508 {offsets = [0, 0], sizes = [2, 32], strides = [1, 1]} : vector<2x128xf32> to vector<2x32xf32>
    %538 = vector.shape_cast %536 : vector<2x32xf32> to vector<2x1x32xf32>
    %539 = vector.shape_cast %537 : vector<2x32xf32> to vector<2x1x32xf32>
    %540 = tpu.concatenate %538, %539 in 1 : vector<2x1x32xf32>, vector<2x1x32xf32> -> vector<2x2x32xf32>
    %c0_121 = arith.constant 0 : index
    %c0_122 = arith.constant 0 : index
    %c0_123 = arith.constant 0 : index
    %541 = vector.load %arg20[%c0_121, %c0_122, %c0_123] : memref<2x2x32xf32, #tpu.memory_space<vmem>>, vector<2x2x32xf32>
    tpu.vector_store %arg20[%c0_121, %c0_122, %c0_123], %540 {strides = array<i32>} : memref<2x2x32xf32, #tpu.memory_space<vmem>>, vector<2x2x32xf32>,
    %542 = vector.extract_strided_slice %476 {offsets = [0, 0], sizes = [2, 32], strides = [1, 1]} : vector<2x128xf32> to vector<2x32xf32>
    %543 = vector.extract_strided_slice %506 {offsets = [0, 0], sizes = [2, 32], strides = [1, 1]} : vector<2x128xf32> to vector<2x32xf32>
    %544 = vector.shape_cast %542 : vector<2x32xf32> to vector<2x1x32xf32>
    %545 = vector.shape_cast %543 : vector<2x32xf32> to vector<2x1x32xf32>
    %546 = tpu.concatenate %544, %545 in 1 : vector<2x1x32xf32>, vector<2x1x32xf32> -> vector<2x2x32xf32>
    %c0_124 = arith.constant 0 : index
    %c0_125 = arith.constant 0 : index
    %c0_126 = arith.constant 0 : index
    %547 = vector.load %arg21[%c0_124, %c0_125, %c0_126] : memref<2x2x32xf32, #tpu.memory_space<vmem>>, vector<2x2x32xf32>
    tpu.vector_store %arg21[%c0_124, %c0_125, %c0_126], %546 {strides = array<i32>} : memref<2x2x32xf32, #tpu.memory_space<vmem>>, vector<2x2x32xf32>,
    return
  }
  func.func @transform_0(%arg0: i32) -> (i32, i32, i32) {
    %c0_i32 = arith.constant 0 : i32
    %c0_i32_0 = arith.constant 0 : i32
    %c0_i32_1 = arith.constant 0 : i32
    return %arg0, %c0_i32, %c0_i32_0 : i32, i32, i32
  }
  func.func @transform_1(%arg0: i32) -> (i32, i32, i32) {
    %c0_i32 = arith.constant 0 : i32
    %c0_i32_0 = arith.constant 0 : i32
    %c0_i32_1 = arith.constant 0 : i32
    return %arg0, %c0_i32, %c0_i32_0 : i32, i32, i32
  }
  func.func @transform_2(%arg0: i32) -> (i32, i32, i32) {
    %c0_i32 = arith.constant 0 : i32
    %c0_i32_0 = arith.constant 0 : i32
    %c0_i32_1 = arith.constant 0 : i32
    return %arg0, %c0_i32, %c0_i32_0 : i32, i32, i32
  }
  func.func @transform_3(%arg0: i32) -> (i32, i32, i32) {
    %c0_i32 = arith.constant 0 : i32
    %c0_i32_0 = arith.constant 0 : i32
    %c0_i32_1 = arith.constant 0 : i32
    return %arg0, %c0_i32, %c0_i32_0 : i32, i32, i32
  }
  func.func @transform_4(%arg0: i32) -> (i32, i32, i32) {
    %c0_i32 = arith.constant 0 : i32
    %c0_i32_0 = arith.constant 0 : i32
    %c0_i32_1 = arith.constant 0 : i32
    return %arg0, %c0_i32, %c0_i32_0 : i32, i32, i32
  }
  func.func @transform_5(%arg0: i32) -> (i32, i32) {
    %c0_i32 = arith.constant 0 : i32
    %c0_i32_0 = arith.constant 0 : i32
    %c0_i32_1 = arith.constant 0 : i32
    return %c0_i32, %c0_i32_0 : i32, i32
  }
  func.func @transform_6(%arg0: i32) -> (i32, i32) {
    %c0_i32 = arith.constant 0 : i32
    %c0_i32_0 = arith.constant 0 : i32
    %c0_i32_1 = arith.constant 0 : i32
    return %c0_i32, %c0_i32_0 : i32, i32
  }
  func.func @transform_7(%arg0: i32) -> (i32, i32) {
    %c0_i32 = arith.constant 0 : i32
    %c0_i32_0 = arith.constant 0 : i32
    %c0_i32_1 = arith.constant 0 : i32
    return %c0_i32, %c0_i32_0 : i32, i32
  }
  func.func @transform_8(%arg0: i32) -> (i32, i32) {
    %c0_i32 = arith.constant 0 : i32
    %c0_i32_0 = arith.constant 0 : i32
    %c0_i32_1 = arith.constant 0 : i32
    return %c0_i32, %c0_i32_0 : i32, i32
  }
  func.func @transform_9(%arg0: i32) -> (i32, i32) {
    %c0_i32 = arith.constant 0 : i32
    %c0_i32_0 = arith.constant 0 : i32
    %c0_i32_1 = arith.constant 0 : i32
    return %c0_i32, %c0_i32_0 : i32, i32
  }
  func.func @transform_10(%arg0: i32) -> (i32, i32) {
    %c0_i32 = arith.constant 0 : i32
    %c0_i32_0 = arith.constant 0 : i32
    %c0_i32_1 = arith.constant 0 : i32
    return %c0_i32, %c0_i32_0 : i32, i32
  }
  func.func @transform_11(%arg0: i32) -> (i32, i32) {
    %c0_i32 = arith.constant 0 : i32
    %c0_i32_0 = arith.constant 0 : i32
    %c0_i32_1 = arith.constant 0 : i32
    return %c0_i32, %c0_i32_0 : i32, i32
  }
  func.func @transform_12(%arg0: i32) -> (i32, i32) {
    %c0_i32 = arith.constant 0 : i32
    %c0_i32_0 = arith.constant 0 : i32
    %c0_i32_1 = arith.constant 0 : i32
    return %c0_i32, %c0_i32_0 : i32, i32
  }
  func.func @transform_13(%arg0: i32) -> (i32, i32) {
    %c0_i32 = arith.constant 0 : i32
    %c0_i32_0 = arith.constant 0 : i32
    %c0_i32_1 = arith.constant 0 : i32
    return %c0_i32, %c0_i32_0 : i32, i32
  }
  func.func @transform_14(%arg0: i32) -> (i32, i32) {
    %c0_i32 = arith.constant 0 : i32
    %c0_i32_0 = arith.constant 0 : i32
    %c0_i32_1 = arith.constant 0 : i32
    return %c0_i32, %c0_i32_0 : i32, i32
  }
  func.func @transform_15(%arg0: i32) -> (i32, i32) {
    %c0_i32 = arith.constant 0 : i32
    %c0_i32_0 = arith.constant 0 : i32
    %c0_i32_1 = arith.constant 0 : i32
    return %c0_i32, %c0_i32_0 : i32, i32
  }
  func.func @transform_16(%arg0: i32) -> (i32, i32) {
    %c0_i32 = arith.constant 0 : i32
    %c0_i32_0 = arith.constant 0 : i32
    %c0_i32_1 = arith.constant 0 : i32
    return %c0_i32, %c0_i32_0 : i32, i32
  }
  func.func @transform_17(%arg0: i32) -> (i32, i32) {
    %c0_i32 = arith.constant 0 : i32
    %c0_i32_0 = arith.constant 0 : i32
    %c0_i32_1 = arith.constant 0 : i32
    return %c0_i32, %c0_i32_0 : i32, i32
  }
  func.func @transform_18(%arg0: i32) -> (i32, i32, i32) {
    %c0_i32 = arith.constant 0 : i32
    %c0_i32_0 = arith.constant 0 : i32
    %c0_i32_1 = arith.constant 0 : i32
    return %arg0, %c0_i32, %c0_i32_0 : i32, i32, i32
  }
  func.func @transform_19(%arg0: i32) -> (i32, i32, i32) {
    %c0_i32 = arith.constant 0 : i32
    %c0_i32_0 = arith.constant 0 : i32
    %c0_i32_1 = arith.constant 0 : i32
    return %arg0, %c0_i32, %c0_i32_0 : i32, i32, i32
  }
  func.func @transform_20(%arg0: i32) -> (i32, i32, i32) {
    %c0_i32 = arith.constant 0 : i32
    %c0_i32_0 = arith.constant 0 : i32
    %c0_i32_1 = arith.constant 0 : i32
    return %arg0, %c0_i32, %c0_i32_0 : i32, i32, i32
  }
}

</mosaic_0001>

<bundles_post_ra>
// kernel: tpu_custom_call.1
= control target key start
LH: loop header
LB: loop body
LE: loop exit
PB: predicated region body
PF: predicated region fallthrough
CT: control target
= control target key end

     0   :  { %s9875_s0 = inlined_call_operand.vmem [shape: f32[2,8,24], index: 0, kind: input, shape index: {}]   ;;  %s9876_s1 = inlined_call_operand.vmem [shape: f32[2,8,24], index: 1, kind: input, shape index: {}]   ;;  %s9877_s2 = inlined_call_operand.hbm [shape: f32[2,8,8], index: 2, kind: input, shape index: {}]   ;;  %s9878_s3 = inlined_call_operand.vmem [shape: f32[2,8,1], index: 3, kind: input, shape index: {}]   ;;  %s9879_s4 = inlined_call_operand.vmem [shape: f32[2,8,2], index: 4, kind: input, shape index: {}]   ;;  %s9880_s5 = inlined_call_operand.vmem [shape: f32[32,32], index: 5, kind: input, shape index: {}]   ;;  %s9881_s6 = inlined_call_operand.hbm [shape: f32[1,32], index: 6, kind: input, shape index: {}]   ;;  %s9882_s7 = inlined_call_operand.vmem [shape: f32[32,512], index: 7, kind: input, shape index: {}]   ;;  %s9883_s8 = inlined_call_operand.vmem [shape: f32[1,512], index: 8, kind: input, shape index: {}]   ;;  %s9884_s9 = inlined_call_operand.vmem [shape: f32[1,512], index: 9, kind: input, shape index: {}]   ;;  %s9885_s10 = inlined_call_operand.hbm [shape: f32[128,512], index: 10, kind: input, shape index: {}]   ;;  %s9886_s11 = inlined_call_operand.hbm [shape: f32[128,512], index: 11, kind: input, shape index: {}]   ;;  %s9887_s12 = inlined_call_operand.hbm [shape: f32[128,512], index: 12, kind: input, shape index: {}]   ;;  %s9888_s13 = inlined_call_operand.vmem [shape: f32[1,512], index: 13, kind: input, shape index: {}]   ;;  %s9889_s14 = inlined_call_operand.hbm [shape: f32[128,128], index: 14, kind: input, shape index: {}]   ;;  %s9890_s15 = inlined_call_operand.vmem [shape: f32[1,128], index: 15, kind: input, shape index: {}]   ;;  %s9891_s16 = inlined_call_operand.vmem [shape: f32[128,6], index: 16, kind: input, shape index: {}]   ;;  %s9892_s17 = inlined_call_operand.vmem [shape: f32[1,6], index: 17, kind: input, shape index: {}]   ;;  %s9893_s18 = inlined_call_operand.vmem [shape: f32[2,8,6], index: 18, kind: output, shape index: {0}]   ;;  %s9894_s19 = inlined_call_operand.hbm [shape: f32[2,2,32], index: 19, kind: output, shape index: {1}]   ;;  %s9895_s20 = inlined_call_operand.hbm [shape: f32[2,2,32], index: 20, kind: output, shape index: {2}]  }
   0x1   :  { %10148 = sst [smem:[#allocation133_spill]] %s9875_s0 }
   0x2   :  { %10149 = sst [smem:[#allocation134_spill]] %s9876_s1 }
   0x3   :  { %10150 = sst [smem:[#allocation135_spill]] %s9877_s2 }
   0x4   :  { %10151 = sst [smem:[#allocation136_spill]] %s9878_s3 }
   0x5   :  { %10152 = sst [smem:[#allocation137_spill]] %s9879_s4 }
   0x6   :  { %26 = vsyncpa [#allocation3], 0 }
   0x7   :  { %27 = vsyncpa [#allocation6], 0 }
   0x8   :  { %28 = vsyncpa [#allocation9], 0 }
   0x9   :  { %29 = vsyncpa [#allocation12], 0 }
   0xa   :  { %30 = vsyncpa [#allocation4], 0 }
   0xb   :  { %31 = vsyncpa [#allocation15], 0  ;;  %s8094_s1 = smov [#allocation5]   ;;  %s7906_s2 = scalar_lea.hbm %s9881_s6, 16 }
   0xc   :  { %s60_s22 = sshll.u32 %s8094_s1, 4  ;;  %p7907_p0 = scmp.ne.s32.totalorder %s9881_s6, %s7906_s2  ;;  %s61_s22 = int_to_ptr.vmem [resolvable:$true] %s60_s22 }
   0xd   :  { %p7910_p1 = scmp.lt.u32.totalorder %s7906_s2, %s9881_s6 }
   0xf   :  { %p7912_p2 = pnand %p7910_p1, %p7907_p0 }
  0x11   :  { %7915 = shalt.err (!%p7912_p2)
}
  0x12   :  { %s7916_s28 = scalar_lea.vmem %s61_s22, 16  ;;  %s7920_s4 = scalar_lea.vmem %s61_s22, 32 }
  0x13   :  { %p7917_p3 = scmp.ne.s32.totalorder %s61_s22, %s7916_s28  ;;  %p7921_p4 = scmp.lt.s32.totalorder %s61_s22, %s61_s22 }
  0x14   :  { %p7922_p5 = scmp.lt.s32.totalorder %s7920_s4, %s7916_s28 }
  0x16   :  { %p7923_p6 = por %p7922_p5, %p7921_p4 }
  0x18   :  { %p7924_p7 = pnand %p7923_p6, %p7917_p3 }
  0x1a   :  { %7927 = shalt.err (!%p7924_p7)
}
  0x1b   :  { %63 = dma.hbm_to_vmem [thread:$0]  %s9881_s6, 16, %s61_s22, [#allocation6]  }
  0x1c   :  { %s8095_s0 = smov [#allocation8]   ;;  %s8096_s1 = smov [#allocation2]  }
  0x1d   :  { %s87_s21 = sshll.u32 %s8095_s0, 4  ;;  %s41_s23 = sshll.u32 %s8096_s1, 4  ;;  %s88_s21 = int_to_ptr.vmem [resolvable:$true] %s87_s21  ;;  %s42_s23 = int_to_ptr.vmem [resolvable:$true] %s41_s23 }
  0x1e   :  { %s7928_s25 = scalar_lea.hbm %s9886_s11, 8192 }
  0x1f   :  { %p7929_p8 = scmp.ne.s32.totalorder %s9886_s11, %s7928_s25  ;;  %p7932_p9 = scmp.lt.u32.totalorder %s7928_s25, %s9886_s11 }
  0x21   :  { %p7934_p10 = pnand %p7932_p9, %p7929_p8 }
  0x23   :  { %7937 = shalt.err (!%p7934_p10)
}
  0x24   :  { %s7938_s6 = scalar_lea.vmem %s88_s21, 8192  ;;  %p7943_p12 = scmp.lt.s32.totalorder %s88_s21, %s88_s21 }
  0x25   :  { %p7939_p11 = scmp.ne.s32.totalorder %s88_s21, %s7938_s6  ;;  %p7944_p13 = scmp.lt.s32.totalorder %s7938_s6, %s7938_s6 }
  0x27   :  { %p7945_p0 = por %p7944_p13, %p7943_p12 }
  0x29   :  { %p7946_p1 = pnand %p7945_p0, %p7939_p11 }
  0x2b   :  { %7949 = shalt.err (!%p7946_p1)
}
  0x2c   :  { %s9901_s22 = smov 512   ;;  %s9903_s4 = smov 32  }
  0x2d   :  { %93 = dma.hbm_to_vmem [thread:$0]  %s9886_s11, 8192, %s88_s21, [#allocation9], %s9901_s22, %s9901_s22, %s9903_s4  }
  0x2e   :  { %s10153_s24 = sld [smem:[#allocation135_spill]] }
  0x34   :  { %s7950_s2 = scalar_lea.hbm %s10153_s24, 256 }
  0x35   :  { %p7951_p2 = scmp.ne.s32.totalorder %s10153_s24, %s7950_s2  ;;  %p7954_p3 = scmp.lt.u32.totalorder %s7950_s2, %s10153_s24 }
  0x37   :  { %p7956_p4 = pnand %p7954_p3, %p7951_p2 }
  0x39   :  { %7959 = shalt.err (!%p7956_p4)
}
  0x3a   :  { %s7960_s28 = scalar_lea.vmem %s42_s23, 256  ;;  %p7965_p6 = scmp.lt.s32.totalorder %s42_s23, %s42_s23 }
  0x3b   :  { %p7961_p5 = scmp.ne.s32.totalorder %s42_s23, %s7960_s28  ;;  %p7966_p7 = scmp.lt.s32.totalorder %s7960_s28, %s7960_s28 }
  0x3d   :  { %p7967_p8 = por %p7966_p7, %p7965_p6 }
  0x3f   :  { %p7968_p9 = pnand %p7967_p8, %p7961_p5 }
  0x41   :  { %7971 = shalt.err (!%p7968_p9)
}
  0x42   :  { %s8099_s11 = smov 128   ;;  %s8100_s21 = smov 8  }
  0x43   :  { %47 = dma.hbm_to_vmem [thread:$0]  %s10153_s24, 256, %s42_s23, [#allocation3], %s8099_s11, %s8099_s11, %s8100_s21  }
  0x44   :  { %s8101_s30 = smov [#allocation7]   ;;  %s8102_s1 = smov [#allocation10]  }
  0x45   :  { %s75_s0 = sshll.u32 %s8101_s30, 4  ;;  %s99_s2 = sshll.u32 %s8102_s1, 4  ;;  %s76_s0 = int_to_ptr.vmem [resolvable:$true] %s75_s0  ;;  %s100_s2 = int_to_ptr.vmem [resolvable:$true] %s99_s2 }
  0x46   :  { %s7972_s26 = scalar_lea.hbm %s9885_s10, 8192 }
  0x47   :  { %p7973_p10 = scmp.ne.s32.totalorder %s9885_s10, %s7972_s26  ;;  %p7976_p11 = scmp.lt.u32.totalorder %s7972_s26, %s9885_s10 }
  0x49   :  { %p7978_p12 = pnand %p7976_p11, %p7973_p10 }
  0x4b   :  { %7981 = shalt.err (!%p7978_p12)
}
  0x4c   :  { %s7982_s23 = scalar_lea.vmem %s76_s0, 8192  ;;  %p7987_p0 = scmp.lt.s32.totalorder %s76_s0, %s76_s0 }
  0x4d   :  { %p7983_p13 = scmp.ne.s32.totalorder %s76_s0, %s7982_s23  ;;  %p7988_p1 = scmp.lt.s32.totalorder %s7982_s23, %s7982_s23 }
  0x4f   :  { %p7989_p2 = por %p7988_p1, %p7987_p0 }
  0x51   :  { %p7990_p3 = pnand %p7989_p2, %p7983_p13 }
  0x53   :  { %7993 = shalt.err (!%p7990_p3)
}
  0x54   :  { %s10154_s24 = smov 32   ;;  %s10155_s6 = smov 512  }
  0x55   :  { %81 = dma.hbm_to_vmem [thread:$0]  %s9885_s10, 8192, %s76_s0, [#allocation6], %s10155_s6, %s10155_s6, %s10154_s24  }
  0x56   :  { %s7994_s4 = scalar_lea.hbm %s9887_s12, 8192 }
  0x57   :  { %p7995_p4 = scmp.ne.s32.totalorder %s9887_s12, %s7994_s4  ;;  %p7998_p5 = scmp.lt.u32.totalorder %s7994_s4, %s9887_s12 }
  0x59   :  { %p8000_p6 = pnand %p7998_p5, %p7995_p4 }
  0x5b   :  { %8003 = shalt.err (!%p8000_p6)
}
  0x5c   :  { %s8004_s28 = scalar_lea.vmem %s100_s2, 8192  ;;  %p8009_p8 = scmp.lt.s32.totalorder %s100_s2, %s100_s2 }
  0x5d   :  { %p8005_p7 = scmp.ne.s32.totalorder %s100_s2, %s8004_s28  ;;  %p8010_p9 = scmp.lt.s32.totalorder %s8004_s28, %s8004_s28 }
  0x5f   :  { %p8011_p10 = por %p8010_p9, %p8009_p8 }
  0x61   :  { %p8012_p11 = pnand %p8011_p10, %p8005_p7 }
  0x63   :  { %8015 = shalt.err (!%p8012_p11)
}
  0x64   :  { %105 = dma.hbm_to_vmem [thread:$0]  %s9887_s12, 8192, %s100_s2, [#allocation9], %s10155_s6, %s10155_s6, %s10154_s24  }
  0x65   :  { %s8103_s23 = smov [#allocation11]   ;;  %s8016_s22 = scalar_lea.hbm %s9889_s14, 2048 }
  0x66   :  { %s113_s29 = sshll.u32 %s8103_s23, 4  ;;  %p8017_p12 = scmp.ne.s32.totalorder %s9889_s14, %s8016_s22  ;;  %s114_s29 = int_to_ptr.vmem [resolvable:$true] %s113_s29 }
  0x67   :  { %p8020_p13 = scmp.lt.u32.totalorder %s8016_s22, %s9889_s14 }
  0x69   :  { %p8022_p0 = pnand %p8020_p13, %p8017_p12 }
  0x6b   :  { %8025 = shalt.err (!%p8022_p0)
}
  0x6c   :  { %s8026_s27 = scalar_lea.vmem %s114_s29, 2048  ;;  %p8031_p2 = scmp.lt.s32.totalorder %s114_s29, %s114_s29 }
  0x6d   :  { %p8027_p1 = scmp.ne.s32.totalorder %s114_s29, %s8026_s27  ;;  %p8032_p3 = scmp.lt.s32.totalorder %s8026_s27, %s8026_s27 }
  0x6f   :  { %p8033_p4 = por %p8032_p3, %p8031_p2 }
  0x71   :  { %p8034_p5 = pnand %p8033_p4, %p8027_p1 }
  0x73   :  { %8037 = shalt.err (!%p8034_p5)
}
  0x74   :  { %119 = dma.hbm_to_vmem [thread:$0]  %s9889_s14, 2048, %s114_s29, [#allocation12], %s8099_s11, %s8099_s11, %s8100_s21  }
  0x75   :  { %8082 = dma.done.wait [#allocation3], 256  }
  0x76   :  { %8083 = vsyncadd [#allocation3], 4294967040 }
  0x77   :  { %8084 = dma.done.wait [#allocation6], 8208  }
  0x78   :  { %8085 = vsyncadd [#allocation6], 4294959088 }
  0x79   :  { %8086 = dma.done.wait [#allocation9], 16384  }
  0x7a   :  { %8087 = vsyncadd [#allocation9], 4294950912 }
  0x7b   :  { %8088 = dma.done.wait [#allocation12], 2048  }
  0x7c   :  { %8089 = vsyncadd [#allocation12], 4294965248  ;;  %v8104_v0 = vmov 0   ;;  %s10156_s10 = sld [smem:[#allocation137_spill]]  ;;  %v187_v3 = vld [vmem:[%s9880_s5] sm:$0xff]  ;;  %v188_v4 = vld [vmem:[%s9880_s5 + $0x8] sm:$0xff] }
  0x7d   :  { %7518 = vset.pattern.permute.xlu1 %v8104_v0  ;;  %7516 = vset.pattern.permute.xlu0 %v8104_v0  ;;  %v5842_v5 = vpack.c.bf16 %v188_v4, %v187_v3  ;;  %v8105_v6 = vmov 1   ;;  %v189_v7 = vld [vmem:[%s9880_s5 + $0x10] sm:$0xff]  ;;  %v190_v8 = vld [vmem:[%s9880_s5 + $0x18] sm:$0xff]  ;;  %v174_v9 = vld [vmem:[#allocation2] sm:$0xff]  ;;  %s8106_s25 = smov 24   ;;  %s10157_s29 = sld [smem:[#allocation133_spill]] }
  0x7e   :  { %v175_v10 = vld [vmem:[#allocation2 + $0x8] sm:$0xff]  ;;  %v5846_v11 = vpack.c.bf16 %v190_v8, %v189_v7  ;;  %v287_v14 = vld [vmem:[%s9882_s7 + $0x18] sm:$0xff]  ;;  %v284_v17 = vld [vmem:[%s9882_s7] sm:$0xff]  ;;  %vm184_vm0 = vcmask 195584   ;;  %vm198_vm1 = vcmask 261120   ;;  %v9905_v60 = vmov 0.0  }
  0x7f   :  { %5843 = vmatprep.subr.bf16.mxu0 %v5842_v5  ;;  %v285_v12 = vld [vmem:[%s9882_s7 + $0x8] sm:$0xff]  ;;  %v291_v16 = vld [vmem:[%s9882_s7 + $0x38] sm:$0xff]  ;;  %v288_v18 = vld [vmem:[%s9882_s7 + $0x20] sm:$0xff]  ;;  %410 = vmatprep.mubr.f32.mxu1 %v9905_v60  ;;  %s10161_s12 = sld [smem:[#allocation136_spill]]  ;;  %vm1082_vm2 = vcmask 1041409   ;;  %vm5321_vm3 = vcmask 1040384  }
  0x80   :  { %5845 = vmatpush3.bf16.msra.mxu0 %v5842_v5  ;;  %v289_v13 = vld [vmem:[%s9882_s7 + $0x28] sm:$0xff]  ;;  %v5858_v19 = vpack.c.bf16 %v291_v16, %v287_v14  ;;  %v5852_v20 = vpack.c.bf16 %v288_v18, %v284_v17  ;;  %v286_v33 = vld [vmem:[%s9882_s7 + $0x10] sm:$0xff]  ;;  %v295_v44 = vld [vmem:[%s9882_s7 + $0x58] sm:$0xff]  ;;  %vm5324_vm4 = vcmask 1041408   ;;  %vm5327_vm5 = vcmask 1042432   ;;  %s8110_s3 = smov [#allocation14]  }
  0x81   :  { %5847 = vmatprep.subr.bf16.mxu0 %v5846_v11  ;;  %v5850_v15 = vpack.c.bf16 %v289_v13, %v285_v12  ;;  %v290_v34 = vld [vmem:[%s9882_s7 + $0x30] sm:$0xff]  ;;  %v293_v42 = vld [vmem:[%s9882_s7 + $0x48] sm:$0xff]  ;;  %v299_v46 = vld [vmem:[%s9882_s7 + $0x78] sm:$0xff]  ;;  %vm5330_vm6 = vcmask 1043456   ;;  %vm5333_vm7 = vcmask 1044480   ;;  %vm5336_vm8 = vcmask 1045504  }
  0x82   :  { %v149_v1 = vld [vmem:[%s10156_s10 + $0x8] sm:$0xff]  ;;  %v148_v2 = vld [vmem:[%s10156_s10] sm:$0xff]  ;;  %v5860_v39 = vpack.c.bf16 %v290_v34, %v286_v33  ;;  %v5862_v49 = vpack.c.bf16 %v299_v46, %v295_v44  ;;  %v294_v51 = vld [vmem:[%s9882_s7 + $0x50] sm:$0xff]  ;;  %vm5552_vm9 = vcmask 254976   ;;  %vm5339_vm10 = vcmask 1046528   ;;  %s5617_s26 = sshll.u32 %s8110_s3, 4  ;;  %s5618_s26 = int_to_ptr.vmem [resolvable:$true] %s5617_s26 }
  0x83   :  { %157 = vperm.xlu1 %7518, %v149_v1   ;;  %152 = vperm.xlu0 %7516, %v148_v2   ;;  %v145_v23 = vld [vmem:[%s10157_s29 + $0x8] sm:$0xff]  ;;  %v144_v24 = vld [vmem:[%s10157_s29] sm:$0xff]  ;;  %v298_v52 = vld [vmem:[%s9882_s7 + $0x70] sm:$0xff] }
  0x84   :  { %5849 = vmatpush3.bf16.msra.mxu0 %v5846_v11  ;;  %5851 = vmatprep.subr.bf16.mxu1 %v5850_v15  ;;  %v297_v43 = vld [vmem:[%s9882_s7 + $0x68] sm:$0xff]  ;;  %v292_v47 = vld [vmem:[%s9882_s7 + $0x40] sm:$0xff]  ;;  %v5864_v53 = vpack.c.bf16 %v298_v52, %v294_v51  ;;  %v5638_v63 = vld [vmem:[#allocation5] ss:$0 sm:$0xff] }
  0x85   :  { %5859 = vmatprep.subr.bf16.mxu0 %v5858_v19  ;;  %5853 = vmatpush1.bf16.msra.mxu1 %v5852_v20  ;;  %v5854_v45 = vpack.c.bf16 %v297_v43, %v293_v42  ;;  %v296_v48 = vld [vmem:[%s9882_s7 + $0x60] sm:$0xff]  ;;  %v533_v56 = vld [vmem:[#allocation7 + $0x18] sm:$0xff]  ;;  %v538_v13 = vld [vmem:[#allocation7 + $0x40] sm:$0xff] }
  0x86   :  { %v5856_v50 = vpack.c.bf16 %v296_v48, %v292_v47  ;;  %v531_v54 = vld [vmem:[#allocation7 + $0x8] sm:$0xff]  ;;  %v537_v58 = vld [vmem:[#allocation7 + $0x38] sm:$0xff]  ;;  %v532_v3 = vld [vmem:[#allocation7 + $0x10] sm:$0xff] }
  0x87   :  { %7519 = vset.pattern.permute.xlu1 %v8105_v6  ;;  %7517 = vset.pattern.permute.xlu0 %v8105_v6  ;;  %v535_v55 = vld [vmem:[#allocation7 + $0x28] sm:$0xff]  ;;  %v8389_v59 = vpack.c.bf16 %v537_v58, %v533_v56  ;;  %v283_v62 = vld [vmem:[%s10161_s12 + $0x8] sm:$0xff]  ;;  %v542_v14 = vld [vmem:[#allocation7 + $0x60] sm:$0xff] }
  0x88   :  { %167 = vperm.xlu1 %7519, %v149_v1   ;;  %163 = vperm.xlu0 %7517, %v148_v2   ;;  %v8387_v57 = vpack.c.bf16 %v535_v55, %v531_v54  ;;  %v282_v61 = vld [vmem:[%s10161_s12] sm:$0xff]  ;;  %v534_v2 = vld [vmem:[#allocation7 + $0x20] sm:$0xff]  ;;  %v565_v48 = vld [vmem:[#allocation7 + $0x118] sm:$0xff] }
  0x89   :  { %5855 = vmatprep.subr.bf16.mxu1 %v5854_v45  ;;  %10160 = vst [vmem:[#allocation23_spill] sm:$0xff] %v8389_v59  ;;  %v536_v4 = vld [vmem:[#allocation7 + $0x30] sm:$0xff]  ;;  %v539_v6 = vld [vmem:[#allocation7 + $0x48] sm:$0xff]  ;;  %v562_v52 = vld [vmem:[#allocation7 + $0x100] sm:$0xff] }
  0x8a   :  { %5857 = vmatpush1.bf16.msra.mxu1 %v5856_v50  ;;  %10159 = vst [vmem:[#allocation22_spill] sm:$0xff] %v8387_v57  ;;  %v543_v8 = vld [vmem:[#allocation7 + $0x68] sm:$0xff]  ;;  %v8403_v12 = vpack.c.bf16 %v536_v4, %v532_v3  ;;  %v540_v17 = vld [vmem:[#allocation7 + $0x50] sm:$0xff]  ;;  %v570_v3 = vld [vmem:[#allocation7 + $0x140] sm:$0xff] }
  0x8b   :  { %5867 = vmatprep.subr.bf16.mxu1 %v8387_v57  ;;  %v544_v18 = vld [vmem:[#allocation7 + $0x70] sm:$0xff]  ;;  %v547_v19 = vld [vmem:[#allocation7 + $0x88] sm:$0xff]  ;;  %v8405_v20 = vpack.c.bf16 %v543_v8, %v539_v6  ;;  %v574_v4 = vld [vmem:[#allocation7 + $0x160] sm:$0xff] }
  0x8c   :  { %178 = vrot.lane.b32.xlu1 %v174_v9, %s8106_s25  ;;  %180 = vrot.lane.b32.xlu0 %v175_v10, %s8106_s25  ;;  %s10158_s25 = sld [smem:[#allocation134_spill]]  ;;  %v541_v9 = vld [vmem:[#allocation7 + $0x58] sm:$0xff]  ;;  %10163 = vst [vmem:[#allocation25_spill] sm:$0xff] %v8403_v12  ;;  %v552_v33 = vld [vmem:[#allocation7 + $0xb0] sm:$0xff]  ;;  %v555_v34 = vld [vmem:[#allocation7 + $0xc8] sm:$0xff] }
  0x8d   :  { %7521 = vset.pattern.permute.xlu0 %v8104_v0  ;;  %7520 = vset.pattern.permute.xlu1 %v8104_v0  ;;  %v530_v0 = vld [vmem:[#allocation7] sm:$0xff]  ;;  %v545_v10 = vld [vmem:[#allocation7 + $0x78] sm:$0xff]  ;;  %10164 = vst [vmem:[#allocation26_spill] sm:$0xff] %v8405_v20  ;;  %v556_v44 = vld [vmem:[#allocation7 + $0xd0] sm:$0xff] }
  0x8e   :  { %v8401_v11 = vpack.c.bf16 %v534_v2, %v530_v0  ;;  %v560_v45 = vld [vmem:[#allocation7 + $0xf0] sm:$0xff]  ;;  %v563_v46 = vld [vmem:[#allocation7 + $0x108] sm:$0xff]  ;;  %v577_v0 = vld [vmem:[#allocation7 + $0x178] sm:$0xff] }
  0x8f   :  { %v567_v47 = vld [vmem:[#allocation7 + $0x128] sm:$0xff]  ;;  %v8446_v51 = vpack.c.bf16 %v560_v45, %v556_v44  ;;  %v564_v56 = vld [vmem:[#allocation7 + $0x110] sm:$0xff] }
  0x90   :  { %303 = vperm.xlu0 %7521, %v282_v61   ;;  %308 = vperm.xlu1 %7520, %v283_v62   ;;  %10162 = vst [vmem:[#allocation24_spill] sm:$0xff] %v8401_v11  ;;  %v8450_v54 = vpack.c.bf16 %v567_v47, %v563_v46  ;;  %v568_v58 = vld [vmem:[#allocation7 + $0x130] sm:$0xff]  ;;  %v571_v61 = vld [vmem:[#allocation7 + $0x148] sm:$0xff] }
  0x91   :  { %10175 = vst [vmem:[#allocation37_spill] sm:$0xff] %v8446_v51  ;;  %v575_v62 = vld [vmem:[#allocation7 + $0x168] sm:$0xff]  ;;  %v8458_v2 = vpack.c.bf16 %v568_v58, %v564_v56  ;;  %v576_v8 = vld [vmem:[#allocation7 + $0x170] sm:$0xff]  ;;  %v658_v56 = vld [vmem:[#allocation10] sm:$0xff] }
  0x92   :  { %v147_v25 = vld [vmem:[%s10158_s25 + $0x8] sm:$0xff]  ;;  %v146_v26 = vld [vmem:[%s10158_s25] sm:$0xff]  ;;  %10176 = vst [vmem:[#allocation38_spill] sm:$0xff] %v8450_v54  ;;  %v662_v58 = vld [vmem:[#allocation10 + $0x20] sm:$0xff] }
  0x93   :  { %10179 = vst [vmem:[#allocation41_spill] sm:$0xff] %v8458_v2  ;;  %v592_v44 = vld [vmem:[#allocation7 + $0x1f0] sm:$0xff]  ;;  %v659_v47 = vld [vmem:[#allocation10 + $0x8] sm:$0xff] }
 0x102   :  { %v158_v21 = vpop.permute.xlu1 %157  ;;  %v153_v22 = vpop.permute.xlu0 %152 }
 0x103   :  { %v161_v29 = vmul.f32 %v158_v21, %v145_v23  ;;  %v160_v30 = vmul.f32 %v153_v22, %v144_v24  ;;  %v8407_v21 = vpack.c.bf16 %v545_v10, %v541_v9  ;;  %v551_v22 = vld [vmem:[#allocation7 + $0xa8] sm:$0xff]  ;;  %v549_v23 = vld [vmem:[#allocation7 + $0x98] sm:$0xff] }
 0x104   :  { %v553_v24 = vld [vmem:[#allocation7 + $0xb8] sm:$0xff]  ;;  %v579_v9 = vld [vmem:[#allocation7 + $0x188] sm:$0xff] }
 0x105   :  { %10165 = vst [vmem:[#allocation27_spill] sm:$0xff] %v8407_v21  ;;  %v583_v10 = vld [vmem:[#allocation7 + $0x1a8] sm:$0xff] }
 0x107   :  { %v168_v27 = vpop.permute.xlu1 %167  ;;  %v164_v28 = vpop.permute.xlu0 %163 }
 0x108   :  { %v171_v31 = vmul.f32 %v168_v27, %v147_v25  ;;  %v170_v32 = vmul.f32 %v164_v28, %v146_v26  ;;  %v8413_v25 = vpack.c.bf16 %v542_v14, %v538_v13  ;;  %v8415_v26 = vpack.c.bf16 %v544_v18, %v540_v17  ;;  %v546_v27 = vld [vmem:[#allocation7 + $0x80] sm:$0xff]  ;;  %v581_v13 = vld [vmem:[#allocation7 + $0x198] sm:$0xff] }
 0x109   :  { %v550_v28 = vld [vmem:[#allocation7 + $0xa0] sm:$0xff]  ;;  %v585_v14 = vld [vmem:[#allocation7 + $0x1b8] sm:$0xff] }
 0x10a   :  { %v173_v35 = vadd.f32 %v171_v31, %v161_v29  ;;  %v172_v36 = vadd.f32 %v170_v32, %v160_v30  ;;  %10166 = vst [vmem:[#allocation28_spill] sm:$0xff] %v8413_v25  ;;  %10167 = vst [vmem:[#allocation29_spill] sm:$0xff] %v8415_v26  ;;  %v8420_v30 = vpack.c.bf16 %v551_v22, %v547_v19  ;;  %v548_v32 = vld [vmem:[#allocation7 + $0x90] sm:$0xff]  ;;  %v578_v17 = vld [vmem:[#allocation7 + $0x180] sm:$0xff] }
 0x10b   :  { %v179_v37 = vpop.permute.xlu1 %178  ;;  %v181_v38 = vpop.permute.xlu0 %180  ;;  %v8422_v31 = vpack.c.bf16 %v553_v24, %v549_v23  ;;  %v582_v18 = vld [vmem:[#allocation7 + $0x1a0] sm:$0xff]  ;;  %v8474_v19 = vpack.c.bf16 %v583_v10, %v579_v9  ;;  %v8476_v22 = vpack.c.bf16 %v585_v14, %v581_v13  ;;  %v580_v23 = vld [vmem:[#allocation7 + $0x190] sm:$0xff]  ;;  %v673_v9 = vld [vmem:[#allocation10 + $0x78] sm:$0xff] }
 0x10c   :  { %v8358_v40 = vsel %vm184_vm0, %v173_v35, %v181_v38  ;;  %v185_v41 = vsel %vm184_vm0, %v172_v36, %v179_v37  ;;  %10168 = vst [vmem:[#allocation30_spill] sm:$0xff] %v8420_v30  ;;  %v559_v35 = vld [vmem:[#allocation7 + $0xe8] sm:$0xff]  ;;  %v557_v36 = vld [vmem:[#allocation7 + $0xd8] sm:$0xff]  ;;  %v8430_v38 = vpack.c.bf16 %v550_v28, %v546_v27  ;;  %v584_v24 = vld [vmem:[#allocation7 + $0x1b0] sm:$0xff] }
 0x10d   :  { %5769 = vmatprep.mubr.msk.f32.mxu0 %vm198_vm1, %v185_v41  ;;  %10169 = vst [vmem:[#allocation31_spill] sm:$0xff] %v8422_v31  ;;  %v561_v37 = vld [vmem:[#allocation7 + $0xf8] sm:$0xff]  ;;  %v8436_v42 = vpack.c.bf16 %v559_v35, %v555_v34  ;;  %10184 = vst [vmem:[#allocation46_spill] sm:$0xff] %v8474_v19  ;;  %v587_v27 = vld [vmem:[#allocation7 + $0x1c8] sm:$0xff]  ;;  %v8482_v34 = vpack.c.bf16 %v584_v24, %v580_v23 }
 0x10e   :  { %5770 = vmatmul.mubr.msk.f32.vlgmr.msra.gmra.mrb[0].mxu0 %vm198_vm1, %v8358_v40  ;;  %10170 = vst [vmem:[#allocation32_spill] sm:$0xff] %v8430_v38  ;;  %v8438_v43 = vpack.c.bf16 %v561_v37, %v557_v36  ;;  %10185 = vst [vmem:[#allocation47_spill] sm:$0xff] %v8476_v22  ;;  %v591_v28 = vld [vmem:[#allocation7 + $0x1e8] sm:$0xff]  ;;  %v586_v35 = vld [vmem:[#allocation7 + $0x1c0] sm:$0xff] }
 0x10f   :  { %5861 = vmatpush1.bf16.msra.mxu0 %v5860_v39  ;;  %487 = vmatprep.mubr.f32.mxu0 %v9905_v60  ;;  %v8432_v39 = vpack.c.bf16 %v552_v33, %v548_v32  ;;  %10172 = vst [vmem:[#allocation34_spill] sm:$0xff] %v8436_v42  ;;  %v593_v32 = vld [vmem:[#allocation7 + $0x1f8] sm:$0xff]  ;;  %v8480_v33 = vpack.c.bf16 %v582_v18, %v578_v17  ;;  %10187 = vst [vmem:[#allocation49_spill] sm:$0xff] %v8482_v34  ;;  %v666_v14 = vld [vmem:[#allocation10 + $0x40] sm:$0xff] }
 0x110   :  { %5863 = vmatprep.subr.bf16.mxu0 %v5862_v49  ;;  %10173 = vst [vmem:[#allocation35_spill] sm:$0xff] %v8438_v43  ;;  %v569_v49 = vld [vmem:[#allocation7 + $0x138] sm:$0xff]  ;;  %v8486_v36 = vpack.c.bf16 %v591_v28, %v587_v27  ;;  %v670_v17 = vld [vmem:[#allocation10 + $0x60] sm:$0xff]  ;;  %v668_v18 = vld [vmem:[#allocation10 + $0x50] sm:$0xff] }
 0x111   :  { %10171 = vst [vmem:[#allocation33_spill] sm:$0xff] %v8432_v39  ;;  %v8452_v55 = vpack.c.bf16 %v569_v49, %v565_v48  ;;  %10186 = vst [vmem:[#allocation48_spill] sm:$0xff] %v8480_v33  ;;  %v663_v48 = vld [vmem:[#allocation10 + $0x28] sm:$0xff]  ;;  %v661_v49 = vld [vmem:[#allocation10 + $0x18] sm:$0xff]  ;;  %v8520_v23 = vpack.c.bf16 %v670_v17, %v666_v14 }
 0x112   :  { %10188 = vst [vmem:[#allocation50_spill] sm:$0xff] %v8486_v36  ;;  %v672_v24 = vld [vmem:[#allocation10 + $0x70] sm:$0xff]  ;;  %v675_v27 = vld [vmem:[#allocation10 + $0x88] sm:$0xff]  ;;  %v686_v14 = vld [vmem:[#allocation10 + $0xe0] sm:$0xff] }
 0x113   :  { %5865 = vmatpush1.bf16.msra.mxu0 %v5864_v53  ;;  %v566_v53 = vld [vmem:[#allocation7 + $0x120] sm:$0xff]  ;;  %10177 = vst [vmem:[#allocation39_spill] sm:$0xff] %v8452_v55  ;;  %10198 = vst [vmem:[#allocation60_spill] sm:$0xff] %v8520_v23  ;;  %v679_v28 = vld [vmem:[#allocation10 + $0xa8] sm:$0xff] }
 0x114   :  { %5899 = vmatprep.subr.bf16.mxu0 %v8389_v59  ;;  %v684_v17 = vld [vmem:[#allocation10 + $0xd0] sm:$0xff] }
 0x1e1   :  { %v5771_v1 = vpop.f32.mrb[0].mxu0 }
 0x1e2   :  { %v271_v5 = vpop.f32.mrb[1].mxu0  ;;  %v277_v15 = vadd.f32 %v5771_v1, %v5638_v63  ;;  %v8456_v1 = vpack.c.bf16 %v566_v53, %v562_v52  ;;  %v8504_v52 = vpack.c.bf16 %v663_v48, %v659_v47  ;;  %v665_v53 = vld [vmem:[#allocation10 + $0x38] sm:$0xff]  ;;  %v678_v47 = vld [vmem:[#allocation10 + $0xa0] sm:$0xff]  ;;  %v676_v48 = vld [vmem:[#allocation10 + $0x90] sm:$0xff] }
 0x1e3   :  { %v272_v7 = vadd.f32 %v5638_v63, %v271_v5  ;;  %v573_v63 = vld [vmem:[#allocation7 + $0x158] sm:$0xff]  ;;  %v8462_v5 = vpack.c.bf16 %v575_v62, %v571_v61  ;;  %v8506_v61 = vpack.c.bf16 %v665_v53, %v661_v49  ;;  %v8508_v62 = vpack.c.bf16 %v662_v58, %v658_v56  ;;  %v680_v49 = vld [vmem:[#allocation10 + $0xb0] sm:$0xff]  ;;  %v683_v56 = vld [vmem:[#allocation10 + $0xc8] sm:$0xff] }
 0x1e4   :  { %v281_v29 = vmul.f32 %v277_v15, %v8358_v40  ;;  %v554_v40 = vld [vmem:[#allocation7 + $0xc0] sm:$0xff]  ;;  %10178 = vst [vmem:[#allocation40_spill] sm:$0xff] %v8456_v1  ;;  %v8464_v6 = vpack.c.bf16 %v577_v0, %v573_v63  ;;  %v8468_v15 = vpack.c.bf16 %v574_v4, %v570_v3  ;;  %10192 = vst [vmem:[#allocation54_spill] sm:$0xff] %v8504_v52  ;;  %v660_v63 = vld [vmem:[#allocation10 + $0x10] sm:$0xff] }
 0x1e5   :  { %v280_v16 = vmul.f32 %v272_v7, %v185_v41  ;;  %v558_v41 = vld [vmem:[#allocation7 + $0xe0] sm:$0xff]  ;;  %10180 = vst [vmem:[#allocation42_spill] sm:$0xff] %v8462_v5  ;;  %v572_v7 = vld [vmem:[#allocation7 + $0x150] sm:$0xff]  ;;  %10193 = vst [vmem:[#allocation55_spill] sm:$0xff] %v8506_v61 }
 0x1e6   :  { %v8444_v50 = vpack.c.bf16 %v558_v41, %v554_v40  ;;  %10181 = vst [vmem:[#allocation43_spill] sm:$0xff] %v8464_v6  ;;  %10182 = vst [vmem:[#allocation44_spill] sm:$0xff] %v8468_v15  ;;  %v590_v40 = vld [vmem:[#allocation7 + $0x1e0] sm:$0xff]  ;;  %v588_v41 = vld [vmem:[#allocation7 + $0x1d0] sm:$0xff] }
 0x1e7   :  { %5641 = vmatmul.mubr.msk.f32.vlgmr.msra.gmra.mrb[0].mxu1 %vm198_vm1, %v280_v16  ;;  %5643 = vmatmul.mubr.msk.f32.vlgmr.msra.gmra.mrb[2].mxu0 %vm198_vm1, %v280_v16  ;;  %v8470_v16 = vpack.c.bf16 %v576_v8, %v572_v7  ;;  %v8492_v45 = vpack.c.bf16 %v590_v40, %v586_v35  ;;  %v8494_v46 = vpack.c.bf16 %v592_v44, %v588_v41  ;;  %v664_v0 = vld [vmem:[#allocation10 + $0x30] sm:$0xff]  ;;  %v667_v3 = vld [vmem:[#allocation10 + $0x48] sm:$0xff]  ;;  %v669_v8 = vld [vmem:[#allocation10 + $0x58] sm:$0xff] }
 0x1e8   :  { %5869 = vmatpush1.bf16.msra.mxu1 %v8401_v11  ;;  %5901 = vmatpush1.bf16.msra.mxu0 %v8403_v12  ;;  %10174 = vst [vmem:[#allocation36_spill] sm:$0xff] %v8444_v50  ;;  %10194 = vst [vmem:[#allocation56_spill] sm:$0xff] %v8508_v62  ;;  %v8511_v4 = vpack.c.bf16 %v664_v0, %v660_v63  ;;  %v671_v7 = vld [vmem:[#allocation10 + $0x68] sm:$0xff]  ;;  %v8517_v13 = vpack.c.bf16 %v673_v9, %v669_v8  ;;  %v677_v35 = vld [vmem:[#allocation10 + $0x98] sm:$0xff] }
 0x1e9   :  { %416 = vmatprep.mubr.f32.mxu1 %v9905_v60  ;;  %493 = vmatprep.mubr.f32.mxu0 %v9905_v60  ;;  %10183 = vst [vmem:[#allocation45_spill] sm:$0xff] %v8470_v16  ;;  %10190 = vst [vmem:[#allocation52_spill] sm:$0xff] %v8492_v45  ;;  %v8515_v10 = vpack.c.bf16 %v671_v7, %v667_v3  ;;  %v681_v40 = vld [vmem:[#allocation10 + $0xb8] sm:$0xff]  ;;  %v674_v41 = vld [vmem:[#allocation10 + $0x80] sm:$0xff]  ;;  %v8535_v0 = vpack.c.bf16 %v680_v49, %v676_v48 }
 0x1ea   :  { %5871 = vmatprep.subr.bf16.mxu1 %v8405_v20  ;;  %5903 = vmatprep.subr.bf16.mxu0 %v8407_v21  ;;  %10191 = vst [vmem:[#allocation53_spill] sm:$0xff] %v8494_v46  ;;  %10195 = vst [vmem:[#allocation57_spill] sm:$0xff] %v8511_v4  ;;  %v8528_v44 = vpack.c.bf16 %v681_v40, %v677_v35  ;;  %v8531_v53 = vpack.c.bf16 %v678_v47, %v674_v41  ;;  %v687_v58 = vld [vmem:[#allocation10 + $0xe8] sm:$0xff]  ;;  %v685_v63 = vld [vmem:[#allocation10 + $0xd8] sm:$0xff] }
 0x1eb   :  { %5642 = vmatmul.mubr.msk.f32.gmra.mrb[2].mxu1 %vm198_vm1, %v281_v29  ;;  %5644 = vmatmul.mubr.msk.f32.gmra.mrb[4].mxu0 %vm198_vm1, %v281_v29  ;;  %v589_v29 = vld [vmem:[#allocation7 + $0x1d8] sm:$0xff]  ;;  %10196 = vst [vmem:[#allocation58_spill] sm:$0xff] %v8515_v10  ;;  %10197 = vst [vmem:[#allocation59_spill] sm:$0xff] %v8517_v13  ;;  %v8537_v3 = vpack.c.bf16 %v687_v58, %v683_v56  ;;  %v682_v9 = vld [vmem:[#allocation10 + $0xc0] sm:$0xff] }
 0x1ec   :  { %5873 = vmatpush1.bf16.msra.mxu1 %v8413_v25  ;;  %5905 = vmatpush1.bf16.msra.mxu0 %v8415_v26  ;;  %v8488_v37 = vpack.c.bf16 %v593_v32, %v589_v29  ;;  %v8524_v29 = vpack.c.bf16 %v672_v24, %v668_v18  ;;  %v8526_v32 = vpack.c.bf16 %v679_v28, %v675_v27  ;;  %v689_v7 = vld [vmem:[#allocation10 + $0xf8] sm:$0xff]  ;;  %v688_v24 = vld [vmem:[#allocation10 + $0xf0] sm:$0xff]  ;;  %v691_v28 = vld [vmem:[#allocation10 + $0x108] sm:$0xff] }
 0x1ed   :  { %5875 = vmatprep.subr.bf16.mxu1 %v8420_v30  ;;  %5907 = vmatprep.subr.bf16.mxu0 %v8422_v31  ;;  %10201 = vst [vmem:[#allocation63_spill] sm:$0xff] %v8528_v44  ;;  %10202 = vst [vmem:[#allocation64_spill] sm:$0xff] %v8531_v53  ;;  %v8540_v8 = vpack.c.bf16 %v689_v7, %v685_v63  ;;  %v8546_v18 = vpack.c.bf16 %v686_v14, %v682_v9  ;;  %v695_v35 = vld [vmem:[#allocation10 + $0x128] sm:$0xff]  ;;  %v693_v40 = vld [vmem:[#allocation10 + $0x118] sm:$0xff] }
 0x1ee   :  { %787 = vmatprep.mubr.f32.mxu1 %v9905_v60  ;;  %858 = vmatprep.mubr.f32.mxu0 %v9905_v60  ;;  %10189 = vst [vmem:[#allocation51_spill] sm:$0xff] %v8488_v37  ;;  %10199 = vst [vmem:[#allocation61_spill] sm:$0xff] %v8524_v29  ;;  %v8548_v27 = vpack.c.bf16 %v688_v24, %v684_v17  ;;  %v8552_v41 = vpack.c.bf16 %v695_v35, %v691_v28  ;;  %v697_v47 = vld [vmem:[#allocation10 + $0x138] sm:$0xff]  ;;  %v690_v48 = vld [vmem:[#allocation10 + $0x100] sm:$0xff] }
 0x1ef   :  { %10200 = vst [vmem:[#allocation62_spill] sm:$0xff] %v8526_v32  ;;  %10203 = vst [vmem:[#allocation65_spill] sm:$0xff] %v8535_v0  ;;  %v694_v49 = vld [vmem:[#allocation10 + $0x120] sm:$0xff]  ;;  %v8554_v56 = vpack.c.bf16 %v697_v47, %v693_v40  ;;  %v692_v63 = vld [vmem:[#allocation10 + $0x110] sm:$0xff] }
 0x1f0   :  { %5877 = vmatpush1.bf16.msra.mxu1 %v8430_v38  ;;  %5909 = vmatpush1.bf16.msra.mxu0 %v8432_v39  ;;  %10204 = vst [vmem:[#allocation66_spill] sm:$0xff] %v8537_v3  ;;  %10205 = vst [vmem:[#allocation67_spill] sm:$0xff] %v8540_v8  ;;  %v8556_v58 = vpack.c.bf16 %v694_v49, %v690_v48  ;;  %v696_v7 = vld [vmem:[#allocation10 + $0x130] sm:$0xff]  ;;  %v699_v14 = vld [vmem:[#allocation10 + $0x148] sm:$0xff] }
 0x1f1   :  { %5879 = vmatprep.subr.bf16.mxu1 %v8436_v42  ;;  %5911 = vmatprep.subr.bf16.mxu0 %v8438_v43  ;;  %10206 = vst [vmem:[#allocation68_spill] sm:$0xff] %v8546_v18  ;;  %10207 = vst [vmem:[#allocation69_spill] sm:$0xff] %v8548_v27  ;;  %v8559_v9 = vpack.c.bf16 %v696_v7, %v692_v63  ;;  %v703_v17 = vld [vmem:[#allocation10 + $0x168] sm:$0xff]  ;;  %v701_v24 = vld [vmem:[#allocation10 + $0x158] sm:$0xff] }
 0x1f2   :  { %10208 = vst [vmem:[#allocation70_spill] sm:$0xff] %v8552_v41  ;;  %10209 = vst [vmem:[#allocation71_spill] sm:$0xff] %v8554_v56  ;;  %v8564_v28 = vpack.c.bf16 %v703_v17, %v699_v14  ;;  %v705_v35 = vld [vmem:[#allocation10 + $0x178] sm:$0xff]  ;;  %v698_v40 = vld [vmem:[#allocation10 + $0x140] sm:$0xff] }
 0x1f3   :  { %10210 = vst [vmem:[#allocation72_spill] sm:$0xff] %v8556_v58  ;;  %10211 = vst [vmem:[#allocation73_spill] sm:$0xff] %v8559_v9  ;;  %v702_v47 = vld [vmem:[#allocation10 + $0x160] sm:$0xff]  ;;  %v8566_v48 = vpack.c.bf16 %v705_v35, %v701_v24  ;;  %v700_v63 = vld [vmem:[#allocation10 + $0x150] sm:$0xff] }
 0x1f4   :  { %5881 = vmatpush1.bf16.msra.mxu1 %v8444_v50  ;;  %5913 = vmatpush1.bf16.msra.mxu0 %v8446_v51  ;;  %10212 = vst [vmem:[#allocation74_spill] sm:$0xff] %v8564_v28  ;;  %v8568_v49 = vpack.c.bf16 %v702_v47, %v698_v40  ;;  %v704_v7 = vld [vmem:[#allocation10 + $0x170] sm:$0xff]  ;;  %v711_v14 = vld [vmem:[#allocation10 + $0x1a8] sm:$0xff]  ;;  %v709_v17 = vld [vmem:[#allocation10 + $0x198] sm:$0xff] }
 0x1f5   :  { %5883 = vmatprep.subr.bf16.mxu1 %v8450_v54  ;;  %5915 = vmatprep.subr.bf16.mxu0 %v8452_v55  ;;  %10213 = vst [vmem:[#allocation75_spill] sm:$0xff] %v8566_v48  ;;  %v713_v24 = vld [vmem:[#allocation10 + $0x1b8] sm:$0xff]  ;;  %v706_v35 = vld [vmem:[#allocation10 + $0x180] sm:$0xff] }
 0x1f6   :  { %10214 = vst [vmem:[#allocation76_spill] sm:$0xff] %v8568_v49  ;;  %v710_v40 = vld [vmem:[#allocation10 + $0x1a0] sm:$0xff]  ;;  %v8578_v47 = vpack.c.bf16 %v713_v24, %v709_v17  ;;  %v721_v17 = vld [vmem:[#allocation10 + $0x1f8] sm:$0xff] }
 0x1f7   :  { %v714_v24 = vld [vmem:[#allocation10 + $0x1c0] sm:$0xff] }
 0x1f8   :  { %5885 = vmatpush1.bf16.msra.mxu1 %v8456_v1  ;;  %5917 = vmatpush1.bf16.msra.mxu0 %v8458_v2  ;;  %10217 = vst [vmem:[#allocation79_spill] sm:$0xff] %v8578_v47 }
 0x1f9   :  { %5887 = vmatprep.subr.bf16.mxu1 %v8462_v5  ;;  %5919 = vmatprep.subr.bf16.mxu0 %v8464_v6 }
 0x1fc   :  { %5889 = vmatpush1.bf16.msra.mxu1 %v8468_v15  ;;  %5921 = vmatpush1.bf16.msra.mxu0 %v8470_v16 }
 0x1fd   :  { %5891 = vmatprep.subr.bf16.mxu1 %v8474_v19  ;;  %5923 = vmatprep.subr.bf16.mxu0 %v8476_v22 }
 0x200   :  { %5893 = vmatpush1.bf16.msra.mxu1 %v8480_v33  ;;  %5925 = vmatpush1.bf16.msra.mxu0 %v8482_v34 }
 0x201   :  { %5895 = vmatprep.subr.bf16.mxu1 %v8486_v36  ;;  %5927 = vmatprep.subr.bf16.mxu0 %v8488_v37 }
 0x204   :  { %5897 = vmatpush1.bf16.msra.mxu1 %v8492_v45  ;;  %5929 = vmatpush1.bf16.msra.mxu0 %v8494_v46 }
 0x205   :  { %5931 = vmatprep.subr.bf16.mxu1 %v8504_v52  ;;  %5963 = vmatprep.subr.bf16.mxu0 %v8506_v61 }
 0x207   :  { %788 = vmatmul.mubr.f32.vlgmr.msra.gmra.mrb[4].mxu1 %v9905_v60  ;;  %859 = vmatmul.mubr.f32.vlgmr.msra.gmra.mrb[6].mxu0 %v9905_v60 }
 0x208   :  { %1001 = vmatprep.mubr.f32.mxu1 %v9905_v60  ;;  %1072 = vmatprep.mubr.f32.mxu0 %v9905_v60  ;;  %v8571_v60 = vpack.c.bf16 %v704_v7, %v700_v63  ;;  %v708_v63 = vld [vmem:[#allocation10 + $0x190] sm:$0xff] }
 0x209   :  { %5933 = vmatpush1.bf16.msra.mxu1 %v8508_v62  ;;  %5965 = vmatpush1.bf16.msra.mxu0 %v8511_v4  ;;  %v712_v7 = vld [vmem:[#allocation10 + $0x1b0] sm:$0xff] }
 0x20a   :  { %5935 = vmatprep.subr.bf16.mxu1 %v8515_v10  ;;  %5967 = vmatprep.subr.bf16.mxu0 %v8517_v13  ;;  %10215 = vst [vmem:[#allocation77_spill] sm:$0xff] %v8571_v60 }
 0x20d   :  { %5937 = vmatpush1.bf16.msra.mxu1 %v8520_v23  ;;  %5969 = vmatpush1.bf16.msra.mxu0 %v8524_v29 }
 0x20e   :  { %5939 = vmatprep.subr.bf16.mxu1 %v8526_v32  ;;  %5971 = vmatprep.subr.bf16.mxu0 %v8528_v44 }
 0x211   :  { %5941 = vmatpush1.bf16.msra.mxu1 %v8531_v53  ;;  %5973 = vmatpush1.bf16.msra.mxu0 %v8535_v0  ;;  %v656_v0 = vld [vmem:[#allocation8 + $0x1f0] sm:$0xff] }
 0x212   :  { %5943 = vmatprep.subr.bf16.mxu1 %v8537_v3  ;;  %5975 = vmatprep.subr.bf16.mxu0 %v8540_v8  ;;  %v655_v8 = vld [vmem:[#allocation8 + $0x1e8] sm:$0xff]  ;;  %v653_v3 = vld [vmem:[#allocation8 + $0x1d8] sm:$0xff] }
 0x215   :  { %5945 = vmatpush1.bf16.msra.mxu1 %v8546_v18  ;;  %5977 = vmatpush1.bf16.msra.mxu0 %v8548_v27  ;;  %v639_v27 = vld [vmem:[#allocation8 + $0x168] sm:$0xff]  ;;  %v641_v18 = vld [vmem:[#allocation8 + $0x178] sm:$0xff] }
 0x216   :  { %5947 = vmatprep.subr.bf16.mxu1 %v8552_v41  ;;  %5979 = vmatprep.subr.bf16.mxu0 %v8554_v56  ;;  %v8580_v56 = vpack.c.bf16 %v710_v40, %v706_v35  ;;  %v718_v35 = vld [vmem:[#allocation10 + $0x1e0] sm:$0xff] }
 0x218   :  { %10218 = vst [vmem:[#allocation80_spill] sm:$0xff] %v8580_v56 }
 0x219   :  { %5949 = vmatpush1.bf16.msra.mxu1 %v8556_v58  ;;  %5981 = vmatpush1.bf16.msra.mxu0 %v8559_v9  ;;  %v707_v9 = vld [vmem:[#allocation10 + $0x188] sm:$0xff] }
 0x21a   :  { %5951 = vmatprep.subr.bf16.mxu1 %v8564_v28  ;;  %5983 = vmatprep.subr.bf16.mxu0 %v8566_v48  ;;  %v8576_v58 = vpack.c.bf16 %v711_v14, %v707_v9  ;;  %v8583_v48 = vpack.c.bf16 %v712_v7, %v708_v63  ;;  %v719_v9 = vld [vmem:[#allocation10 + $0x1e8] sm:$0xff]  ;;  %v717_v14 = vld [vmem:[#allocation10 + $0x1d8] sm:$0xff]  ;;  %v8592_v28 = vpack.c.bf16 %v718_v35, %v714_v24  ;;  %v716_v63 = vld [vmem:[#allocation10 + $0x1d0] sm:$0xff] }
 0x21b   :  { %v8590_v40 = vpack.c.bf16 %v721_v17, %v717_v14  ;;  %v720_v7 = vld [vmem:[#allocation10 + $0x1f0] sm:$0xff]  ;;  %v601_v14 = vld [vmem:[#allocation8 + $0x38] sm:$0xff]  ;;  %v594_v17 = vld [vmem:[#allocation8] sm:$0xff] }
 0x21c   :  { %10216 = vst [vmem:[#allocation78_spill] sm:$0xff] %v8576_v58  ;;  %10219 = vst [vmem:[#allocation81_spill] sm:$0xff] %v8583_v48  ;;  %v598_v24 = vld [vmem:[#allocation8 + $0x20] sm:$0xff] }
 0x21d   :  { %5953 = vmatpush1.bf16.msra.mxu1 %v8568_v49  ;;  %5985 = vmatpush1.bf16.msra.mxu0 %v8571_v60  ;;  %v715_v60 = vld [vmem:[#allocation10 + $0x1c8] sm:$0xff]  ;;  %10221 = vst [vmem:[#allocation83_spill] sm:$0xff] %v8590_v40  ;;  %10222 = vst [vmem:[#allocation84_spill] sm:$0xff] %v8592_v28 }
 0x21e   :  { %5955 = vmatprep.subr.bf16.mxu1 %v8576_v58  ;;  %5987 = vmatprep.subr.bf16.mxu0 %v8578_v47  ;;  %v8588_v49 = vpack.c.bf16 %v719_v9, %v715_v60  ;;  %v8595_v47 = vpack.c.bf16 %v720_v7, %v716_v63  ;;  %v599_v60 = vld [vmem:[#allocation8 + $0x28] sm:$0xff]  ;;  %v597_v9 = vld [vmem:[#allocation8 + $0x18] sm:$0xff]  ;;  %v8604_v58 = vpack.c.bf16 %v598_v24, %v594_v17  ;;  %v596_v63 = vld [vmem:[#allocation8 + $0x10] sm:$0xff] }
 0x21f   :  { %v8602_v35 = vpack.c.bf16 %v601_v14, %v597_v9  ;;  %v600_v7 = vld [vmem:[#allocation8 + $0x30] sm:$0xff]  ;;  %v609_v14 = vld [vmem:[#allocation8 + $0x78] sm:$0xff]  ;;  %v602_v17 = vld [vmem:[#allocation8 + $0x40] sm:$0xff] }
 0x220   :  { %10220 = vst [vmem:[#allocation82_spill] sm:$0xff] %v8588_v49  ;;  %10223 = vst [vmem:[#allocation85_spill] sm:$0xff] %v8595_v47  ;;  %v606_v24 = vld [vmem:[#allocation8 + $0x60] sm:$0xff] }
 0x221   :  { %5957 = vmatpush1.bf16.msra.mxu1 %v8580_v56  ;;  %5989 = vmatpush1.bf16.msra.mxu0 %v8583_v48  ;;  %v595_v48 = vld [vmem:[#allocation8 + $0x8] sm:$0xff]  ;;  %10225 = vst [vmem:[#allocation87_spill] sm:$0xff] %v8602_v35  ;;  %10226 = vst [vmem:[#allocation88_spill] sm:$0xff] %v8604_v58 }
 0x222   :  { %5959 = vmatprep.subr.bf16.mxu1 %v8588_v49  ;;  %5991 = vmatprep.subr.bf16.mxu0 %v8590_v40  ;;  %v8600_v56 = vpack.c.bf16 %v599_v60, %v595_v48  ;;  %v10227_v40 = vmov 0.0   ;;  %v603_v48 = vld [vmem:[#allocation8 + $0x48] sm:$0xff] }
 0x223   :  { %v607_v60 = vld [vmem:[#allocation8 + $0x68] sm:$0xff] }
 0x224   :  { %10224 = vst [vmem:[#allocation86_spill] sm:$0xff] %v8600_v56  ;;  %v8614_v9 = vpack.c.bf16 %v607_v60, %v603_v48  ;;  %v611_v48 = vld [vmem:[#allocation8 + $0x88] sm:$0xff] }
 0x225   :  { %5961 = vmatpush1.bf16.msra.mxu1 %v8592_v28  ;;  %5993 = vmatpush1.bf16.msra.mxu0 %v8595_v47  ;;  %v8608_v28 = vpack.c.bf16 %v600_v7, %v596_v63  ;;  %v605_v47 = vld [vmem:[#allocation8 + $0x58] sm:$0xff]  ;;  %v8618_v63 = vpack.c.bf16 %v606_v24, %v602_v17  ;;  %v604_v7 = vld [vmem:[#allocation8 + $0x50] sm:$0xff]  ;;  %v615_v60 = vld [vmem:[#allocation8 + $0xa8] sm:$0xff] }
 0x226   :  { %5995 = vmatprep.subr.bf16.mxu1 %v8600_v56  ;;  %6027 = vmatprep.subr.bf16.mxu0 %v8602_v35  ;;  %10229 = vst [vmem:[#allocation90_spill] sm:$0xff] %v8614_v9  ;;  %v8616_v56 = vpack.c.bf16 %v609_v14, %v605_v47  ;;  %v608_v35 = vld [vmem:[#allocation8 + $0x70] sm:$0xff]  ;;  %v8628_v47 = vpack.c.bf16 %v615_v60, %v611_v48  ;;  %v617_v14 = vld [vmem:[#allocation8 + $0xb8] sm:$0xff]  ;;  %v610_v17 = vld [vmem:[#allocation8 + $0x80] sm:$0xff] }
 0x227   :  { %10228 = vst [vmem:[#allocation89_spill] sm:$0xff] %v8608_v28  ;;  %10231 = vst [vmem:[#allocation92_spill] sm:$0xff] %v8618_v63  ;;  %v614_v24 = vld [vmem:[#allocation8 + $0xa0] sm:$0xff] }
 0x228   :  { %1002 = vmatmul.mubr.f32.vlgmr.msra.gmra.mrb[6].mxu1 %v10227_v40  ;;  %1073 = vmatmul.mubr.f32.vlgmr.msra.gmra.mrb[8].mxu0 %v10227_v40  ;;  %10230 = vst [vmem:[#allocation91_spill] sm:$0xff] %v8616_v56  ;;  %10233 = vst [vmem:[#allocation94_spill] sm:$0xff] %v8628_v47  ;;  %v8632_v41 = vpack.c.bf16 %v614_v24, %v610_v17  ;;  %v618_v60 = vld [vmem:[#allocation8 + $0xc0] sm:$0xff] }
 0x229   :  { %5997 = vmatpush1.bf16.msra.mxu1 %v8604_v58  ;;  %6029 = vmatpush1.bf16.msra.mxu0 %v8608_v28  ;;  %v8623_v58 = vpack.c.bf16 %v608_v35, %v604_v7  ;;  %v613_v28 = vld [vmem:[#allocation8 + $0x98] sm:$0xff]  ;;  %v612_v35 = vld [vmem:[#allocation8 + $0x90] sm:$0xff] }
 0x22a   :  { %1149 = vmatprep.mubr.f32.mxu1 %v10227_v40  ;;  %1220 = vmatprep.mubr.f32.mxu0 %v10227_v40  ;;  %v8630_v49 = vpack.c.bf16 %v617_v14, %v613_v28  ;;  %10235 = vst [vmem:[#allocation96_spill] sm:$0xff] %v8632_v41  ;;  %v616_v7 = vld [vmem:[#allocation8 + $0xb0] sm:$0xff]  ;;  %v625_v28 = vld [vmem:[#allocation8 + $0xf8] sm:$0xff]  ;;  %v622_v14 = vld [vmem:[#allocation8 + $0xe0] sm:$0xff] }
 0x22b   :  { %5999 = vmatprep.subr.bf16.mxu1 %v8614_v9  ;;  %10232 = vst [vmem:[#allocation93_spill] sm:$0xff] %v8623_v58  ;;  %6031 = vmatprep.subr.bf16.mxu0 %v8616_v56  ;;  %v8635_v56 = vpack.c.bf16 %v616_v7, %v612_v35  ;;  %v623_v9 = vld [vmem:[#allocation8 + $0xe8] sm:$0xff]  ;;  %v8644_v24 = vpack.c.bf16 %v622_v14, %v618_v60  ;;  %v620_v35 = vld [vmem:[#allocation8 + $0xd0] sm:$0xff] }
 0x22c   :  { %10234 = vst [vmem:[#allocation95_spill] sm:$0xff] %v8630_v49  ;;  %v624_v7 = vld [vmem:[#allocation8 + $0xf0] sm:$0xff] }
 0x22d   :  { %6001 = vmatpush1.bf16.msra.mxu1 %v8618_v63  ;;  %6033 = vmatpush1.bf16.msra.mxu0 %v8623_v58  ;;  %10236 = vst [vmem:[#allocation97_spill] sm:$0xff] %v8635_v56  ;;  %v619_v63 = vld [vmem:[#allocation8 + $0xc8] sm:$0xff]  ;;  %v621_v58 = vld [vmem:[#allocation8 + $0xd8] sm:$0xff]  ;;  %10239 = vst [vmem:[#allocation100_spill] sm:$0xff] %v8644_v24 }
 0x22e   :  { %6003 = vmatprep.subr.bf16.mxu1 %v8628_v47  ;;  %6035 = vmatprep.subr.bf16.mxu0 %v8630_v49  ;;  %v8640_v48 = vpack.c.bf16 %v623_v9, %v619_v63  ;;  %v8642_v17 = vpack.c.bf16 %v625_v28, %v621_v58  ;;  %v8647_v49 = vpack.c.bf16 %v624_v7, %v620_v35  ;;  %v631_v47 = vld [vmem:[#allocation8 + $0x128] sm:$0xff]  ;;  %v633_v58 = vld [vmem:[#allocation8 + $0x138] sm:$0xff]  ;;  %v626_v63 = vld [vmem:[#allocation8 + $0x100] sm:$0xff] }
 0x22f   :  { %v630_v28 = vld [vmem:[#allocation8 + $0x120] sm:$0xff]  ;;  %v628_v35 = vld [vmem:[#allocation8 + $0x110] sm:$0xff] }
 0x230   :  { %10237 = vst [vmem:[#allocation98_spill] sm:$0xff] %v8640_v48  ;;  %10238 = vst [vmem:[#allocation99_spill] sm:$0xff] %v8642_v17  ;;  %v8656_v14 = vpack.c.bf16 %v630_v28, %v626_v63  ;;  %v632_v7 = vld [vmem:[#allocation8 + $0x130] sm:$0xff] }
 0x231   :  { %6005 = vmatpush1.bf16.msra.mxu1 %v8632_v41  ;;  %6037 = vmatpush1.bf16.msra.mxu0 %v8635_v56  ;;  %10240 = vst [vmem:[#allocation101_spill] sm:$0xff] %v8647_v49  ;;  %v627_v41 = vld [vmem:[#allocation8 + $0x108] sm:$0xff]  ;;  %v629_v56 = vld [vmem:[#allocation8 + $0x118] sm:$0xff]  ;;  %v636_v63 = vld [vmem:[#allocation8 + $0x150] sm:$0xff] }
 0x232   :  { %6007 = vmatprep.subr.bf16.mxu1 %v8640_v48  ;;  %6039 = vmatprep.subr.bf16.mxu0 %v8642_v17  ;;  %v8652_v9 = vpack.c.bf16 %v631_v47, %v627_v41  ;;  %v8654_v60 = vpack.c.bf16 %v633_v58, %v629_v56  ;;  %10243 = vst [vmem:[#allocation104_spill] sm:$0xff] %v8656_v14  ;;  %v635_v48 = vld [vmem:[#allocation8 + $0x148] sm:$0xff]  ;;  %v634_v56 = vld [vmem:[#allocation8 + $0x140] sm:$0xff] }
 0x233   :  { %v8659_v17 = vpack.c.bf16 %v632_v7, %v628_v35  ;;  %v8662_v41 = vpack.c.bf16 %v639_v27, %v635_v48  ;;  %v638_v58 = vld [vmem:[#allocation8 + $0x160] sm:$0xff]  ;;  %v640_v35 = vld [vmem:[#allocation8 + $0x170] sm:$0xff]  ;;  %v643_v7 = vld [vmem:[#allocation8 + $0x188] sm:$0xff] }
 0x234   :  { %10241 = vst [vmem:[#allocation102_spill] sm:$0xff] %v8652_v9  ;;  %10242 = vst [vmem:[#allocation103_spill] sm:$0xff] %v8654_v60  ;;  %v8668_v28 = vpack.c.bf16 %v638_v58, %v634_v56  ;;  %v8672_v27 = vpack.c.bf16 %v640_v35, %v636_v63  ;;  %v645_v48 = vld [vmem:[#allocation8 + $0x198] sm:$0xff]  ;;  %v648_v56 = vld [vmem:[#allocation8 + $0x1b0] sm:$0xff] }
 0x235   :  { %6009 = vmatpush1.bf16.msra.mxu1 %v8644_v24  ;;  %6041 = vmatpush1.bf16.msra.mxu0 %v8647_v49  ;;  %10244 = vst [vmem:[#allocation105_spill] sm:$0xff] %v8659_v17  ;;  %v637_v24 = vld [vmem:[#allocation8 + $0x158] sm:$0xff]  ;;  %10245 = vst [vmem:[#allocation106_spill] sm:$0xff] %v8662_v41  ;;  %v651_v58 = vld [vmem:[#allocation8 + $0x1c8] sm:$0xff] }
 0x236   :  { %6011 = vmatprep.subr.bf16.mxu1 %v8652_v9  ;;  %6043 = vmatprep.subr.bf16.mxu0 %v8654_v60  ;;  %v8664_v47 = vpack.c.bf16 %v641_v18, %v637_v24  ;;  %10247 = vst [vmem:[#allocation108_spill] sm:$0xff] %v8668_v28  ;;  %v647_v9 = vld [vmem:[#allocation8 + $0x1a8] sm:$0xff]  ;;  %10248 = vst [vmem:[#allocation109_spill] sm:$0xff] %v8672_v27  ;;  %v649_v24 = vld [vmem:[#allocation8 + $0x1b8] sm:$0xff] }
 0x237   :  { %v8674_v18 = vpack.c.bf16 %v647_v9, %v643_v7  ;;  %v642_v60 = vld [vmem:[#allocation8 + $0x180] sm:$0xff]  ;;  %v8676_v49 = vpack.c.bf16 %v649_v24, %v645_v48  ;;  %v657_v9 = vld [vmem:[#allocation8 + $0x1f8] sm:$0xff]  ;;  %v8686_v7 = vpack.c.bf16 %v655_v8, %v651_v58 }
 0x238   :  { %10246 = vst [vmem:[#allocation107_spill] sm:$0xff] %v8664_v47  ;;  %v650_v35 = vld [vmem:[#allocation8 + $0x1c0] sm:$0xff]  ;;  %v8688_v48 = vpack.c.bf16 %v657_v9, %v653_v3 }
 0x239   :  { %6013 = vmatpush1.bf16.msra.mxu1 %v8656_v14  ;;  %6045 = vmatpush1.bf16.msra.mxu0 %v8659_v17  ;;  %10249 = vst [vmem:[#allocation110_spill] sm:$0xff] %v8674_v18  ;;  %10250 = vst [vmem:[#allocation111_spill] sm:$0xff] %v8676_v49  ;;  %v646_v14 = vld [vmem:[#allocation8 + $0x1a0] sm:$0xff]  ;;  %v644_v17 = vld [vmem:[#allocation8 + $0x190] sm:$0xff] }
 0x23a   :  { %6015 = vmatprep.subr.bf16.mxu1 %v8662_v41  ;;  %6047 = vmatprep.subr.bf16.mxu0 %v8664_v47  ;;  %v8680_v47 = vpack.c.bf16 %v646_v14, %v642_v60  ;;  %v8682_v63 = vpack.c.bf16 %v648_v56, %v644_v17  ;;  %10253 = vst [vmem:[#allocation114_spill] sm:$0xff] %v8686_v7  ;;  %10254 = vst [vmem:[#allocation115_spill] sm:$0xff] %v8688_v48  ;;  %v654_v24 = vld [vmem:[#allocation8 + $0x1e0] sm:$0xff]  ;;  %v652_v41 = vld [vmem:[#allocation8 + $0x1d0] sm:$0xff] }
 0x23b   :  { %v8692_v60 = vpack.c.bf16 %v654_v24, %v650_v35  ;;  %v8694_v17 = vpack.c.bf16 %v656_v0, %v652_v41  ;;  %v312_v35 = vlaneseq }
 0x23c   :  { %10251 = vst [vmem:[#allocation112_spill] sm:$0xff] %v8680_v47  ;;  %10252 = vst [vmem:[#allocation113_spill] sm:$0xff] %v8682_v63 }
 0x23d   :  { %6017 = vmatpush1.bf16.msra.mxu1 %v8668_v28  ;;  %6049 = vmatpush1.bf16.msra.mxu0 %v8672_v27  ;;  %10255 = vst [vmem:[#allocation116_spill] sm:$0xff] %v8692_v60  ;;  %10256 = vst [vmem:[#allocation117_spill] sm:$0xff] %v8694_v17  ;;  %v8702_v24 = vshrl.u32 %v312_v35, 7  ;;  %v309_v35 = vpop.permute.xlu1 %308 }
 0x23e   :  { %6019 = vmatprep.subr.bf16.mxu1 %v8674_v18  ;;  %6051 = vmatprep.subr.bf16.mxu0 %v8676_v49  ;;  %v500_v49 = vld [vmem:[%s9884_s9] sm:$0xf] }
 0x23f   :  { %10257 = vst [vmem:[#allocation118_spill] sm:$0xff] %v8702_v24  ;;  %v8722_v18 = vsub.s32 2, %v8702_v24 }
 0x241   :  { %6021 = vmatpush1.bf16.msra.mxu1 %v8680_v47  ;;  %6053 = vmatpush1.bf16.msra.mxu0 %v8682_v63  ;;  %v8716_v63 = vsub.s32 3, %v8702_v24 }
 0x242   :  { %6023 = vmatprep.subr.bf16.mxu1 %v8686_v7  ;;  %6055 = vmatprep.subr.bf16.mxu0 %v8688_v48  ;;  %v8705_v48 = vsub.s32 0, %v8702_v24 }
 0x243   :  { %10260 = vst [vmem:[#allocation121_spill] sm:$0xff] %v8716_v63 }
 0x244   :  { %10258 = vst [vmem:[#allocation119_spill] sm:$0xff] %v8705_v48  ;;  %v505_v29 = vrot.slane %v500_v49, %v8705_v48 }
 0x245   :  { %6025 = vmatpush1.bf16.msra.mxu1 %v8692_v60  ;;  %6057 = vmatpush1.bf16.msra.mxu0 %v8694_v17  ;;  %v304_v60 = vpop.permute.xlu0 %303 }
 0x246   :  { %6059 = vmatprep.subr.bf16.mxu1 %v8387_v57  ;;  %6091 = vmatprep.subr.bf16.mxu0 %v8389_v59  ;;  %v300_v57 = vld [vmem:[%s9883_s8] sm:$0xf]  ;;  %v8711_v59 = vsub.s32 1, %v8702_v24 }
 0x247   :  { %v315_v17 = vrot.slane %v300_v57, %v8705_v48  ;;  %v327_v53 = vrot.slane %v300_v57, %v8716_v63  ;;  %v323_v23 = vrot.slane %v300_v57, %v8722_v18 }
 0x248   :  { %10259 = vst [vmem:[#allocation120_spill] sm:$0xff] %v8711_v59  ;;  %v319_v7 = vrot.slane %v300_v57, %v8711_v59  ;;  %v509_v10 = vrot.slane %v500_v49, %v8711_v59 }
 0x249   :  { %v332_v47 = vmul.f32 %v315_v17, %v304_v60  ;;  %v336_v28 = vmul.f32 %v315_v17, %v309_v35  ;;  %v335_v62 = vmul.f32 %v327_v53, %v304_v60  ;;  %v339_v24 = vmul.f32 %v327_v53, %v309_v35 }
 0x24a   :  { %v333_v27 = vmul.f32 %v319_v7, %v304_v60  ;;  %v337_v44 = vmul.f32 %v319_v7, %v309_v35  ;;  %v334_v46 = vmul.f32 %v323_v23, %v304_v60 }
 0x2ba   :  { %v412_v3 = vpop.f32.mrb[0].mxu1  ;;  %v489_v8 = vpop.f32.mrb[2].mxu0 }
 0x2bb   :  { %v414_v14 = vpop.f32.mrb[1].mxu1  ;;  %v491_v56 = vpop.f32.mrb[3].mxu0  ;;  %v413_v32 = vadd.f32 %v412_v3, %v332_v47  ;;  %v517_v47 = vrot.slane %v500_v49, %v8716_v63  ;;  %v338_v63 = vmul.f32 %v323_v23, %v309_v35  ;;  %v490_v59 = vadd.f32 %v489_v8, %v334_v46 }
 0x2bc   :  { %v415_v13 = vadd.f32 %v414_v14, %v333_v27 }
 0x2bd   :  { %v8728_v52 = vadd.f32 %v505_v29, %v413_v32 }
 0x2be   :  { %v418_v58 = vpop.f32.mrb[2].mxu1  ;;  %v495_v9 = vpop.f32.mrb[4].mxu0  ;;  %v8730_v45 = vadd.f32 %v509_v10, %v415_v13 }
 0x2bf   :  { %v420_v0 = vpop.f32.mrb[3].mxu1  ;;  %v497_v41 = vpop.f32.mrb[5].mxu0  ;;  %v419_v4 = vadd.f32 %v418_v58, %v336_v28  ;;  %10261 = vst [vmem:[#allocation122_spill] sm:$0xff] %v8728_v52  ;;  %v492_v28 = vadd.f32 %v491_v56, %v335_v62 }
 0x2c0   :  { %v421_v61 = vadd.f32 %v420_v0, %v337_v44  ;;  %v498_v53 = vadd.f32 %v497_v41, %v339_v24  ;;  %v513_v0 = vrot.slane %v500_v49, %v8722_v18  ;;  %v496_v49 = vadd.f32 %v495_v9, %v338_v63 }
 0x2c1   :  { %v8733_v7 = vadd.f32 %v505_v29, %v419_v4  ;;  %v8742_v62 = vadd.f32 %v517_v47, %v492_v28 }
 0x2c2   :  { %v8736_v58 = vadd.f32 %v509_v10, %v421_v61  ;;  %v8744_v10 = vadd.f32 %v517_v47, %v498_v53  ;;  %v8747_v41 = vadd.f32 %v513_v0, %v490_v59  ;;  %v8751_v35 = vadd.f32 %v513_v0, %v496_v49 }
 0x2c3   :  { %10262 = vst [vmem:[#allocation123_spill] sm:$0xff] %v8733_v7  ;;  %10264 = vst [vmem:[#allocation125_spill] sm:$0xff] %v8742_v62 }
 0x2c4   :  { %10263 = vst [vmem:[#allocation124_spill] sm:$0xff] %v8736_v58  ;;  %10265 = vst [vmem:[#allocation126_spill] sm:$0xff] %v8744_v10 }
 0x2c5   :  { %10266 = vst [vmem:[#allocation127_spill] sm:$0xff] %v8747_v41  ;;  %10267 = vst [vmem:[#allocation128_spill] sm:$0xff] %v8751_v35 }
 0x2da   :  { %v789_v17 = vpop.f32.mrb[4].mxu1  ;;  %v860_v37 = vpop.f32.mrb[6].mxu0 }
 0x2db   :  { %v869_v3 = vrot.slane %v789_v17, 1  ;;  %v881_v57 = vadd.f32 %v789_v17, %v8728_v52  ;;  %v791_v27 = vpop.f32.mrb[5].mxu1  ;;  %v862_v14 = vpop.f32.mrb[7].mxu0  ;;  %v871_v24 = vrot.slane %v860_v37, 1  ;;  %v883_v46 = vadd.f32 %v860_v37, %v8747_v41 }
 0x2dc   :  { %v870_v32 = vrot.slane %v791_v27, 1  ;;  %v882_v44 = vadd.f32 %v791_v27, %v8730_v45  ;;  %v872_v52 = vrot.slane %v862_v14, 1  ;;  %v884_v56 = vadd.f32 %v862_v14, %v8742_v62 }
 0x2dd   :  { %v885_v13 = vadd.f32 %v869_v3, %v8733_v7  ;;  %v5645_v60 = vmul.f32 -1.442695, %v881_v57  ;;  %v887_v47 = vadd.f32 %v871_v24, %v8751_v35 }
 0x2de   :  { %v886_v4 = vadd.f32 %v870_v32, %v8736_v58  ;;  %v5647_v29 = vmul.f32 -1.442695, %v882_v44  ;;  %v888_v23 = vadd.f32 %v872_v52, %v8744_v10  ;;  %v5649_v8 = vmul.f32 -1.442695, %v884_v56 }
 0x2df   :  { %7522 = vpow2.f32 %v5645_v60  ;;  %v5646_v17 = vmul.f32 -1.442695, %v885_v13 }
 0x2e0   :  { %v5648_v61 = vmul.f32 -1.442695, %v886_v4  ;;  %v5650_v3 = vmul.f32 -1.442695, %v888_v23 }
 0x2e1   :  { %7524 = vpow2.f32 %v5646_v17 }
 0x2e2   :  { %7526 = vpow2.f32 %v5647_v29 }
 0x2e3   :  { %7528 = vpow2.f32 %v5648_v61 }
 0x2e4   :  { %7530 = vtanh.f32 %v883_v46 }
 0x2e5   :  { %7532 = vpow2.f32 %v5649_v8 }
 0x2e6   :  { %7534 = vpow2.f32 %v5650_v3 }
 0x2e9   :  { %v7523_v57 = vpop.eup %7522 }
 0x2ea   :  { %v895_v27 = vadd.f32 1.0, %v7523_v57 }
 0x2eb   :  { %v7525_v14 = vpop.eup %7524 }
 0x2ec   :  { %v7527_v59 = vpop.eup %7526  ;;  %v896_v63 = vadd.f32 1.0, %v7525_v14  ;;  %7536 = vrcp.f32 %v895_v27 }
 0x2ed   :  { %v7529_v9 = vpop.eup %7528  ;;  %7538 = vtanh.f32 %v887_v47  ;;  %v907_v52 = vadd.f32 1.0, %v7527_v59 }
 0x2ee   :  { %7540 = vrcp.f32 %v896_v63  ;;  %v908_v37 = vadd.f32 1.0, %v7529_v9  ;;  %v7531_v28 = vpop.eup %7530  ;;  %v10268_v9 = vld [vmem:[#allocation51_spill] sm:$0xff] }
 0x2ef   :  { %7542 = vrcp.f32 %v907_v52  ;;  %v7533_v32 = vpop.eup %7532  ;;  %v10269_v52 = vld [vmem:[#allocation52_spill] sm:$0xff] }
 0x2f0   :  { %7544 = vrcp.f32 %v908_v37  ;;  %v7535_v44 = vpop.eup %7534  ;;  %v921_v4 = vadd.f32 1.0, %v7533_v32  ;;  %v10270_v37 = vld [vmem:[#allocation53_spill] sm:$0xff]  ;;  %v10272_v32 = vld [vmem:[#allocation55_spill] sm:$0xff] }
 0x2f1   :  { %v922_v61 = vadd.f32 1.0, %v7535_v44  ;;  %v10273_v44 = vld [vmem:[#allocation56_spill] sm:$0xff] }
 0x2f2   :  { %7546 = vrcp.f32 %v921_v4  ;;  %v10278_v4 = vld [vmem:[#allocation61_spill] sm:$0xff] }
 0x2f3   :  { %7548 = vrcp.f32 %v922_v61  ;;  %v10281_v61 = vld [vmem:[#allocation64_spill] sm:$0xff] }
 0x2f6   :  { %v7537_v53 = vpop.eup %7536 }
 0x2f7   :  { %v7539_v13 = vpop.eup %7538  ;;  %v929_v60 = vmul.f32 %v7537_v53, %v7531_v28  ;;  %v10271_v28 = vld [vmem:[#allocation54_spill] sm:$0xff]  ;;  %v10274_v53 = vld [vmem:[#allocation57_spill] sm:$0xff] }
 0x2f8   :  { %v7541_v0 = vpop.eup %7540 }
 0x2f9   :  { %v7543_v29 = vpop.eup %7542  ;;  %v930_v17 = vmul.f32 %v7541_v0, %v7539_v13  ;;  %v10275_v13 = vld [vmem:[#allocation58_spill] sm:$0xff]  ;;  %v10277_v0 = vld [vmem:[#allocation60_spill] sm:$0xff] }
 0x2fa   :  { %v7545_v56 = vpop.eup %7544  ;;  %v927_v49 = vmul.f32 0.0, %v7543_v29  ;;  %v10279_v29 = vld [vmem:[#allocation62_spill] sm:$0xff] }
 0x2fb   :  { %v928_v23 = vmul.f32 0.0, %v7545_v56  ;;  %v10282_v56 = vld [vmem:[#allocation65_spill] sm:$0xff] }
 0x2fc   :  { %v8754_v24 = vadd.f32 %v929_v60, %v927_v49  ;;  %v7547_v8 = vpop.eup %7546  ;;  %v10276_v60 = vld [vmem:[#allocation59_spill] sm:$0xff]  ;;  %v10283_v49 = vld [vmem:[#allocation66_spill] sm:$0xff] }
 0x2fd   :  { %v8756_v46 = vadd.f32 %v930_v17, %v928_v23  ;;  %v7549_v3 = vpop.eup %7548  ;;  %v10280_v17 = vld [vmem:[#allocation63_spill] sm:$0xff] }
 0x2fe   :  { %7550 = vtanh.f32 %v8754_v24  ;;  %v10284_v23 = vld [vmem:[#allocation67_spill] sm:$0xff] }
 0x2ff   :  { %7552 = vtanh.f32 %v8756_v46 }
 0x308   :  { %v7551_v57 = vpop.eup %7550 }
 0x309   :  { %v7553_v47 = vpop.eup %7552  ;;  %v935_v27 = vmul.f32 %v7551_v57, %v7547_v8  ;;  %v10285_v8 = vld [vmem:[#allocation68_spill] sm:$0xff]  ;;  %v10287_v57 = vld [vmem:[#allocation70_spill] sm:$0xff] }
 0x30a   :  { %v936_v14 = vmul.f32 %v7553_v47, %v7549_v3  ;;  %v10286_v3 = vld [vmem:[#allocation69_spill] sm:$0xff]  ;;  %v10288_v47 = vld [vmem:[#allocation71_spill] sm:$0xff] }
 0x30c   :  { %v1081_v59 = vrot.slane %v936_v14, 7  ;;  %v10290_v14 = vld [vmem:[#allocation73_spill] sm:$0xff] }
 0x30e   :  { %v1083_v63 = vsel %vm1082_vm2, %v1081_v59, %v935_v27  ;;  %v10289_v27 = vld [vmem:[#allocation72_spill] sm:$0xff]  ;;  %v10291_v59 = vld [vmem:[#allocation74_spill] sm:$0xff] }
 0x30f   :  { %1150 = vmatmul.mubr.f32.vlgmr.msra.gmra.mrb[6].mxu1 %v1083_v63  ;;  %1221 = vmatmul.mubr.f32.vlgmr.msra.gmra.mrb[8].mxu0 %v1083_v63 }
 0x310   :  { %6061 = vmatpush1.bf16.msra.mxu1 %v8401_v11  ;;  %6093 = vmatpush1.bf16.msra.mxu0 %v8403_v12 }
 0x311   :  { %6063 = vmatprep.subr.bf16.mxu1 %v8405_v20  ;;  %6095 = vmatprep.subr.bf16.mxu0 %v8407_v21 }
 0x312   :  { %1340 = vmatprep.mubr.f32.mxu1 %v10227_v40  ;;  %1411 = vmatprep.mubr.f32.mxu0 %v10227_v40 }
 0x314   :  { %6065 = vmatpush1.bf16.msra.mxu1 %v8413_v25  ;;  %6097 = vmatpush1.bf16.msra.mxu0 %v8415_v26 }
 0x315   :  { %6067 = vmatprep.subr.bf16.mxu1 %v8420_v30  ;;  %6099 = vmatprep.subr.bf16.mxu0 %v8422_v31 }
 0x318   :  { %6069 = vmatpush1.bf16.msra.mxu1 %v8430_v38  ;;  %6101 = vmatpush1.bf16.msra.mxu0 %v8432_v39 }
 0x319   :  { %6071 = vmatprep.subr.bf16.mxu1 %v8436_v42  ;;  %6103 = vmatprep.subr.bf16.mxu0 %v8438_v43 }
 0x31c   :  { %6073 = vmatpush1.bf16.msra.mxu1 %v8444_v50  ;;  %6105 = vmatpush1.bf16.msra.mxu0 %v8446_v51 }
 0x31d   :  { %6075 = vmatprep.subr.bf16.mxu1 %v8450_v54  ;;  %6107 = vmatprep.subr.bf16.mxu0 %v8452_v55 }
 0x320   :  { %6077 = vmatpush1.bf16.msra.mxu1 %v8456_v1  ;;  %6109 = vmatpush1.bf16.msra.mxu0 %v8458_v2 }
 0x321   :  { %6079 = vmatprep.subr.bf16.mxu1 %v8462_v5  ;;  %6111 = vmatprep.subr.bf16.mxu0 %v8464_v6 }
 0x324   :  { %6081 = vmatpush1.bf16.msra.mxu1 %v8468_v15  ;;  %6113 = vmatpush1.bf16.msra.mxu0 %v8470_v16 }
 0x325   :  { %6083 = vmatprep.subr.bf16.mxu1 %v8474_v19  ;;  %6115 = vmatprep.subr.bf16.mxu0 %v8476_v22 }
 0x328   :  { %6085 = vmatpush1.bf16.msra.mxu1 %v8480_v33  ;;  %6117 = vmatpush1.bf16.msra.mxu0 %v8482_v34 }
 0x329   :  { %6087 = vmatprep.subr.bf16.mxu1 %v8486_v36  ;;  %6119 = vmatprep.subr.bf16.mxu0 %v10268_v9 }
 0x32c   :  { %6089 = vmatpush1.bf16.msra.mxu1 %v10269_v52  ;;  %6121 = vmatpush1.bf16.msra.mxu0 %v10270_v37 }
 0x32d   :  { %6123 = vmatprep.subr.bf16.mxu1 %v10271_v28  ;;  %6155 = vmatprep.subr.bf16.mxu0 %v10272_v32 }
 0x32f   :  { %1341 = vmatmul.mubr.f32.vlgmr.msra.gmra.mrb[8].mxu1 %v1083_v63  ;;  %1412 = vmatmul.mubr.f32.vlgmr.msra.gmra.mrb[10].mxu0 %v1083_v63  ;;  %v10292_v63 = vld [vmem:[#allocation75_spill] sm:$0xff] }
 0x330   :  { %6125 = vmatpush1.bf16.msra.mxu1 %v10273_v44  ;;  %6157 = vmatpush1.bf16.msra.mxu0 %v10274_v53 }
 0x331   :  { %6127 = vmatprep.subr.bf16.mxu1 %v10275_v13  ;;  %6159 = vmatprep.subr.bf16.mxu0 %v10276_v60 }
 0x332   :  { %1560 = vmatprep.mubr.f32.mxu1 %v10227_v40  ;;  %1631 = vmatprep.mubr.f32.mxu0 %v10227_v40 }
 0x334   :  { %6129 = vmatpush1.bf16.msra.mxu1 %v10277_v0  ;;  %6161 = vmatpush1.bf16.msra.mxu0 %v10278_v4 }
 0x335   :  { %6131 = vmatprep.subr.bf16.mxu1 %v10279_v29  ;;  %6163 = vmatprep.subr.bf16.mxu0 %v10280_v17 }
 0x338   :  { %6133 = vmatpush1.bf16.msra.mxu1 %v10281_v61  ;;  %6165 = vmatpush1.bf16.msra.mxu0 %v10282_v56  ;;  %v10293_v56 = vld [vmem:[#allocation76_spill] sm:$0xff] }
 0x339   :  { %6135 = vmatprep.subr.bf16.mxu1 %v10283_v49  ;;  %6167 = vmatprep.subr.bf16.mxu0 %v10284_v23  ;;  %v10294_v49 = vld [vmem:[#allocation77_spill] sm:$0xff]  ;;  %v10295_v23 = vld [vmem:[#allocation78_spill] sm:$0xff] }
 0x33c   :  { %6137 = vmatpush1.bf16.msra.mxu1 %v10285_v8  ;;  %6169 = vmatpush1.bf16.msra.mxu0 %v10286_v3  ;;  %v10296_v8 = vld [vmem:[#allocation79_spill] sm:$0xff]  ;;  %v10297_v3 = vld [vmem:[#allocation80_spill] sm:$0xff] }
 0x33d   :  { %6139 = vmatprep.subr.bf16.mxu1 %v10287_v57  ;;  %6171 = vmatprep.subr.bf16.mxu0 %v10288_v47  ;;  %v10298_v57 = vld [vmem:[#allocation81_spill] sm:$0xff]  ;;  %v10299_v47 = vld [vmem:[#allocation82_spill] sm:$0xff] }
 0x340   :  { %6141 = vmatpush1.bf16.msra.mxu1 %v10289_v27  ;;  %6173 = vmatpush1.bf16.msra.mxu0 %v10290_v14  ;;  %v10300_v27 = vld [vmem:[#allocation83_spill] sm:$0xff]  ;;  %v10301_v14 = vld [vmem:[#allocation84_spill] sm:$0xff] }
 0x341   :  { %6143 = vmatprep.subr.bf16.mxu1 %v10291_v59  ;;  %6175 = vmatprep.subr.bf16.mxu0 %v10292_v63  ;;  %v10302_v59 = vld [vmem:[#allocation85_spill] sm:$0xff]  ;;  %v10303_v63 = vld [vmem:[#allocation86_spill] sm:$0xff] }
 0x344   :  { %6145 = vmatpush1.bf16.msra.mxu1 %v10293_v56  ;;  %6177 = vmatpush1.bf16.msra.mxu0 %v10294_v49  ;;  %v10304_v56 = vld [vmem:[#allocation87_spill] sm:$0xff] }
 0x345   :  { %6147 = vmatprep.subr.bf16.mxu1 %v10295_v23  ;;  %6179 = vmatprep.subr.bf16.mxu0 %v10296_v8  ;;  %v722_v8 = vld [vmem:[%s9888_s13] sm:$0xf] }
 0x348   :  { %6149 = vmatpush1.bf16.msra.mxu1 %v10297_v3  ;;  %6181 = vmatpush1.bf16.msra.mxu0 %v10298_v57  ;;  %v8833_v3 = vrot.slane %v722_v8, %v8705_v48  ;;  %v10306_v57 = vld [vmem:[#allocation120_spill] sm:$0xff] }
 0x349   :  { %6151 = vmatprep.subr.bf16.mxu1 %v10299_v47  ;;  %6183 = vmatprep.subr.bf16.mxu0 %v10300_v27  ;;  %v8836_v23 = vrot.slane %v722_v8, %v10306_v57  ;;  %v8845_v57 = vrot.slane %v722_v8, %v8722_v18 }
 0x34a   :  { %10305 = vst [vmem:[#allocation129_spill] sm:$0xff] %v8833_v3 }
 0x34b   :  { %10307 = vst [vmem:[#allocation120_spill] sm:$0xff] %v8836_v23  ;;  %10310 = vst [vmem:[#allocation130_spill] sm:$0xff] %v8845_v57 }
 0x34c   :  { %6153 = vmatpush1.bf16.msra.mxu1 %v10301_v14  ;;  %6185 = vmatpush1.bf16.msra.mxu0 %v10302_v59 }
 0x34d   :  { %6187 = vmatprep.subr.bf16.mxu1 %v10303_v63  ;;  %6219 = vmatprep.subr.bf16.mxu0 %v10304_v56  ;;  %v10308_v56 = vld [vmem:[#allocation121_spill] sm:$0xff] }
 0x34e   :  { %v8841_v17 = vrot.slane %v722_v8, %v10308_v56 }
 0x350   :  { %10309 = vst [vmem:[#allocation121_spill] sm:$0xff] %v8841_v17 }
 0x3e2   :  { %v1151_v47 = vpop.f32.mrb[6].mxu1  ;;  %v1222_v27 = vpop.f32.mrb[8].mxu0 }
 0x3e3   :  { %v1248_v14 = vadd.f32 %v8833_v3, %v1151_v47  ;;  %v1153_v49 = vpop.f32.mrb[7].mxu1  ;;  %v1224_v59 = vpop.f32.mrb[9].mxu0  ;;  %v1250_v0 = vadd.f32 %v8845_v57, %v1222_v27 }
 0x3e4   :  { %v1249_v63 = vadd.f32 %v8836_v23, %v1153_v49  ;;  %v1251_v48 = vadd.f32 %v8841_v17, %v1224_v59 }
 0x3e5   :  { %v5651_v61 = vmul.f32 -1.442695, %v1248_v14 }
 0x3e6   :  { %v5652_v29 = vmul.f32 -1.442695, %v1249_v63  ;;  %v5653_v4 = vmul.f32 -1.442695, %v1251_v48 }
 0x3e7   :  { %7554 = vpow2.f32 %v5651_v61 }
 0x3e8   :  { %7556 = vpow2.f32 %v5652_v29 }
 0x3e9   :  { %7558 = vpow2.f32 %v5653_v4 }
 0x3ea   :  { %7560 = vtanh.f32 %v1250_v0 }
 0x3f1   :  { %v7555_v47 = vpop.eup %7554 }
 0x3f2   :  { %v7557_v3 = vpop.eup %7556  ;;  %v1255_v60 = vadd.f32 1.0, %v7555_v47 }
 0x3f3   :  { %v1261_v49 = vadd.f32 1.0, %v7557_v3  ;;  %v7559_v56 = vpop.eup %7558 }
 0x3f4   :  { %7562 = vrcp.f32 %v1255_v60  ;;  %v7561_v14 = vpop.eup %7560  ;;  %v1268_v59 = vadd.f32 1.0, %v7559_v56 }
 0x3f5   :  { %7564 = vrcp.f32 %v1261_v49  ;;  %v10312_v49 = vld [vmem:[#allocation122_spill] sm:$0xff] }
 0x3f6   :  { %7566 = vrcp.f32 %v1268_v59 }
 0x3fe   :  { %v7563_v61 = vpop.eup %7562 }
 0x3ff   :  { %v7565_v29 = vpop.eup %7564  ;;  %v1272_v63 = vmul.f32 %v7563_v61, %v7561_v14 }
 0x400   :  { %v1271_v17 = vmul.f32 0.0, %v7565_v29 }
 0x402   :  { %v8848_v18 = vadd.f32 %v1272_v63, %v1271_v17  ;;  %v1342_v48 = vpop.f32.mrb[8].mxu1  ;;  %v1413_v8 = vpop.f32.mrb[10].mxu0 }
 0x403   :  { %v1422_v27 = vrot.slane %v1342_v48, 7  ;;  %v1438_v47 = vadd.f32 %v1342_v48, %v8733_v7  ;;  %v1344_v4 = vpop.f32.mrb[9].mxu1  ;;  %v1415_v0 = vpop.f32.mrb[11].mxu0 }
 0x404   :  { %10311 = vst [vmem:[#allocation131_spill] sm:$0xff] %v8848_v18  ;;  %7568 = vtanh.f32 %v8848_v18  ;;  %v1423_v60 = vrot.slane %v1344_v4, 7  ;;  %v1439_v3 = vadd.f32 %v1344_v4, %v8736_v58  ;;  %v1425_v17 = vrot.slane %v1415_v0, 7  ;;  %v7567_v7 = vpop.eup %7566 }
 0x405   :  { %v1434_v57 = vadd.f32 %v1422_v27, %v10312_v49  ;;  %v5655_v14 = vmul.f32 -1.442695, %v1438_v47  ;;  %v1441_v48 = vadd.f32 %v1415_v0, %v8744_v10  ;;  %v1424_v18 = vrot.slane %v1413_v8, 7  ;;  %v10314_v0 = vld [vmem:[#allocation88_spill] sm:$0xff] }
 0x406   :  { %v1435_v56 = vadd.f32 %v1423_v60, %v8730_v45  ;;  %v5657_v29 = vmul.f32 -1.442695, %v1439_v3  ;;  %v1437_v59 = vadd.f32 %v1425_v17, %v8742_v62  ;;  %v1440_v4 = vadd.f32 %v1413_v8, %v8751_v35  ;;  %v10316_v17 = vld [vmem:[#allocation90_spill] sm:$0xff] }
 0x407   :  { %v5654_v61 = vmul.f32 -1.442695, %v1434_v57  ;;  %7570 = vpow2.f32 %v5655_v14  ;;  %v5659_v58 = vmul.f32 -1.442695, %v1441_v48  ;;  %v1436_v3 = vadd.f32 %v1424_v18, %v8747_v41  ;;  %v10318_v48 = vld [vmem:[#allocation92_spill] sm:$0xff] }
 0x408   :  { %v5656_v63 = vmul.f32 -1.442695, %v1435_v56  ;;  %v5658_v47 = vmul.f32 -1.442695, %v1437_v59  ;;  %v10315_v56 = vld [vmem:[#allocation89_spill] sm:$0xff] }
 0x409   :  { %7572 = vpow2.f32 %v5654_v61 }
 0x40a   :  { %7574 = vpow2.f32 %v5656_v63 }
 0x40b   :  { %7576 = vpow2.f32 %v5657_v29 }
 0x40c   :  { %7578 = vtanh.f32 %v1440_v4  ;;  %v10319_v4 = vld [vmem:[#allocation93_spill] sm:$0xff] }
 0x40d   :  { %7580 = vpow2.f32 %v5658_v47  ;;  %v10322_v47 = vld [vmem:[#allocation96_spill] sm:$0xff] }
 0x40e   :  { %v7569_v27 = vpop.eup %7568  ;;  %7582 = vpow2.f32 %v5659_v58  ;;  %v10320_v58 = vld [vmem:[#allocation94_spill] sm:$0xff] }
 0x40f   :  { %v8858_v60 = vmul.f32 %v7569_v27, %v7567_v7  ;;  %v10317_v7 = vld [vmem:[#allocation91_spill] sm:$0xff] }
 0x410   :  { %v10321_v27 = vld [vmem:[#allocation95_spill] sm:$0xff] }
 0x411   :  { %10313 = vst [vmem:[#allocation132_spill] sm:$0xff] %v8858_v60  ;;  %v7571_v57 = vpop.eup %7570  ;;  %1561 = vmatmul.mubr.f32.vlgmr.msra.gmra.mrb[10].mxu1 %v8858_v60  ;;  %1632 = vmatmul.mubr.f32.vlgmr.msra.gmra.mrb[12].mxu0 %v8858_v60 }
 0x412   :  { %v1449_v14 = vadd.f32 1.0, %v7571_v57  ;;  %6189 = vmatpush1.bf16.msra.mxu1 %v10314_v0  ;;  %6221 = vmatpush1.bf16.msra.mxu0 %v10315_v56  ;;  %v10323_v57 = vld [vmem:[#allocation97_spill] sm:$0xff] }
 0x413   :  { %v7573_v8 = vpop.eup %7572  ;;  %6191 = vmatprep.subr.bf16.mxu1 %v10316_v17  ;;  %6223 = vmatprep.subr.bf16.mxu0 %v10317_v7 }
 0x414   :  { %v7575_v61 = vpop.eup %7574  ;;  %v1448_v29 = vadd.f32 1.0, %v7573_v8  ;;  %7584 = vrcp.f32 %v1449_v14  ;;  %1707 = vmatprep.mubr.f32.mxu1 %v10227_v40  ;;  %1778 = vmatprep.mubr.f32.mxu0 %v10227_v40  ;;  %v10324_v8 = vld [vmem:[#allocation98_spill] sm:$0xff] }
 0x415   :  { %v7577_v18 = vpop.eup %7576  ;;  %7586 = vtanh.f32 %v1436_v3  ;;  %v1460_v63 = vadd.f32 1.0, %v7575_v61  ;;  %v10325_v3 = vld [vmem:[#allocation99_spill] sm:$0xff] }
 0x416   :  { %7588 = vrcp.f32 %v1448_v29  ;;  %v1461_v59 = vadd.f32 1.0, %v7577_v18  ;;  %6193 = vmatpush1.bf16.msra.mxu1 %v10318_v48  ;;  %6225 = vmatpush1.bf16.msra.mxu0 %v10319_v4  ;;  %v7579_v14 = vpop.eup %7578  ;;  %v10326_v48 = vld [vmem:[#allocation100_spill] sm:$0xff] }
 0x417   :  { %7590 = vrcp.f32 %v1460_v63  ;;  %6195 = vmatprep.subr.bf16.mxu1 %v10320_v58  ;;  %6227 = vmatprep.subr.bf16.mxu0 %v10321_v27  ;;  %v7581_v61 = vpop.eup %7580  ;;  %v10327_v63 = vld [vmem:[#allocation101_spill] sm:$0xff]  ;;  %v10328_v27 = vld [vmem:[#allocation102_spill] sm:$0xff] }
 0x418   :  { %7592 = vrcp.f32 %v1461_v59  ;;  %v7583_v29 = vpop.eup %7582  ;;  %v10329_v59 = vld [vmem:[#allocation103_spill] sm:$0xff]  ;;  %v1474_v7 = vadd.f32 1.0, %v7581_v61  ;;  %v10344_v61 = vld [vmem:[#allocation22_spill] sm:$0xff] }
 0x419   :  { %v1475_v56 = vadd.f32 1.0, %v7583_v29  ;;  %v10345_v29 = vld [vmem:[#allocation23_spill] sm:$0xff] }
 0x41a   :  { %6197 = vmatpush1.bf16.msra.mxu1 %v10322_v47  ;;  %6229 = vmatpush1.bf16.msra.mxu0 %v10323_v57  ;;  %v1482_v57 = vrot.slane %v8754_v24, 7  ;;  %7594 = vrcp.f32 %v1474_v7  ;;  %v10341_v7 = vld [vmem:[#allocation115_spill] sm:$0xff] }
 0x41b   :  { %6199 = vmatprep.subr.bf16.mxu1 %v10324_v8  ;;  %6231 = vmatprep.subr.bf16.mxu0 %v10325_v3  ;;  %v1483_v3 = vrot.slane %v8756_v46, 7  ;;  %7596 = vrcp.f32 %v1475_v56  ;;  %v10334_v46 = vld [vmem:[#allocation108_spill] sm:$0xff] }
 0x41e   :  { %v7585_v18 = vpop.eup %7584  ;;  %6201 = vmatpush1.bf16.msra.mxu1 %v10326_v48  ;;  %6233 = vmatpush1.bf16.msra.mxu0 %v10327_v63  ;;  %v10330_v48 = vld [vmem:[#allocation104_spill] sm:$0xff]  ;;  %v10331_v63 = vld [vmem:[#allocation105_spill] sm:$0xff] }
 0x41f   :  { %v7587_v58 = vpop.eup %7586  ;;  %v1489_v4 = vmul.f32 %v7585_v18, %v7579_v14  ;;  %6203 = vmatprep.subr.bf16.mxu1 %v10328_v27  ;;  %6235 = vmatprep.subr.bf16.mxu0 %v10329_v59  ;;  %v10332_v18 = vld [vmem:[#allocation106_spill] sm:$0xff]  ;;  %v10333_v27 = vld [vmem:[#allocation107_spill] sm:$0xff] }
 0x420   :  { %v7589_v47 = vpop.eup %7588 }
 0x421   :  { %v7591_v8 = vpop.eup %7590  ;;  %v1488_v17 = vmul.f32 %v7589_v47, %v7587_v58  ;;  %v10335_v58 = vld [vmem:[#allocation109_spill] sm:$0xff]  ;;  %v10336_v47 = vld [vmem:[#allocation110_spill] sm:$0xff] }
 0x422   :  { %v7593_v0 = vpop.eup %7592  ;;  %v1486_v60 = vmul.f32 %v7591_v8, %v1482_v57  ;;  %6205 = vmatpush1.bf16.msra.mxu1 %v10330_v48  ;;  %6237 = vmatpush1.bf16.msra.mxu0 %v10331_v63  ;;  %v10337_v57 = vld [vmem:[#allocation111_spill] sm:$0xff]  ;;  %v10343_v8 = vld [vmem:[#allocation117_spill] sm:$0xff] }
 0x423   :  { %v1487_v14 = vmul.f32 %v7593_v0, %v1483_v3  ;;  %6207 = vmatprep.subr.bf16.mxu1 %v10332_v18  ;;  %6239 = vmatprep.subr.bf16.mxu0 %v10333_v27  ;;  %v10338_v0 = vld [vmem:[#allocation112_spill] sm:$0xff] }
 0x424   :  { %v8887_v59 = vadd.f32 %v1488_v17, %v1486_v60  ;;  %v10339_v60 = vld [vmem:[#allocation113_spill] sm:$0xff]  ;;  %v10340_v17 = vld [vmem:[#allocation114_spill] sm:$0xff]  ;;  %v7595_v56 = vpop.eup %7594 }
 0x425   :  { %v8889_v24 = vadd.f32 %v1489_v4, %v1487_v14  ;;  %v10342_v4 = vld [vmem:[#allocation116_spill] sm:$0xff]  ;;  %v7597_v3 = vpop.eup %7596 }
 0x426   :  { %6209 = vmatpush1.bf16.msra.mxu1 %v10334_v46  ;;  %6241 = vmatpush1.bf16.msra.mxu0 %v10335_v58  ;;  %7598 = vtanh.f32 %v8887_v59 }
 0x427   :  { %6211 = vmatprep.subr.bf16.mxu1 %v10336_v47  ;;  %6243 = vmatprep.subr.bf16.mxu0 %v10337_v57  ;;  %7600 = vtanh.f32 %v8889_v24 }
 0x42a   :  { %6213 = vmatpush1.bf16.msra.mxu1 %v10338_v0  ;;  %6245 = vmatpush1.bf16.msra.mxu0 %v10339_v60 }
 0x42b   :  { %6215 = vmatprep.subr.bf16.mxu1 %v10340_v17  ;;  %6247 = vmatprep.subr.bf16.mxu0 %v10341_v7 }
 0x42e   :  { %6217 = vmatpush1.bf16.msra.mxu1 %v10342_v4  ;;  %6249 = vmatpush1.bf16.msra.mxu0 %v10343_v8 }
 0x42f   :  { %6251 = vmatprep.subr.bf16.mxu1 %v10344_v61  ;;  %6283 = vmatprep.subr.bf16.mxu0 %v10345_v29 }
 0x430   :  { %v7599_v14 = vpop.eup %7598 }
 0x431   :  { %v7601_v57 = vpop.eup %7600  ;;  %v1494_v47 = vmul.f32 %v7599_v14, %v7595_v56  ;;  %v10350_v56 = vld [vmem:[#allocation63_spill] sm:$0xff]  ;;  %v10353_v14 = vld [vmem:[#allocation66_spill] sm:$0xff] }
 0x432   :  { %v1495_v0 = vmul.f32 %v7601_v57, %v7597_v3  ;;  %v10348_v57 = vld [vmem:[#allocation61_spill] sm:$0xff] }
 0x433   :  { %v1640_v58 = vrot.slane %v1494_v47, 1  ;;  %v10347_v47 = vld [vmem:[#allocation60_spill] sm:$0xff]  ;;  %v10352_v3 = vld [vmem:[#allocation65_spill] sm:$0xff] }
 0x435   :  { %v1641_v60 = vsel %vm1082_vm2, %v1495_v0, %v1640_v58  ;;  %v10346_v58 = vld [vmem:[#allocation59_spill] sm:$0xff]  ;;  %v10349_v0 = vld [vmem:[#allocation62_spill] sm:$0xff] }
 0x436   :  { %1708 = vmatmul.mubr.f32.vlgmr.msra.gmra.mrb[10].mxu1 %v1641_v60  ;;  %1779 = vmatmul.mubr.f32.vlgmr.msra.gmra.mrb[12].mxu0 %v1641_v60 }
 0x437   :  { %6253 = vmatpush1.bf16.msra.mxu1 %v8401_v11  ;;  %6285 = vmatpush1.bf16.msra.mxu0 %v8403_v12 }
 0x438   :  { %6255 = vmatprep.subr.bf16.mxu1 %v8405_v20  ;;  %6287 = vmatprep.subr.bf16.mxu0 %v8407_v21 }
 0x439   :  { %1877 = vmatprep.mubr.f32.mxu1 %v10227_v40  ;;  %1948 = vmatprep.mubr.f32.mxu0 %v10227_v40 }
 0x43b   :  { %6257 = vmatpush1.bf16.msra.mxu1 %v8413_v25  ;;  %6289 = vmatpush1.bf16.msra.mxu0 %v8415_v26 }
 0x43c   :  { %6259 = vmatprep.subr.bf16.mxu1 %v8420_v30  ;;  %6291 = vmatprep.subr.bf16.mxu0 %v8422_v31 }
 0x43f   :  { %6261 = vmatpush1.bf16.msra.mxu1 %v8430_v38  ;;  %6293 = vmatpush1.bf16.msra.mxu0 %v8432_v39 }
 0x440   :  { %6263 = vmatprep.subr.bf16.mxu1 %v8436_v42  ;;  %6295 = vmatprep.subr.bf16.mxu0 %v8438_v43 }
 0x443   :  { %6265 = vmatpush1.bf16.msra.mxu1 %v8444_v50  ;;  %6297 = vmatpush1.bf16.msra.mxu0 %v8446_v51 }
 0x444   :  { %6267 = vmatprep.subr.bf16.mxu1 %v8450_v54  ;;  %6299 = vmatprep.subr.bf16.mxu0 %v8452_v55 }
 0x447   :  { %6269 = vmatpush1.bf16.msra.mxu1 %v8456_v1  ;;  %6301 = vmatpush1.bf16.msra.mxu0 %v8458_v2 }
 0x448   :  { %6271 = vmatprep.subr.bf16.mxu1 %v8462_v5  ;;  %6303 = vmatprep.subr.bf16.mxu0 %v8464_v6 }
 0x44b   :  { %6273 = vmatpush1.bf16.msra.mxu1 %v8468_v15  ;;  %6305 = vmatpush1.bf16.msra.mxu0 %v8470_v16 }
 0x44c   :  { %6275 = vmatprep.subr.bf16.mxu1 %v8474_v19  ;;  %6307 = vmatprep.subr.bf16.mxu0 %v8476_v22 }
 0x44f   :  { %6277 = vmatpush1.bf16.msra.mxu1 %v8480_v33  ;;  %6309 = vmatpush1.bf16.msra.mxu0 %v8482_v34  ;;  %v10380_v33 = vld [vmem:[#allocation124_spill] sm:$0xff] }
 0x450   :  { %6279 = vmatprep.subr.bf16.mxu1 %v8486_v36  ;;  %6311 = vmatprep.subr.bf16.mxu0 %v10268_v9 }
 0x453   :  { %6281 = vmatpush1.bf16.msra.mxu1 %v10269_v52  ;;  %6313 = vmatpush1.bf16.msra.mxu0 %v10270_v37 }
 0x454   :  { %6315 = vmatprep.subr.bf16.mxu1 %v10271_v28  ;;  %6347 = vmatprep.subr.bf16.mxu0 %v10272_v32  ;;  %v10375_v32 = vld [vmem:[#allocation129_spill] sm:$0xff] }
 0x456   :  { %1878 = vmatmul.mubr.f32.vlgmr.msra.gmra.mrb[12].mxu1 %v1641_v60  ;;  %1949 = vmatmul.mubr.f32.vlgmr.msra.gmra.mrb[14].mxu0 %v1641_v60  ;;  %v10351_v60 = vld [vmem:[#allocation64_spill] sm:$0xff] }
 0x457   :  { %6317 = vmatpush1.bf16.msra.mxu1 %v10273_v44  ;;  %6349 = vmatpush1.bf16.msra.mxu0 %v10274_v53  ;;  %v10356_v53 = vld [vmem:[#allocation69_spill] sm:$0xff]  ;;  %v10357_v44 = vld [vmem:[#allocation70_spill] sm:$0xff] }
 0x458   :  { %6319 = vmatprep.subr.bf16.mxu1 %v10275_v13  ;;  %6351 = vmatprep.subr.bf16.mxu0 %v10346_v58  ;;  %v10354_v13 = vld [vmem:[#allocation67_spill] sm:$0xff]  ;;  %v10355_v58 = vld [vmem:[#allocation68_spill] sm:$0xff] }
 0x459   :  { %2101 = vmatprep.mubr.f32.mxu1 %v10227_v40  ;;  %2172 = vmatprep.mubr.f32.mxu0 %v10227_v40 }
 0x45b   :  { %6321 = vmatpush1.bf16.msra.mxu1 %v10347_v47  ;;  %6353 = vmatpush1.bf16.msra.mxu0 %v10348_v57  ;;  %v10358_v47 = vld [vmem:[#allocation71_spill] sm:$0xff]  ;;  %v10359_v57 = vld [vmem:[#allocation72_spill] sm:$0xff] }
 0x45c   :  { %6323 = vmatprep.subr.bf16.mxu1 %v10349_v0  ;;  %6355 = vmatprep.subr.bf16.mxu0 %v10350_v56  ;;  %v10360_v0 = vld [vmem:[#allocation73_spill] sm:$0xff]  ;;  %v10361_v56 = vld [vmem:[#allocation74_spill] sm:$0xff] }
 0x45f   :  { %6325 = vmatpush1.bf16.msra.mxu1 %v10351_v60  ;;  %6357 = vmatpush1.bf16.msra.mxu0 %v10352_v3  ;;  %v10362_v60 = vld [vmem:[#allocation75_spill] sm:$0xff]  ;;  %v10363_v3 = vld [vmem:[#allocation76_spill] sm:$0xff] }
 0x460   :  { %6327 = vmatprep.subr.bf16.mxu1 %v10353_v14  ;;  %6359 = vmatprep.subr.bf16.mxu0 %v10354_v13  ;;  %v10364_v14 = vld [vmem:[#allocation77_spill] sm:$0xff]  ;;  %v10365_v13 = vld [vmem:[#allocation78_spill] sm:$0xff] }
 0x463   :  { %6329 = vmatpush1.bf16.msra.mxu1 %v10355_v58  ;;  %6361 = vmatpush1.bf16.msra.mxu0 %v10356_v53  ;;  %v10366_v58 = vld [vmem:[#allocation79_spill] sm:$0xff]  ;;  %v10367_v53 = vld [vmem:[#allocation80_spill] sm:$0xff] }
 0x464   :  { %6331 = vmatprep.subr.bf16.mxu1 %v10357_v44  ;;  %6363 = vmatprep.subr.bf16.mxu0 %v10358_v47  ;;  %v10368_v44 = vld [vmem:[#allocation81_spill] sm:$0xff]  ;;  %v10369_v47 = vld [vmem:[#allocation82_spill] sm:$0xff] }
 0x467   :  { %6333 = vmatpush1.bf16.msra.mxu1 %v10359_v57  ;;  %6365 = vmatpush1.bf16.msra.mxu0 %v10360_v0  ;;  %v10370_v57 = vld [vmem:[#allocation83_spill] sm:$0xff]  ;;  %v10371_v0 = vld [vmem:[#allocation84_spill] sm:$0xff] }
 0x468   :  { %6335 = vmatprep.subr.bf16.mxu1 %v10361_v56  ;;  %6367 = vmatprep.subr.bf16.mxu0 %v10362_v60  ;;  %v10372_v56 = vld [vmem:[#allocation85_spill] sm:$0xff]  ;;  %v10373_v60 = vld [vmem:[#allocation86_spill] sm:$0xff] }
 0x46b   :  { %6337 = vmatpush1.bf16.msra.mxu1 %v10363_v3  ;;  %6369 = vmatpush1.bf16.msra.mxu0 %v10364_v14  ;;  %v10374_v3 = vld [vmem:[#allocation87_spill] sm:$0xff] }
 0x46c   :  { %6339 = vmatprep.subr.bf16.mxu1 %v10365_v13  ;;  %6371 = vmatprep.subr.bf16.mxu0 %v10366_v58 }
 0x46f   :  { %6341 = vmatpush1.bf16.msra.mxu1 %v10367_v53  ;;  %6373 = vmatpush1.bf16.msra.mxu0 %v10368_v44 }
 0x470   :  { %6343 = vmatprep.subr.bf16.mxu1 %v10369_v47  ;;  %6375 = vmatprep.subr.bf16.mxu0 %v10370_v57  ;;  %v10376_v57 = vld [vmem:[#allocation130_spill] sm:$0xff] }
 0x473   :  { %6345 = vmatpush1.bf16.msra.mxu1 %v10371_v0  ;;  %6377 = vmatpush1.bf16.msra.mxu0 %v10372_v56 }
 0x474   :  { %6379 = vmatprep.subr.bf16.mxu1 %v10373_v60  ;;  %6411 = vmatprep.subr.bf16.mxu0 %v10374_v3  ;;  %v10377_v3 = vld [vmem:[#allocation121_spill] sm:$0xff] }
 0x509   :  { %v1709_v14 = vpop.f32.mrb[10].mxu1  ;;  %v1780_v13 = vpop.f32.mrb[12].mxu0 }
 0x50a   :  { %v1785_v58 = vadd.f32 %v1709_v14, %v10375_v32  ;;  %v1711_v28 = vpop.f32.mrb[11].mxu1  ;;  %v1782_v53 = vpop.f32.mrb[13].mxu0  ;;  %v1787_v0 = vadd.f32 %v1780_v13, %v10376_v57 }
 0x50b   :  { %v1786_v44 = vadd.f32 %v1711_v28, %v8836_v23  ;;  %v1788_v36 = vadd.f32 %v1782_v53, %v10377_v3 }
 0x50c   :  { %v5660_v37 = vmul.f32 -1.442695, %v1785_v58 }
 0x50d   :  { %v5661_v47 = vmul.f32 -1.442695, %v1786_v44  ;;  %v5662_v14 = vmul.f32 -1.442695, %v1788_v36  ;;  %v10378_v44 = vld [vmem:[#allocation131_spill] sm:$0xff] }
 0x50e   :  { %7602 = vpow2.f32 %v5660_v37  ;;  %v10379_v36 = vld [vmem:[#allocation123_spill] sm:$0xff] }
 0x50f   :  { %7604 = vpow2.f32 %v5661_v47 }
 0x510   :  { %7606 = vtanh.f32 %v1787_v0 }
 0x518   :  { %v7603_v52 = vpop.eup %7602 }
 0x519   :  { %v7605_v56 = vpop.eup %7604  ;;  %v1792_v9 = vadd.f32 1.0, %v7603_v52 }
 0x51a   :  { %v1798_v60 = vadd.f32 1.0, %v7605_v56  ;;  %v7607_v32 = vpop.eup %7606 }
 0x51b   :  { %7608 = vrcp.f32 %v1792_v9 }
 0x51c   :  { %7610 = vrcp.f32 %v1798_v60 }
 0x51d   :  { %7612 = vpow2.f32 %v5662_v14 }
 0x525   :  { %v7609_v34 = vpop.eup %7608 }
 0x526   :  { %v7611_v28 = vpop.eup %7610  ;;  %v1809_v58 = vmul.f32 %v7609_v34, %v7607_v32 }
 0x527   :  { %v1808_v37 = vmul.f32 %v7611_v28, %v10378_v44  ;;  %v7613_v32 = vpop.eup %7612 }
 0x528   :  { %v1805_v19 = vadd.f32 1.0, %v7613_v32  ;;  %v10381_v32 = vld [vmem:[#allocation118_spill] sm:$0xff] }
 0x529   :  { %v8979_v47 = vadd.f32 %v1809_v58, %v1808_v37  ;;  %v1879_v13 = vpop.f32.mrb[12].mxu1  ;;  %v1950_v57 = vpop.f32.mrb[14].mxu0 }
 0x52a   :  { %v1959_v23 = vrot.slane %v1879_v13, 6  ;;  %v1963_v52 = vrot.slane %v1879_v13, 7  ;;  %v1881_v0 = vpop.f32.mrb[13].mxu1  ;;  %v1952_v56 = vpop.f32.mrb[15].mxu0  ;;  %v1961_v16 = vrot.slane %v1950_v57, 6 }
 0x52b   :  { %v1960_v9 = vrot.slane %v1881_v0, 6  ;;  %v1964_v60 = vrot.slane %v1881_v0, 7  ;;  %v1962_v22 = vrot.slane %v1952_v56, 6  ;;  %v1966_v13 = vrot.slane %v1952_v56, 7 }
 0x52c   :  { %v1975_v53 = vadd.f32 %v1959_v23, %v10312_v49  ;;  %v1979_v3 = vadd.f32 %v1963_v52, %v10379_v36  ;;  %v1965_v0 = vrot.slane %v1950_v57, 7  ;;  %v8108_v23 = vmov 1966171168  }
 0x52d   :  { %v1976_v14 = vadd.f32 %v1960_v9, %v8730_v45  ;;  %v1980_v34 = vadd.f32 %v1964_v60, %v10380_v33  ;;  %v5067_v49 = vunpack.c.l.s4 %v8108_v23  ;;  %v1978_v52 = vadd.f32 %v1962_v22, %v8742_v62  ;;  %v10390_v62 = vld [vmem:[#allocation94_spill] sm:$0xff] }
 0x52e   :  { %v5663_v28 = vmul.f32 -1.442695, %v1975_v53  ;;  %v5664_v58 = vmul.f32 -1.442695, %v1979_v3  ;;  %v1982_v9 = vadd.f32 %v1966_v13, %v8744_v10  ;;  %v1977_v3 = vadd.f32 %v1961_v16, %v8747_v41  ;;  %v10382_v13 = vld [vmem:[#allocation132_spill] sm:$0xff] }
 0x52f   :  { %v5665_v44 = vmul.f32 -1.442695, %v1976_v14  ;;  %v5666_v37 = vmul.f32 -1.442695, %v1980_v34  ;;  %v1981_v60 = vadd.f32 %v1965_v0, %v8751_v35  ;;  %v5068_v56 = vunpack.c.0.s8 %v5067_v49  ;;  %v10389_v35 = vld [vmem:[#allocation93_spill] sm:$0xff] }
 0x530   :  { %7614 = vpow2.f32 %v5663_v28  ;;  %v5667_v53 = vmul.f32 -1.442695, %v1978_v52  ;;  %v5668_v14 = vmul.f32 -1.442695, %v1982_v9 }
 0x531   :  { %7616 = vpow2.f32 %v5664_v58  ;;  %v8991_v28 = vsub.s32 %v5068_v56, %v10381_v32 }
 0x532   :  { %7618 = vpow2.f32 %v5665_v44 }
 0x533   :  { %7620 = vpow2.f32 %v5666_v37  ;;  %v5072_v0 = vrot.slane %v10382_v13, %v8991_v28  ;;  %v10387_v13 = vld [vmem:[#allocation119_spill] sm:$0xff] }
 0x534   :  { %7622 = vrcp.f32 %v1805_v19 }
 0x535   :  { %7624 = vtanh.f32 %v8979_v47 }
 0x536   :  { %7626 = vtanh.f32 %v1977_v3  ;;  %v5073_v3 = vcombine.high %v5072_v0, %v5072_v0 }
 0x537   :  { %7628 = vtanh.f32 %v1981_v60 }
 0x538   :  { %7630 = vpow2.f32 %v5667_v53  ;;  %v10383_v53 = vld [vmem:[#allocation88_spill] sm:$0xff] }
 0x539   :  { %7632 = vpow2.f32 %v5668_v14  ;;  %v10384_v14 = vld [vmem:[#allocation89_spill] sm:$0xff] }
 0x53a   :  { %v7615_v57 = vpop.eup %7614 }
 0x53b   :  { %v7617_v34 = vpop.eup %7616  ;;  %v1989_v22 = vadd.f32 1.0, %v7615_v57 }
 0x53c   :  { %v7619_v58 = vpop.eup %7618  ;;  %v1990_v19 = vadd.f32 1.0, %v7617_v34 }
 0x53d   :  { %v7621_v16 = vpop.eup %7620  ;;  %7634 = vrcp.f32 %v1989_v22  ;;  %v2001_v44 = vadd.f32 1.0, %v7619_v58  ;;  %v10385_v22 = vld [vmem:[#allocation90_spill] sm:$0xff]  ;;  %v10386_v58 = vld [vmem:[#allocation91_spill] sm:$0xff] }
 0x53e   :  { %7636 = vrcp.f32 %v1990_v19  ;;  %v2002_v37 = vadd.f32 1.0, %v7621_v16  ;;  %v7623_v49 = vpop.eup %7622 }
 0x53f   :  { %7638 = vrcp.f32 %v2001_v44  ;;  %v7625_v23 = vpop.eup %7624  ;;  %v5080_v44 = vrot.slane %v5072_v0, %v8991_v28 }
 0x540   :  { %7640 = vrcp.f32 %v2002_v37  ;;  %v1812_v52 = vmul.f32 %v7625_v23, %v7623_v49  ;;  %v7627_v9 = vpop.eup %7626  ;;  %v5087_v37 = vrot.slane %v5073_v3, %v8991_v28 }
 0x541   :  { %v7629_v56 = vpop.eup %7628 }
 0x542   :  { %2102 = vmatmul.mubr.f32.vlgmr.msra.gmra.mrb[14].mxu1 %v1812_v52  ;;  %v5097_v60 = vrot.slane %v1812_v52, %v8991_v28  ;;  %2173 = vmatmul.mubr.f32.vlgmr.msra.gmra.mrb[16].mxu0 %v1812_v52  ;;  %v7631_v57 = vpop.eup %7630 }
 0x543   :  { %6381 = vmatpush1.bf16.msra.mxu1 %v10383_v53  ;;  %6413 = vmatpush1.bf16.msra.mxu0 %v10384_v14  ;;  %v7633_v19 = vpop.eup %7632  ;;  %v2015_v14 = vadd.f32 1.0, %v7631_v57  ;;  %v10388_v53 = vld [vmem:[#allocation92_spill] sm:$0xff] }
 0x544   :  { %v5098_v34 = vcombine.high %v5097_v60, %v5097_v60  ;;  %v5105_v32 = vrot.slane %v5097_v60, %v8991_v28  ;;  %6383 = vmatprep.subr.bf16.mxu1 %v10385_v22  ;;  %6415 = vmatprep.subr.bf16.mxu0 %v10386_v58  ;;  %v2023_v22 = vrot.slane %v8887_v59, 7  ;;  %v2024_v58 = vrot.slane %v8889_v24, 7 }
 0x545   :  { %2249 = vmatprep.mubr.f32.mxu1 %v10227_v40  ;;  %2320 = vmatprep.mubr.f32.mxu0 %v10227_v40  ;;  %v2016_v0 = vadd.f32 1.0, %v7633_v19  ;;  %7642 = vrcp.f32 %v2015_v14  ;;  %v10393_v19 = vld [vmem:[#allocation97_spill] sm:$0xff]  ;;  %v10398_v14 = vld [vmem:[#allocation102_spill] sm:$0xff] }
 0x546   :  { %v5112_v49 = vrot.slane %v5098_v34, %v8991_v28  ;;  %v5254_v23 = vrot.slane %v5105_v32, %v10387_v13  ;;  %v10391_v34 = vld [vmem:[#allocation95_spill] sm:$0xff] }
 0x547   :  { %v7635_v16 = vpop.eup %7634  ;;  %6385 = vmatpush1.bf16.msra.mxu1 %v10388_v53  ;;  %6417 = vmatpush1.bf16.msra.mxu0 %v10389_v35  ;;  %7644 = vrcp.f32 %v2016_v0 }
 0x548   :  { %v7637_v52 = vpop.eup %7636  ;;  %v2029_v60 = vmul.f32 %v7635_v16, %v7627_v9  ;;  %v5258_v3 = vrot.slane %v5112_v49, %v10387_v13  ;;  %6387 = vmatprep.subr.bf16.mxu1 %v10390_v62  ;;  %6419 = vmatprep.subr.bf16.mxu0 %v10391_v34  ;;  %v9015_v9 = vsel %vm5321_vm3, %v5080_v44, %v5254_v23  ;;  %v10395_v44 = vld [vmem:[#allocation99_spill] sm:$0xff] }
 0x549   :  { %v7639_v41 = vpop.eup %7638  ;;  %v2030_v10 = vmul.f32 %v7637_v52, %v7629_v56  ;;  %v10392_v56 = vld [vmem:[#allocation96_spill] sm:$0xff]  ;;  %v10394_v52 = vld [vmem:[#allocation98_spill] sm:$0xff] }
 0x54a   :  { %v7641_v59 = vpop.eup %7640  ;;  %v2027_v32 = vmul.f32 %v7639_v41, %v2023_v22  ;;  %v9018_v57 = vsel %vm5321_vm3, %v5087_v37, %v5258_v3  ;;  %v10396_v41 = vld [vmem:[#allocation100_spill] sm:$0xff]  ;;  %v10397_v22 = vld [vmem:[#allocation101_spill] sm:$0xff]  ;;  %v10401_v3 = vld [vmem:[#allocation110_spill] sm:$0xff] }
 0x54b   :  { %v2028_v24 = vmul.f32 %v7641_v59, %v2024_v58  ;;  %6389 = vmatpush1.bf16.msra.mxu1 %v10392_v56  ;;  %6421 = vmatpush1.bf16.msra.mxu0 %v10393_v19  ;;  %v10399_v58 = vld [vmem:[#allocation103_spill] sm:$0xff] }
 0x54c   :  { %v9020_v16 = vadd.f32 %v2029_v60, %v2027_v32  ;;  %6391 = vmatprep.subr.bf16.mxu1 %v10394_v52  ;;  %6423 = vmatprep.subr.bf16.mxu0 %v10395_v44  ;;  %v10400_v60 = vld [vmem:[#allocation109_spill] sm:$0xff]  ;;  %v10402_v59 = vld [vmem:[#allocation111_spill] sm:$0xff] }
 0x54d   :  { %v9024_v49 = vadd.f32 %v2030_v10, %v2028_v24 }
 0x54e   :  { %7646 = vtanh.f32 %v9020_v16 }
 0x54f   :  { %7648 = vtanh.f32 %v9024_v49  ;;  %6393 = vmatpush1.bf16.msra.mxu1 %v10396_v41  ;;  %6425 = vmatpush1.bf16.msra.mxu0 %v10397_v22  ;;  %v7643_v10 = vpop.eup %7642 }
 0x550   :  { %6395 = vmatprep.subr.bf16.mxu1 %v10398_v14  ;;  %6427 = vmatprep.subr.bf16.mxu0 %v10399_v58 }
 0x551   :  { %v7645_v37 = vpop.eup %7644 }
 0x553   :  { %6397 = vmatpush1.bf16.msra.mxu1 %v10330_v48  ;;  %6429 = vmatpush1.bf16.msra.mxu0 %v10331_v63  ;;  %v10403_v63 = vld [vmem:[#allocation112_spill] sm:$0xff] }
 0x554   :  { %6399 = vmatprep.subr.bf16.mxu1 %v10332_v18  ;;  %6431 = vmatprep.subr.bf16.mxu0 %v10333_v27  ;;  %v10404_v18 = vld [vmem:[#allocation113_spill] sm:$0xff] }
 0x557   :  { %6401 = vmatpush1.bf16.msra.mxu1 %v10334_v46  ;;  %6433 = vmatpush1.bf16.msra.mxu0 %v10400_v60 }
 0x558   :  { %v7647_v23 = vpop.eup %7646  ;;  %6403 = vmatprep.subr.bf16.mxu1 %v10401_v3  ;;  %6435 = vmatprep.subr.bf16.mxu0 %v10402_v59 }
 0x559   :  { %v7649_v0 = vpop.eup %7648  ;;  %v2035_v32 = vmul.f32 %v7647_v23, %v7643_v10  ;;  %v10407_v10 = vld [vmem:[#allocation47_spill] sm:$0xff]  ;;  %v10409_v23 = vld [vmem:[#allocation49_spill] sm:$0xff] }
 0x55a   :  { %v2036_v24 = vmul.f32 %v7649_v0, %v7645_v37  ;;  %v10408_v37 = vld [vmem:[#allocation48_spill] sm:$0xff]  ;;  %v10410_v0 = vld [vmem:[#allocation50_spill] sm:$0xff] }
 0x55b   :  { %v2181_v48 = vrot.slane %v2035_v32, 2  ;;  %6405 = vmatpush1.bf16.msra.mxu1 %v10403_v63  ;;  %6437 = vmatpush1.bf16.msra.mxu0 %v10404_v18  ;;  %v10411_v32 = vld [vmem:[#allocation51_spill] sm:$0xff] }
 0x55c   :  { %v2182_v27 = vrot.slane %v2036_v24, 1  ;;  %6407 = vmatprep.subr.bf16.mxu1 %v10340_v17  ;;  %6439 = vmatprep.subr.bf16.mxu0 %v10341_v7  ;;  %v10412_v24 = vld [vmem:[#allocation52_spill] sm:$0xff] }
 0x55e   :  { %v2183_v46 = vsel %vm1082_vm2, %v2182_v27, %v2181_v48  ;;  %v10405_v48 = vld [vmem:[#allocation45_spill] sm:$0xff]  ;;  %v10406_v27 = vld [vmem:[#allocation46_spill] sm:$0xff] }
 0x55f   :  { %6409 = vmatpush1.bf16.msra.mxu1 %v10342_v4  ;;  %6441 = vmatpush1.bf16.msra.mxu0 %v10343_v8 }
 0x560   :  { %6443 = vmatprep.subr.bf16.mxu1 %v10344_v61  ;;  %6475 = vmatprep.subr.bf16.mxu0 %v10345_v29 }
 0x562   :  { %2250 = vmatmul.mubr.f32.vlgmr.msra.gmra.mrb[14].mxu1 %v2183_v46  ;;  %2321 = vmatmul.mubr.f32.vlgmr.msra.gmra.mrb[16].mxu0 %v2183_v46 }
 0x563   :  { %6445 = vmatpush1.bf16.msra.mxu1 %v8401_v11  ;;  %6477 = vmatpush1.bf16.msra.mxu0 %v8403_v12 }
 0x564   :  { %6447 = vmatprep.subr.bf16.mxu1 %v8405_v20  ;;  %6479 = vmatprep.subr.bf16.mxu0 %v8407_v21 }
 0x565   :  { %2419 = vmatprep.mubr.f32.mxu1 %v10227_v40  ;;  %2490 = vmatprep.mubr.f32.mxu0 %v10227_v40 }
 0x567   :  { %6449 = vmatpush1.bf16.msra.mxu1 %v8413_v25  ;;  %6481 = vmatpush1.bf16.msra.mxu0 %v8415_v26 }
 0x568   :  { %6451 = vmatprep.subr.bf16.mxu1 %v8420_v30  ;;  %6483 = vmatprep.subr.bf16.mxu0 %v8422_v31 }
 0x56b   :  { %6453 = vmatpush1.bf16.msra.mxu1 %v8430_v38  ;;  %6485 = vmatpush1.bf16.msra.mxu0 %v8432_v39 }
 0x56c   :  { %6455 = vmatprep.subr.bf16.mxu1 %v8436_v42  ;;  %6487 = vmatprep.subr.bf16.mxu0 %v8438_v43 }
 0x56f   :  { %6457 = vmatpush1.bf16.msra.mxu1 %v8444_v50  ;;  %6489 = vmatpush1.bf16.msra.mxu0 %v8446_v51 }
 0x570   :  { %6459 = vmatprep.subr.bf16.mxu1 %v8450_v54  ;;  %6491 = vmatprep.subr.bf16.mxu0 %v8452_v55 }
 0x573   :  { %6461 = vmatpush1.bf16.msra.mxu1 %v8456_v1  ;;  %6493 = vmatpush1.bf16.msra.mxu0 %v8458_v2  ;;  %v10449_v1 = vld [vmem:[#allocation120_spill] sm:$0xff] }
 0x574   :  { %6463 = vmatprep.subr.bf16.mxu1 %v8462_v5  ;;  %6495 = vmatprep.subr.bf16.mxu0 %v8464_v6  ;;  %v10413_v5 = vld [vmem:[#allocation53_spill] sm:$0xff]  ;;  %v10414_v6 = vld [vmem:[#allocation54_spill] sm:$0xff] }
 0x577   :  { %6465 = vmatpush1.bf16.msra.mxu1 %v8468_v15  ;;  %6497 = vmatpush1.bf16.msra.mxu0 %v10405_v48  ;;  %v10415_v15 = vld [vmem:[#allocation55_spill] sm:$0xff]  ;;  %v10448_v48 = vld [vmem:[#allocation129_spill] sm:$0xff] }
 0x578   :  { %6467 = vmatprep.subr.bf16.mxu1 %v10406_v27  ;;  %6499 = vmatprep.subr.bf16.mxu0 %v10407_v10  ;;  %v10416_v27 = vld [vmem:[#allocation56_spill] sm:$0xff]  ;;  %v10417_v10 = vld [vmem:[#allocation57_spill] sm:$0xff] }
 0x57b   :  { %6469 = vmatpush1.bf16.msra.mxu1 %v10408_v37  ;;  %6501 = vmatpush1.bf16.msra.mxu0 %v10409_v23  ;;  %v10418_v37 = vld [vmem:[#allocation58_spill] sm:$0xff]  ;;  %v10419_v23 = vld [vmem:[#allocation59_spill] sm:$0xff] }
 0x57c   :  { %6471 = vmatprep.subr.bf16.mxu1 %v10410_v0  ;;  %6503 = vmatprep.subr.bf16.mxu0 %v10411_v32  ;;  %v10429_v32 = vld [vmem:[#allocation69_spill] sm:$0xff]  ;;  %v10430_v0 = vld [vmem:[#allocation70_spill] sm:$0xff] }
 0x57f   :  { %6473 = vmatpush1.bf16.msra.mxu1 %v10412_v24  ;;  %6505 = vmatpush1.bf16.msra.mxu0 %v10413_v5  ;;  %v10420_v24 = vld [vmem:[#allocation60_spill] sm:$0xff]  ;;  %v10421_v5 = vld [vmem:[#allocation61_spill] sm:$0xff] }
 0x580   :  { %6507 = vmatprep.subr.bf16.mxu1 %v10414_v6  ;;  %6539 = vmatprep.subr.bf16.mxu0 %v10415_v15  ;;  %v10422_v6 = vld [vmem:[#allocation62_spill] sm:$0xff]  ;;  %v10423_v15 = vld [vmem:[#allocation63_spill] sm:$0xff] }
 0x582   :  { %2420 = vmatmul.mubr.f32.vlgmr.msra.gmra.mrb[16].mxu1 %v2183_v46  ;;  %2491 = vmatmul.mubr.f32.vlgmr.msra.gmra.mrb[18].mxu0 %v2183_v46  ;;  %v10424_v46 = vld [vmem:[#allocation64_spill] sm:$0xff] }
 0x583   :  { %6509 = vmatpush1.bf16.msra.mxu1 %v10416_v27  ;;  %6541 = vmatpush1.bf16.msra.mxu0 %v10417_v10  ;;  %v10425_v27 = vld [vmem:[#allocation65_spill] sm:$0xff]  ;;  %v10426_v10 = vld [vmem:[#allocation66_spill] sm:$0xff] }
 0x584   :  { %6511 = vmatprep.subr.bf16.mxu1 %v10418_v37  ;;  %6543 = vmatprep.subr.bf16.mxu0 %v10419_v23  ;;  %v10427_v37 = vld [vmem:[#allocation67_spill] sm:$0xff]  ;;  %v10428_v23 = vld [vmem:[#allocation68_spill] sm:$0xff] }
 0x585   :  { %2643 = vmatprep.mubr.f32.mxu1 %v10227_v40  ;;  %2714 = vmatprep.mubr.f32.mxu0 %v10227_v40 }
 0x587   :  { %6513 = vmatpush1.bf16.msra.mxu1 %v10420_v24  ;;  %6545 = vmatpush1.bf16.msra.mxu0 %v10421_v5  ;;  %v10431_v24 = vld [vmem:[#allocation71_spill] sm:$0xff]  ;;  %v10432_v5 = vld [vmem:[#allocation72_spill] sm:$0xff] }
 0x588   :  { %6515 = vmatprep.subr.bf16.mxu1 %v10422_v6  ;;  %6547 = vmatprep.subr.bf16.mxu0 %v10423_v15  ;;  %v10433_v6 = vld [vmem:[#allocation73_spill] sm:$0xff]  ;;  %v10434_v15 = vld [vmem:[#allocation74_spill] sm:$0xff] }
 0x58b   :  { %6517 = vmatpush1.bf16.msra.mxu1 %v10424_v46  ;;  %6549 = vmatpush1.bf16.msra.mxu0 %v10425_v27  ;;  %v10435_v46 = vld [vmem:[#allocation75_spill] sm:$0xff]  ;;  %v10436_v27 = vld [vmem:[#allocation76_spill] sm:$0xff] }
 0x58c   :  { %6519 = vmatprep.subr.bf16.mxu1 %v10426_v10  ;;  %6551 = vmatprep.subr.bf16.mxu0 %v10427_v37  ;;  %v10437_v10 = vld [vmem:[#allocation77_spill] sm:$0xff]  ;;  %v10438_v37 = vld [vmem:[#allocation78_spill] sm:$0xff] }
 0x58f   :  { %6521 = vmatpush1.bf16.msra.mxu1 %v10428_v23  ;;  %6553 = vmatpush1.bf16.msra.mxu0 %v10429_v32  ;;  %v10439_v23 = vld [vmem:[#allocation79_spill] sm:$0xff]  ;;  %v10440_v32 = vld [vmem:[#allocation80_spill] sm:$0xff] }
 0x590   :  { %6523 = vmatprep.subr.bf16.mxu1 %v10430_v0  ;;  %6555 = vmatprep.subr.bf16.mxu0 %v10431_v24  ;;  %v10441_v0 = vld [vmem:[#allocation81_spill] sm:$0xff]  ;;  %v10442_v24 = vld [vmem:[#allocation82_spill] sm:$0xff] }
 0x593   :  { %6525 = vmatpush1.bf16.msra.mxu1 %v10432_v5  ;;  %6557 = vmatpush1.bf16.msra.mxu0 %v10433_v6  ;;  %v10443_v5 = vld [vmem:[#allocation83_spill] sm:$0xff]  ;;  %v10444_v6 = vld [vmem:[#allocation84_spill] sm:$0xff] }
 0x594   :  { %6527 = vmatprep.subr.bf16.mxu1 %v10434_v15  ;;  %6559 = vmatprep.subr.bf16.mxu0 %v10435_v46  ;;  %v10445_v15 = vld [vmem:[#allocation85_spill] sm:$0xff]  ;;  %v10446_v46 = vld [vmem:[#allocation86_spill] sm:$0xff] }
 0x597   :  { %6529 = vmatpush1.bf16.msra.mxu1 %v10436_v27  ;;  %6561 = vmatpush1.bf16.msra.mxu0 %v10437_v10  ;;  %v10447_v27 = vld [vmem:[#allocation87_spill] sm:$0xff] }
 0x598   :  { %6531 = vmatprep.subr.bf16.mxu1 %v10438_v37  ;;  %6563 = vmatprep.subr.bf16.mxu0 %v10439_v23 }
 0x59b   :  { %6533 = vmatpush1.bf16.msra.mxu1 %v10440_v32  ;;  %6565 = vmatpush1.bf16.msra.mxu0 %v10441_v0 }
 0x59c   :  { %6535 = vmatprep.subr.bf16.mxu1 %v10442_v24  ;;  %6567 = vmatprep.subr.bf16.mxu0 %v10443_v5  ;;  %v10450_v5 = vld [vmem:[#allocation130_spill] sm:$0xff] }
 0x59f   :  { %6537 = vmatpush1.bf16.msra.mxu1 %v10444_v6  ;;  %6569 = vmatpush1.bf16.msra.mxu0 %v10445_v15 }
 0x5a0   :  { %6571 = vmatprep.subr.bf16.mxu1 %v10446_v46  ;;  %6603 = vmatprep.subr.bf16.mxu0 %v10447_v27  ;;  %v10451_v27 = vld [vmem:[#allocation121_spill] sm:$0xff] }
 0x635   :  { %v2251_v10 = vpop.f32.mrb[14].mxu1  ;;  %v2322_v37 = vpop.f32.mrb[16].mxu0 }
 0x636   :  { %v2327_v23 = vadd.f32 %v2251_v10, %v10448_v48  ;;  %v2253_v2 = vpop.f32.mrb[15].mxu1  ;;  %v2324_v32 = vpop.f32.mrb[17].mxu0  ;;  %v2329_v6 = vadd.f32 %v2322_v37, %v10450_v5 }
 0x637   :  { %v2328_v0 = vadd.f32 %v2253_v2, %v10449_v1  ;;  %v2330_v50 = vadd.f32 %v2324_v32, %v10451_v27  ;;  %v10452_v1 = vld [vmem:[#allocation122_spill] sm:$0xff] }
 0x638   :  { %v5669_v55 = vmul.f32 -1.442695, %v2327_v23 }
 0x639   :  { %v5670_v24 = vmul.f32 -1.442695, %v2328_v0  ;;  %v5671_v10 = vmul.f32 -1.442695, %v2330_v50 }
 0x63a   :  { %7650 = vpow2.f32 %v5669_v55 }
 0x63b   :  { %7652 = vpow2.f32 %v5670_v24 }
 0x63c   :  { %7654 = vtanh.f32 %v2329_v6 }
 0x644   :  { %v7651_v54 = vpop.eup %7650 }
 0x645   :  { %v7653_v15 = vpop.eup %7652  ;;  %v2334_v51 = vadd.f32 1.0, %v7651_v54 }
 0x646   :  { %v2340_v46 = vadd.f32 1.0, %v7653_v15  ;;  %v7655_v48 = vpop.eup %7654 }
 0x647   :  { %7656 = vrcp.f32 %v2334_v51 }
 0x648   :  { %7658 = vrcp.f32 %v2340_v46 }
 0x649   :  { %7660 = vpow2.f32 %v5671_v10 }
 0x651   :  { %v7657_v43 = vpop.eup %7656 }
 0x652   :  { %v7659_v2 = vpop.eup %7658  ;;  %v2351_v23 = vmul.f32 %v7657_v43, %v7655_v48 }
 0x653   :  { %v2350_v55 = vmul.f32 %v7659_v2, %v8979_v47  ;;  %v7661_v48 = vpop.eup %7660 }
 0x654   :  { %v2347_v42 = vadd.f32 1.0, %v7661_v48 }
 0x655   :  { %v9124_v0 = vadd.f32 %v2351_v23, %v2350_v55  ;;  %v2421_v37 = vpop.f32.mrb[16].mxu1  ;;  %v2492_v24 = vpop.f32.mrb[18].mxu0 }
 0x656   :  { %v2501_v5 = vrot.slane %v2421_v37, 5  ;;  %v2505_v54 = vrot.slane %v2421_v37, 6  ;;  %v2423_v6 = vpop.f32.mrb[17].mxu1  ;;  %v2494_v15 = vpop.f32.mrb[19].mxu0  ;;  %v2503_v39 = vrot.slane %v2492_v24, 5 }
 0x657   :  { %v2502_v51 = vrot.slane %v2423_v6, 5  ;;  %v2506_v46 = vrot.slane %v2423_v6, 6  ;;  %v2504_v27 = vrot.slane %v2494_v15, 5  ;;  %v2508_v37 = vrot.slane %v2494_v15, 6 }
 0x658   :  { %v2517_v32 = vadd.f32 %v2501_v5, %v10452_v1  ;;  %v2521_v50 = vadd.f32 %v2505_v54, %v10379_v36  ;;  %v2507_v6 = vrot.slane %v2492_v24, 6  ;;  %v10453_v5 = vld [vmem:[#allocation125_spill] sm:$0xff]  ;;  %v10454_v36 = vld [vmem:[#allocation126_spill] sm:$0xff] }
 0x659   :  { %v2518_v10 = vadd.f32 %v2502_v51, %v8730_v45  ;;  %v2522_v43 = vadd.f32 %v2506_v46, %v10380_v33  ;;  %v2520_v54 = vadd.f32 %v2504_v27, %v10453_v5  ;;  %v2524_v51 = vadd.f32 %v2508_v37, %v10454_v36  ;;  %v10455_v46 = vld [vmem:[#allocation127_spill] sm:$0xff] }
 0x65a   :  { %v5672_v47 = vmul.f32 -1.442695, %v2517_v32  ;;  %v5673_v2 = vmul.f32 -1.442695, %v2521_v50  ;;  %v2519_v33 = vadd.f32 %v2503_v39, %v10455_v46  ;;  %v10456_v32 = vld [vmem:[#allocation128_spill] sm:$0xff] }
 0x65b   :  { %v5674_v23 = vmul.f32 -1.442695, %v2518_v10  ;;  %v5675_v55 = vmul.f32 -1.442695, %v2522_v43  ;;  %v2523_v50 = vadd.f32 %v2507_v6, %v10456_v32  ;;  %v5676_v10 = vmul.f32 -1.442695, %v2520_v54 }
 0x65c   :  { %7662 = vpow2.f32 %v5672_v47  ;;  %v5677_v43 = vmul.f32 -1.442695, %v2524_v51  ;;  %v10457_v51 = vld [vmem:[#allocation88_spill] sm:$0xff] }
 0x65d   :  { %7664 = vpow2.f32 %v5673_v2 }
 0x65e   :  { %7666 = vpow2.f32 %v5674_v23 }
 0x65f   :  { %7668 = vpow2.f32 %v5675_v55 }
 0x660   :  { %7670 = vrcp.f32 %v2347_v42 }
 0x661   :  { %7672 = vtanh.f32 %v9124_v0 }
 0x662   :  { %7674 = vtanh.f32 %v2519_v33 }
 0x663   :  { %7676 = vtanh.f32 %v2523_v50  ;;  %v10458_v50 = vld [vmem:[#allocation89_spill] sm:$0xff] }
 0x664   :  { %7678 = vpow2.f32 %v5676_v10 }
 0x665   :  { %7680 = vpow2.f32 %v5677_v43 }
 0x666   :  { %v7663_v15 = vpop.eup %7662 }
 0x667   :  { %v7665_v48 = vpop.eup %7664  ;;  %v2531_v24 = vadd.f32 1.0, %v7663_v15 }
 0x668   :  { %v7667_v47 = vpop.eup %7666  ;;  %v2532_v2 = vadd.f32 1.0, %v7665_v48  ;;  %v10459_v48 = vld [vmem:[#allocation90_spill] sm:$0xff] }
 0x669   :  { %v7669_v27 = vpop.eup %7668  ;;  %7682 = vrcp.f32 %v2531_v24  ;;  %v2543_v42 = vadd.f32 1.0, %v7667_v47  ;;  %v10460_v24 = vld [vmem:[#allocation91_spill] sm:$0xff] }
 0x66a   :  { %7684 = vrcp.f32 %v2532_v2  ;;  %v2544_v39 = vadd.f32 1.0, %v7669_v27  ;;  %v7671_v23 = vpop.eup %7670 }
 0x66b   :  { %7686 = vrcp.f32 %v2543_v42  ;;  %v7673_v55 = vpop.eup %7672 }
 0x66c   :  { %7688 = vrcp.f32 %v2544_v39  ;;  %v2354_v37 = vmul.f32 %v7673_v55, %v7671_v23  ;;  %v7675_v6 = vpop.eup %7674  ;;  %v2565_v55 = vrot.slane %v9020_v16, 7 }
 0x66d   :  { %v7677_v54 = vpop.eup %7676 }
 0x66e   :  { %2644 = vmatmul.mubr.f32.vlgmr.msra.gmra.mrb[18].mxu1 %v2354_v37  ;;  %v5120_v33 = vrot.slane %v2354_v37, %v8991_v28  ;;  %2715 = vmatmul.mubr.f32.vlgmr.msra.gmra.mrb[20].mxu0 %v2354_v37  ;;  %v7679_v10 = vpop.eup %7678  ;;  %v2566_v37 = vrot.slane %v9024_v49, 7 }
 0x66f   :  { %6573 = vmatpush1.bf16.msra.mxu1 %v10457_v51  ;;  %6605 = vmatpush1.bf16.msra.mxu0 %v10458_v50  ;;  %v7681_v47 = vpop.eup %7680 }
 0x670   :  { %v5121_v43 = vcombine.high %v5120_v33, %v5120_v33  ;;  %v5128_v15 = vrot.slane %v5120_v33, %v8991_v28  ;;  %6575 = vmatprep.subr.bf16.mxu1 %v10459_v48  ;;  %6607 = vmatprep.subr.bf16.mxu0 %v10460_v24  ;;  %v2557_v33 = vadd.f32 1.0, %v7679_v10  ;;  %v2558_v50 = vadd.f32 1.0, %v7681_v47 }
 0x671   :  { %2791 = vmatprep.mubr.f32.mxu1 %v10227_v40  ;;  %2862 = vmatprep.mubr.f32.mxu0 %v10227_v40 }
 0x672   :  { %v5135_v27 = vrot.slane %v5121_v43, %v8991_v28  ;;  %v5264_v42 = vrot.slane %v5128_v15, %v10387_v13  ;;  %7690 = vrcp.f32 %v2557_v33  ;;  %v10466_v33 = vld [vmem:[#allocation33_spill] sm:$0xff] }
 0x673   :  { %v7683_v2 = vpop.eup %7682  ;;  %6577 = vmatpush1.bf16.msra.mxu1 %v10388_v53  ;;  %6609 = vmatpush1.bf16.msra.mxu0 %v10389_v35  ;;  %7692 = vrcp.f32 %v2558_v50  ;;  %v10464_v50 = vld [vmem:[#allocation107_spill] sm:$0xff] }
 0x674   :  { %v7685_v39 = vpop.eup %7684  ;;  %v2571_v23 = vmul.f32 %v7683_v2, %v7675_v6  ;;  %v5268_v51 = vrot.slane %v5135_v27, %v10387_v13  ;;  %6579 = vmatprep.subr.bf16.mxu1 %v10390_v62  ;;  %6611 = vmatprep.subr.bf16.mxu0 %v10391_v34  ;;  %v9154_v6 = vsel %vm5324_vm4, %v9015_v9, %v5264_v42  ;;  %v10461_v9 = vld [vmem:[#allocation104_spill] sm:$0xff] }
 0x675   :  { %v7687_v24 = vpop.eup %7686  ;;  %v2572_v48 = vmul.f32 %v7685_v39, %v7677_v54  ;;  %v10465_v2 = vld [vmem:[#allocation108_spill] sm:$0xff] }
 0x676   :  { %v7689_v16 = vpop.eup %7688  ;;  %v2569_v49 = vmul.f32 %v7687_v24, %v2565_v55  ;;  %v9158_v43 = vsel %vm5324_vm4, %v9018_v57, %v5268_v51  ;;  %v10462_v57 = vld [vmem:[#allocation105_spill] sm:$0xff]  ;;  %v10463_v51 = vld [vmem:[#allocation106_spill] sm:$0xff] }
 0x677   :  { %v2570_v10 = vmul.f32 %v7689_v16, %v2566_v37  ;;  %6581 = vmatpush1.bf16.msra.mxu1 %v10392_v56  ;;  %6613 = vmatpush1.bf16.msra.mxu0 %v10393_v19  ;;  %v10467_v16 = vld [vmem:[#allocation34_spill] sm:$0xff] }
 0x678   :  { %v9160_v15 = vadd.f32 %v2571_v23, %v2569_v49  ;;  %6583 = vmatprep.subr.bf16.mxu1 %v10394_v52  ;;  %6615 = vmatprep.subr.bf16.mxu0 %v10395_v44  ;;  %v10468_v49 = vld [vmem:[#allocation35_spill] sm:$0xff] }
 0x679   :  { %v9164_v54 = vadd.f32 %v2572_v48, %v2570_v10  ;;  %v10469_v10 = vld [vmem:[#allocation36_spill] sm:$0xff] }
 0x67a   :  { %7694 = vtanh.f32 %v9160_v15 }
 0x67b   :  { %7696 = vtanh.f32 %v9164_v54  ;;  %6585 = vmatpush1.bf16.msra.mxu1 %v10396_v41  ;;  %6617 = vmatpush1.bf16.msra.mxu0 %v10397_v22 }
 0x67c   :  { %6587 = vmatprep.subr.bf16.mxu1 %v10398_v14  ;;  %6619 = vmatprep.subr.bf16.mxu0 %v10399_v58  ;;  %v7691_v48 = vpop.eup %7690 }
 0x67d   :  { %v7693_v24 = vpop.eup %7692 }
 0x67f   :  { %6589 = vmatpush1.bf16.msra.mxu1 %v10461_v9  ;;  %6621 = vmatpush1.bf16.msra.mxu0 %v10462_v57 }
 0x680   :  { %6591 = vmatprep.subr.bf16.mxu1 %v10463_v51  ;;  %6623 = vmatprep.subr.bf16.mxu0 %v10464_v50 }
 0x683   :  { %6593 = vmatpush1.bf16.msra.mxu1 %v10465_v2  ;;  %6625 = vmatpush1.bf16.msra.mxu0 %v10400_v60 }
 0x684   :  { %v7695_v47 = vpop.eup %7694  ;;  %6595 = vmatprep.subr.bf16.mxu1 %v10401_v3  ;;  %6627 = vmatprep.subr.bf16.mxu0 %v10402_v59 }
 0x685   :  { %v7697_v27 = vpop.eup %7696  ;;  %v2577_v42 = vmul.f32 %v7695_v47, %v7691_v48  ;;  %v10470_v48 = vld [vmem:[#allocation37_spill] sm:$0xff]  ;;  %v10472_v47 = vld [vmem:[#allocation39_spill] sm:$0xff] }
 0x686   :  { %v2578_v39 = vmul.f32 %v7697_v27, %v7693_v24  ;;  %v10471_v24 = vld [vmem:[#allocation38_spill] sm:$0xff]  ;;  %v10473_v27 = vld [vmem:[#allocation40_spill] sm:$0xff] }
 0x687   :  { %v2723_v23 = vrot.slane %v2577_v42, 3  ;;  %6597 = vmatpush1.bf16.msra.mxu1 %v10403_v63  ;;  %6629 = vmatpush1.bf16.msra.mxu0 %v10404_v18  ;;  %v10474_v42 = vld [vmem:[#allocation41_spill] sm:$0xff] }
 0x688   :  { %v2724_v55 = vrot.slane %v2578_v39, 2  ;;  %6599 = vmatprep.subr.bf16.mxu1 %v10340_v17  ;;  %6631 = vmatprep.subr.bf16.mxu0 %v10341_v7  ;;  %v10475_v39 = vld [vmem:[#allocation42_spill] sm:$0xff] }
 0x68a   :  { %v2725_v37 = vsel %vm1082_vm2, %v2724_v55, %v2723_v23  ;;  %v10476_v23 = vld [vmem:[#allocation43_spill] sm:$0xff]  ;;  %v10477_v55 = vld [vmem:[#allocation44_spill] sm:$0xff] }
 0x68b   :  { %6601 = vmatpush1.bf16.msra.mxu1 %v10342_v4  ;;  %6633 = vmatpush1.bf16.msra.mxu0 %v10343_v8 }
 0x68c   :  { %6635 = vmatprep.subr.bf16.mxu1 %v10344_v61  ;;  %6667 = vmatprep.subr.bf16.mxu0 %v10345_v29 }
 0x68e   :  { %2792 = vmatmul.mubr.f32.vlgmr.msra.gmra.mrb[18].mxu1 %v2725_v37  ;;  %2863 = vmatmul.mubr.f32.vlgmr.msra.gmra.mrb[20].mxu0 %v2725_v37 }
 0x68f   :  { %6637 = vmatpush1.bf16.msra.mxu1 %v8401_v11  ;;  %6669 = vmatpush1.bf16.msra.mxu0 %v8403_v12 }
 0x690   :  { %6639 = vmatprep.subr.bf16.mxu1 %v8405_v20  ;;  %6671 = vmatprep.subr.bf16.mxu0 %v8407_v21 }
 0x691   :  { %2961 = vmatprep.mubr.f32.mxu1 %v10227_v40  ;;  %3032 = vmatprep.mubr.f32.mxu0 %v10227_v40 }
 0x693   :  { %6641 = vmatpush1.bf16.msra.mxu1 %v8413_v25  ;;  %6673 = vmatpush1.bf16.msra.mxu0 %v8415_v26 }
 0x694   :  { %6643 = vmatprep.subr.bf16.mxu1 %v8420_v30  ;;  %6675 = vmatprep.subr.bf16.mxu0 %v8422_v31 }
 0x697   :  { %6645 = vmatpush1.bf16.msra.mxu1 %v8430_v38  ;;  %6677 = vmatpush1.bf16.msra.mxu0 %v10466_v33  ;;  %v10522_v38 = vld [vmem:[#allocation120_spill] sm:$0xff] }
 0x698   :  { %6647 = vmatprep.subr.bf16.mxu1 %v10467_v16  ;;  %6679 = vmatprep.subr.bf16.mxu0 %v10468_v49  ;;  %v10478_v16 = vld [vmem:[#allocation45_spill] sm:$0xff]  ;;  %v10479_v49 = vld [vmem:[#allocation46_spill] sm:$0xff] }
 0x69b   :  { %6649 = vmatpush1.bf16.msra.mxu1 %v10469_v10  ;;  %6681 = vmatpush1.bf16.msra.mxu0 %v10470_v48  ;;  %v10480_v10 = vld [vmem:[#allocation47_spill] sm:$0xff]  ;;  %v10481_v48 = vld [vmem:[#allocation48_spill] sm:$0xff] }
 0x69c   :  { %6651 = vmatprep.subr.bf16.mxu1 %v10471_v24  ;;  %6683 = vmatprep.subr.bf16.mxu0 %v10472_v47  ;;  %v10482_v24 = vld [vmem:[#allocation49_spill] sm:$0xff]  ;;  %v10483_v47 = vld [vmem:[#allocation50_spill] sm:$0xff] }
 0x69f   :  { %6653 = vmatpush1.bf16.msra.mxu1 %v10473_v27  ;;  %6685 = vmatpush1.bf16.msra.mxu0 %v10474_v42  ;;  %v10484_v27 = vld [vmem:[#allocation51_spill] sm:$0xff]  ;;  %v10485_v42 = vld [vmem:[#allocation52_spill] sm:$0xff] }
 0x6a0   :  { %6655 = vmatprep.subr.bf16.mxu1 %v10475_v39  ;;  %6687 = vmatprep.subr.bf16.mxu0 %v10476_v23  ;;  %v10486_v39 = vld [vmem:[#allocation53_spill] sm:$0xff]  ;;  %v10487_v23 = vld [vmem:[#allocation54_spill] sm:$0xff] }
 0x6a3   :  { %6657 = vmatpush1.bf16.msra.mxu1 %v10477_v55  ;;  %6689 = vmatpush1.bf16.msra.mxu0 %v10478_v16  ;;  %v10488_v55 = vld [vmem:[#allocation55_spill] sm:$0xff]  ;;  %v10521_v16 = vld [vmem:[#allocation129_spill] sm:$0xff] }
 0x6a4   :  { %6659 = vmatprep.subr.bf16.mxu1 %v10479_v49  ;;  %6691 = vmatprep.subr.bf16.mxu0 %v10480_v10  ;;  %v10489_v49 = vld [vmem:[#allocation56_spill] sm:$0xff]  ;;  %v10490_v10 = vld [vmem:[#allocation57_spill] sm:$0xff] }
 0x6a7   :  { %6661 = vmatpush1.bf16.msra.mxu1 %v10481_v48  ;;  %6693 = vmatpush1.bf16.msra.mxu0 %v10482_v24  ;;  %v10491_v48 = vld [vmem:[#allocation58_spill] sm:$0xff]  ;;  %v10492_v24 = vld [vmem:[#allocation59_spill] sm:$0xff] }
 0x6a8   :  { %6663 = vmatprep.subr.bf16.mxu1 %v10483_v47  ;;  %6695 = vmatprep.subr.bf16.mxu0 %v10484_v27  ;;  %v10502_v27 = vld [vmem:[#allocation69_spill] sm:$0xff]  ;;  %v10503_v47 = vld [vmem:[#allocation70_spill] sm:$0xff] }
 0x6ab   :  { %6665 = vmatpush1.bf16.msra.mxu1 %v10485_v42  ;;  %6697 = vmatpush1.bf16.msra.mxu0 %v10486_v39  ;;  %v10493_v42 = vld [vmem:[#allocation60_spill] sm:$0xff]  ;;  %v10494_v39 = vld [vmem:[#allocation61_spill] sm:$0xff] }
 0x6ac   :  { %6699 = vmatprep.subr.bf16.mxu1 %v10487_v23  ;;  %6731 = vmatprep.subr.bf16.mxu0 %v10488_v55  ;;  %v10495_v23 = vld [vmem:[#allocation62_spill] sm:$0xff]  ;;  %v10496_v55 = vld [vmem:[#allocation63_spill] sm:$0xff] }
 0x6ae   :  { %2962 = vmatmul.mubr.f32.vlgmr.msra.gmra.mrb[20].mxu1 %v2725_v37  ;;  %3033 = vmatmul.mubr.f32.vlgmr.msra.gmra.mrb[22].mxu0 %v2725_v37  ;;  %v10497_v37 = vld [vmem:[#allocation64_spill] sm:$0xff] }
 0x6af   :  { %6701 = vmatpush1.bf16.msra.mxu1 %v10489_v49  ;;  %6733 = vmatpush1.bf16.msra.mxu0 %v10490_v10  ;;  %v10498_v49 = vld [vmem:[#allocation65_spill] sm:$0xff]  ;;  %v10499_v10 = vld [vmem:[#allocation66_spill] sm:$0xff] }
 0x6b0   :  { %6703 = vmatprep.subr.bf16.mxu1 %v10491_v48  ;;  %6735 = vmatprep.subr.bf16.mxu0 %v10492_v24  ;;  %v10500_v48 = vld [vmem:[#allocation67_spill] sm:$0xff]  ;;  %v10501_v24 = vld [vmem:[#allocation68_spill] sm:$0xff] }
 0x6b1   :  { %3185 = vmatprep.mubr.f32.mxu1 %v10227_v40  ;;  %3256 = vmatprep.mubr.f32.mxu0 %v10227_v40 }
 0x6b3   :  { %6705 = vmatpush1.bf16.msra.mxu1 %v10493_v42  ;;  %6737 = vmatpush1.bf16.msra.mxu0 %v10494_v39  ;;  %v10504_v42 = vld [vmem:[#allocation71_spill] sm:$0xff]  ;;  %v10505_v39 = vld [vmem:[#allocation72_spill] sm:$0xff] }
 0x6b4   :  { %6707 = vmatprep.subr.bf16.mxu1 %v10495_v23  ;;  %6739 = vmatprep.subr.bf16.mxu0 %v10496_v55  ;;  %v10506_v23 = vld [vmem:[#allocation73_spill] sm:$0xff]  ;;  %v10507_v55 = vld [vmem:[#allocation74_spill] sm:$0xff] }
 0x6b7   :  { %6709 = vmatpush1.bf16.msra.mxu1 %v10497_v37  ;;  %6741 = vmatpush1.bf16.msra.mxu0 %v10498_v49  ;;  %v10508_v37 = vld [vmem:[#allocation75_spill] sm:$0xff]  ;;  %v10509_v49 = vld [vmem:[#allocation76_spill] sm:$0xff] }
 0x6b8   :  { %6711 = vmatprep.subr.bf16.mxu1 %v10499_v10  ;;  %6743 = vmatprep.subr.bf16.mxu0 %v10500_v48  ;;  %v10510_v10 = vld [vmem:[#allocation77_spill] sm:$0xff]  ;;  %v10511_v48 = vld [vmem:[#allocation78_spill] sm:$0xff] }
 0x6bb   :  { %6713 = vmatpush1.bf16.msra.mxu1 %v10501_v24  ;;  %6745 = vmatpush1.bf16.msra.mxu0 %v10502_v27  ;;  %v10512_v24 = vld [vmem:[#allocation79_spill] sm:$0xff]  ;;  %v10513_v27 = vld [vmem:[#allocation80_spill] sm:$0xff] }
 0x6bc   :  { %6715 = vmatprep.subr.bf16.mxu1 %v10503_v47  ;;  %6747 = vmatprep.subr.bf16.mxu0 %v10504_v42  ;;  %v10514_v47 = vld [vmem:[#allocation81_spill] sm:$0xff]  ;;  %v10515_v42 = vld [vmem:[#allocation82_spill] sm:$0xff] }
 0x6bf   :  { %6717 = vmatpush1.bf16.msra.mxu1 %v10505_v39  ;;  %6749 = vmatpush1.bf16.msra.mxu0 %v10506_v23  ;;  %v10516_v39 = vld [vmem:[#allocation83_spill] sm:$0xff]  ;;  %v10517_v23 = vld [vmem:[#allocation84_spill] sm:$0xff] }
 0x6c0   :  { %6719 = vmatprep.subr.bf16.mxu1 %v10507_v55  ;;  %6751 = vmatprep.subr.bf16.mxu0 %v10508_v37  ;;  %v10518_v55 = vld [vmem:[#allocation85_spill] sm:$0xff]  ;;  %v10519_v37 = vld [vmem:[#allocation86_spill] sm:$0xff] }
 0x6c3   :  { %6721 = vmatpush1.bf16.msra.mxu1 %v10509_v49  ;;  %6753 = vmatpush1.bf16.msra.mxu0 %v10510_v10  ;;  %v10520_v49 = vld [vmem:[#allocation87_spill] sm:$0xff] }
 0x6c4   :  { %6723 = vmatprep.subr.bf16.mxu1 %v10511_v48  ;;  %6755 = vmatprep.subr.bf16.mxu0 %v10512_v24 }
 0x6c7   :  { %6725 = vmatpush1.bf16.msra.mxu1 %v10513_v27  ;;  %6757 = vmatpush1.bf16.msra.mxu0 %v10514_v47 }
 0x6c8   :  { %6727 = vmatprep.subr.bf16.mxu1 %v10515_v42  ;;  %6759 = vmatprep.subr.bf16.mxu0 %v10516_v39  ;;  %v10523_v39 = vld [vmem:[#allocation130_spill] sm:$0xff] }
 0x6cb   :  { %6729 = vmatpush1.bf16.msra.mxu1 %v10517_v23  ;;  %6761 = vmatpush1.bf16.msra.mxu0 %v10518_v55 }
 0x6cc   :  { %6763 = vmatprep.subr.bf16.mxu1 %v10519_v37  ;;  %6795 = vmatprep.subr.bf16.mxu0 %v10520_v49  ;;  %v10524_v49 = vld [vmem:[#allocation121_spill] sm:$0xff] }
 0x761   :  { %v2793_v10 = vpop.f32.mrb[18].mxu1  ;;  %v2864_v48 = vpop.f32.mrb[20].mxu0 }
 0x762   :  { %v2869_v24 = vadd.f32 %v2793_v10, %v10521_v16  ;;  %v2795_v33 = vpop.f32.mrb[19].mxu1  ;;  %v2866_v27 = vpop.f32.mrb[21].mxu0  ;;  %v2871_v23 = vadd.f32 %v2864_v48, %v10523_v39 }
 0x763   :  { %v2870_v47 = vadd.f32 %v2795_v33, %v10522_v38  ;;  %v2872_v25 = vadd.f32 %v2866_v27, %v10524_v49  ;;  %v10526_v38 = vld [vmem:[#allocation124_spill] sm:$0xff] }
 0x764   :  { %v5678_v31 = vmul.f32 -1.442695, %v2869_v24 }
 0x765   :  { %v5679_v42 = vmul.f32 -1.442695, %v2870_v47  ;;  %v5680_v10 = vmul.f32 -1.442695, %v2872_v25  ;;  %v10525_v25 = vld [vmem:[#allocation123_spill] sm:$0xff] }
 0x766   :  { %7698 = vpow2.f32 %v5678_v31 }
 0x767   :  { %7700 = vpow2.f32 %v5679_v42 }
 0x768   :  { %7702 = vtanh.f32 %v2871_v23 }
 0x770   :  { %v7699_v30 = vpop.eup %7698 }
 0x771   :  { %v7701_v55 = vpop.eup %7700  ;;  %v2876_v26 = vadd.f32 1.0, %v7699_v30 }
 0x772   :  { %v2882_v37 = vadd.f32 1.0, %v7701_v55  ;;  %v7703_v16 = vpop.eup %7702 }
 0x773   :  { %7704 = vrcp.f32 %v2876_v26 }
 0x774   :  { %7706 = vrcp.f32 %v2882_v37 }
 0x775   :  { %7708 = vpow2.f32 %v5680_v10 }
 0x77d   :  { %v7705_v21 = vpop.eup %7704 }
 0x77e   :  { %v7707_v33 = vpop.eup %7706  ;;  %v2893_v24 = vmul.f32 %v7705_v21, %v7703_v16 }
 0x77f   :  { %v2892_v31 = vmul.f32 %v7707_v33, %v9124_v0  ;;  %v7709_v16 = vpop.eup %7708 }
 0x780   :  { %v2889_v12 = vadd.f32 1.0, %v7709_v16 }
 0x781   :  { %v9264_v47 = vadd.f32 %v2893_v24, %v2892_v31  ;;  %v2963_v48 = vpop.f32.mrb[20].mxu1  ;;  %v3034_v42 = vpop.f32.mrb[22].mxu0 }
 0x782   :  { %v3043_v39 = vrot.slane %v2963_v48, 4  ;;  %v3047_v30 = vrot.slane %v2963_v48, 5  ;;  %v2965_v23 = vpop.f32.mrb[21].mxu1  ;;  %v3036_v55 = vpop.f32.mrb[23].mxu0  ;;  %v3045_v11 = vrot.slane %v3034_v42, 4 }
 0x783   :  { %v3044_v26 = vrot.slane %v2965_v23, 4  ;;  %v3048_v37 = vrot.slane %v2965_v23, 5  ;;  %v3046_v20 = vrot.slane %v3036_v55, 4  ;;  %v3050_v48 = vrot.slane %v3036_v55, 5 }
 0x784   :  { %v3059_v27 = vadd.f32 %v3043_v39, %v10452_v1  ;;  %v3063_v49 = vadd.f32 %v3047_v30, %v10525_v25  ;;  %v3049_v23 = vrot.slane %v3034_v42, 5 }
 0x785   :  { %v3060_v10 = vadd.f32 %v3044_v26, %v8730_v45  ;;  %v3064_v21 = vadd.f32 %v3048_v37, %v10526_v38  ;;  %v3062_v39 = vadd.f32 %v3046_v20, %v10453_v5  ;;  %v3066_v30 = vadd.f32 %v3050_v48, %v10454_v36 }
 0x786   :  { %v5681_v0 = vmul.f32 -1.442695, %v3059_v27  ;;  %v5682_v33 = vmul.f32 -1.442695, %v3063_v49  ;;  %v3061_v26 = vadd.f32 %v3045_v11, %v10455_v46  ;;  %v3065_v49 = vadd.f32 %v3049_v23, %v10456_v32 }
 0x787   :  { %v5683_v24 = vmul.f32 -1.442695, %v3060_v10  ;;  %v5684_v31 = vmul.f32 -1.442695, %v3064_v21  ;;  %v5685_v37 = vmul.f32 -1.442695, %v3062_v39 }
 0x788   :  { %7710 = vpow2.f32 %v5681_v0  ;;  %v5686_v27 = vmul.f32 -1.442695, %v3066_v30  ;;  %v10527_v39 = vld [vmem:[#allocation88_spill] sm:$0xff]  ;;  %v10528_v30 = vld [vmem:[#allocation89_spill] sm:$0xff] }
 0x789   :  { %7712 = vpow2.f32 %v5682_v33 }
 0x78a   :  { %7714 = vpow2.f32 %v5683_v24 }
 0x78b   :  { %7716 = vpow2.f32 %v5684_v31 }
 0x78c   :  { %7718 = vrcp.f32 %v2889_v12 }
 0x78d   :  { %7720 = vtanh.f32 %v9264_v47 }
 0x78e   :  { %7722 = vtanh.f32 %v3061_v26 }
 0x78f   :  { %7724 = vtanh.f32 %v3065_v49 }
 0x790   :  { %7726 = vpow2.f32 %v5685_v37 }
 0x791   :  { %7728 = vpow2.f32 %v5686_v27  ;;  %v10529_v27 = vld [vmem:[#allocation90_spill] sm:$0xff] }
 0x792   :  { %v7711_v55 = vpop.eup %7710 }
 0x793   :  { %v7713_v10 = vpop.eup %7712  ;;  %v3073_v42 = vadd.f32 1.0, %v7711_v55  ;;  %v10530_v55 = vld [vmem:[#allocation91_spill] sm:$0xff] }
 0x794   :  { %v7715_v21 = vpop.eup %7714  ;;  %v3074_v16 = vadd.f32 1.0, %v7713_v10 }
 0x795   :  { %v7717_v20 = vpop.eup %7716  ;;  %7730 = vrcp.f32 %v3073_v42  ;;  %v3085_v12 = vadd.f32 1.0, %v7715_v21 }
 0x796   :  { %7732 = vrcp.f32 %v3074_v16  ;;  %v3086_v11 = vadd.f32 1.0, %v7717_v20  ;;  %v7719_v0 = vpop.eup %7718 }
 0x797   :  { %7734 = vrcp.f32 %v3085_v12  ;;  %v7721_v33 = vpop.eup %7720 }
 0x798   :  { %7736 = vrcp.f32 %v3086_v11  ;;  %v2896_v24 = vmul.f32 %v7721_v33, %v7719_v0  ;;  %v7723_v31 = vpop.eup %7722  ;;  %v3107_v11 = vrot.slane %v9160_v15, 7  ;;  %v3108_v0 = vrot.slane %v9164_v54, 7 }
 0x799   :  { %v7725_v23 = vpop.eup %7724 }
 0x79a   :  { %3186 = vmatmul.mubr.f32.vlgmr.msra.gmra.mrb[22].mxu1 %v2896_v24  ;;  %v5143_v48 = vrot.slane %v2896_v24, %v8991_v28  ;;  %3257 = vmatmul.mubr.f32.vlgmr.msra.gmra.mrb[24].mxu0 %v2896_v24  ;;  %v7727_v26 = vpop.eup %7726 }
 0x79b   :  { %6765 = vmatpush1.bf16.msra.mxu1 %v10527_v39  ;;  %6797 = vmatpush1.bf16.msra.mxu0 %v10528_v30  ;;  %v7729_v10 = vpop.eup %7728  ;;  %v3099_v33 = vadd.f32 1.0, %v7727_v26 }
 0x79c   :  { %v5144_v49 = vcombine.high %v5143_v48, %v5143_v48  ;;  %v5151_v37 = vrot.slane %v5143_v48, %v8991_v28  ;;  %6767 = vmatprep.subr.bf16.mxu1 %v10529_v27  ;;  %6799 = vmatprep.subr.bf16.mxu0 %v10530_v55  ;;  %v3100_v55 = vadd.f32 1.0, %v7729_v10 }
 0x79d   :  { %3333 = vmatprep.mubr.f32.mxu1 %v10227_v40  ;;  %3404 = vmatprep.mubr.f32.mxu0 %v10227_v40  ;;  %7738 = vrcp.f32 %v3099_v33  ;;  %v10532_v33 = vld [vmem:[#allocation25_spill] sm:$0xff] }
 0x79e   :  { %v5158_v21 = vrot.slane %v5144_v49, %v8991_v28  ;;  %v5274_v16 = vrot.slane %v5151_v37, %v10387_v13  ;;  %7740 = vrcp.f32 %v3100_v55 }
 0x79f   :  { %v7731_v42 = vpop.eup %7730  ;;  %6769 = vmatpush1.bf16.msra.mxu1 %v10388_v53  ;;  %6801 = vmatpush1.bf16.msra.mxu0 %v10389_v35 }
 0x7a0   :  { %v7733_v20 = vpop.eup %7732  ;;  %v3113_v12 = vmul.f32 %v7731_v42, %v7723_v31  ;;  %6771 = vmatprep.subr.bf16.mxu1 %v10390_v62  ;;  %6803 = vmatprep.subr.bf16.mxu0 %v10391_v34  ;;  %v9293_v49 = vsel %vm5327_vm5, %v9154_v6, %v5274_v16  ;;  %v5278_v15 = vrot.slane %v5158_v21, %v10387_v13 }
 0x7a1   :  { %v7735_v24 = vpop.eup %7734  ;;  %v3114_v48 = vmul.f32 %v7733_v20, %v7725_v23 }
 0x7a2   :  { %v7737_v31 = vpop.eup %7736  ;;  %v3111_v54 = vmul.f32 %v7735_v24, %v3107_v11  ;;  %v9298_v37 = vsel %vm5327_vm5, %v9158_v43, %v5278_v15  ;;  %v10533_v24 = vld [vmem:[#allocation26_spill] sm:$0xff]  ;;  %v10535_v15 = vld [vmem:[#allocation28_spill] sm:$0xff] }
 0x7a3   :  { %v3112_v26 = vmul.f32 %v7737_v31, %v3108_v0  ;;  %6773 = vmatpush1.bf16.msra.mxu1 %v10392_v56  ;;  %6805 = vmatpush1.bf16.msra.mxu0 %v10393_v19  ;;  %v10531_v0 = vld [vmem:[#allocation24_spill] sm:$0xff]  ;;  %v10536_v31 = vld [vmem:[#allocation29_spill] sm:$0xff] }
 0x7a4   :  { %v9300_v42 = vadd.f32 %v3113_v12, %v3111_v54  ;;  %6775 = vmatprep.subr.bf16.mxu1 %v10394_v52  ;;  %6807 = vmatprep.subr.bf16.mxu0 %v10395_v44  ;;  %v10537_v54 = vld [vmem:[#allocation30_spill] sm:$0xff] }
 0x7a5   :  { %v9304_v23 = vadd.f32 %v3114_v48, %v3112_v26  ;;  %v10534_v48 = vld [vmem:[#allocation27_spill] sm:$0xff] }
 0x7a6   :  { %7742 = vtanh.f32 %v9300_v42  ;;  %v10538_v26 = vld [vmem:[#allocation31_spill] sm:$0xff] }
 0x7a7   :  { %7744 = vtanh.f32 %v9304_v23  ;;  %6777 = vmatpush1.bf16.msra.mxu1 %v10396_v41  ;;  %6809 = vmatpush1.bf16.msra.mxu0 %v10397_v22  ;;  %v7739_v6 = vpop.eup %7738 }
 0x7a8   :  { %6779 = vmatprep.subr.bf16.mxu1 %v10398_v14  ;;  %6811 = vmatprep.subr.bf16.mxu0 %v10399_v58  ;;  %v7741_v43 = vpop.eup %7740 }
 0x7ab   :  { %6781 = vmatpush1.bf16.msra.mxu1 %v10461_v9  ;;  %6813 = vmatpush1.bf16.msra.mxu0 %v10462_v57 }
 0x7ac   :  { %6783 = vmatprep.subr.bf16.mxu1 %v10463_v51  ;;  %6815 = vmatprep.subr.bf16.mxu0 %v10464_v50 }
 0x7af   :  { %6785 = vmatpush1.bf16.msra.mxu1 %v10465_v2  ;;  %6817 = vmatpush1.bf16.msra.mxu0 %v10400_v60 }
 0x7b0   :  { %v7743_v55 = vpop.eup %7742  ;;  %6787 = vmatprep.subr.bf16.mxu1 %v10401_v3  ;;  %6819 = vmatprep.subr.bf16.mxu0 %v10402_v59 }
 0x7b1   :  { %v7745_v10 = vpop.eup %7744  ;;  %v3119_v21 = vmul.f32 %v7743_v55, %v7739_v6  ;;  %v10539_v6 = vld [vmem:[#allocation32_spill] sm:$0xff]  ;;  %v10541_v55 = vld [vmem:[#allocation34_spill] sm:$0xff] }
 0x7b2   :  { %v3120_v16 = vmul.f32 %v7745_v10, %v7741_v43  ;;  %v10540_v43 = vld [vmem:[#allocation33_spill] sm:$0xff]  ;;  %v10542_v10 = vld [vmem:[#allocation35_spill] sm:$0xff] }
 0x7b3   :  { %v3265_v20 = vrot.slane %v3119_v21, 4  ;;  %6789 = vmatpush1.bf16.msra.mxu1 %v10403_v63  ;;  %6821 = vmatpush1.bf16.msra.mxu0 %v10404_v18  ;;  %v10543_v21 = vld [vmem:[#allocation36_spill] sm:$0xff] }
 0x7b4   :  { %v3266_v12 = vrot.slane %v3120_v16, 3  ;;  %6791 = vmatprep.subr.bf16.mxu1 %v10340_v17  ;;  %6823 = vmatprep.subr.bf16.mxu0 %v10341_v7  ;;  %v10544_v16 = vld [vmem:[#allocation37_spill] sm:$0xff] }
 0x7b6   :  { %v3267_v11 = vsel %vm1082_vm2, %v3266_v12, %v3265_v20  ;;  %v10545_v20 = vld [vmem:[#allocation38_spill] sm:$0xff]  ;;  %v10546_v12 = vld [vmem:[#allocation39_spill] sm:$0xff] }
 0x7b7   :  { %6793 = vmatpush1.bf16.msra.mxu1 %v10342_v4  ;;  %6825 = vmatpush1.bf16.msra.mxu0 %v10343_v8 }
 0x7b8   :  { %6827 = vmatprep.subr.bf16.mxu1 %v10344_v61  ;;  %6859 = vmatprep.subr.bf16.mxu0 %v10345_v29 }
 0x7ba   :  { %3334 = vmatmul.mubr.f32.vlgmr.msra.gmra.mrb[22].mxu1 %v3267_v11  ;;  %3405 = vmatmul.mubr.f32.vlgmr.msra.gmra.mrb[24].mxu0 %v3267_v11 }
 0x7bb   :  { %6829 = vmatpush1.bf16.msra.mxu1 %v10531_v0  ;;  %6861 = vmatpush1.bf16.msra.mxu0 %v10532_v33 }
 0x7bc   :  { %6831 = vmatprep.subr.bf16.mxu1 %v10533_v24  ;;  %6863 = vmatprep.subr.bf16.mxu0 %v10534_v48  ;;  %v10596_v48 = vld [vmem:[#allocation120_spill] sm:$0xff] }
 0x7bd   :  { %3503 = vmatprep.mubr.f32.mxu1 %v10227_v40  ;;  %3574 = vmatprep.mubr.f32.mxu0 %v10227_v40 }
 0x7bf   :  { %6833 = vmatpush1.bf16.msra.mxu1 %v10535_v15  ;;  %6865 = vmatpush1.bf16.msra.mxu0 %v10536_v31  ;;  %v10547_v31 = vld [vmem:[#allocation40_spill] sm:$0xff] }
 0x7c0   :  { %6835 = vmatprep.subr.bf16.mxu1 %v10537_v54  ;;  %6867 = vmatprep.subr.bf16.mxu0 %v10538_v26  ;;  %v10548_v54 = vld [vmem:[#allocation41_spill] sm:$0xff]  ;;  %v10549_v26 = vld [vmem:[#allocation42_spill] sm:$0xff] }
 0x7c3   :  { %6837 = vmatpush1.bf16.msra.mxu1 %v10539_v6  ;;  %6869 = vmatpush1.bf16.msra.mxu0 %v10540_v43  ;;  %v10550_v6 = vld [vmem:[#allocation43_spill] sm:$0xff]  ;;  %v10551_v43 = vld [vmem:[#allocation44_spill] sm:$0xff] }
 0x7c4   :  { %6839 = vmatprep.subr.bf16.mxu1 %v10541_v55  ;;  %6871 = vmatprep.subr.bf16.mxu0 %v10542_v10  ;;  %v10552_v55 = vld [vmem:[#allocation45_spill] sm:$0xff]  ;;  %v10553_v10 = vld [vmem:[#allocation46_spill] sm:$0xff] }
 0x7c7   :  { %6841 = vmatpush1.bf16.msra.mxu1 %v10543_v21  ;;  %6873 = vmatpush1.bf16.msra.mxu0 %v10544_v16  ;;  %v10554_v21 = vld [vmem:[#allocation47_spill] sm:$0xff]  ;;  %v10555_v16 = vld [vmem:[#allocation48_spill] sm:$0xff] }
 0x7c8   :  { %6843 = vmatprep.subr.bf16.mxu1 %v10545_v20  ;;  %6875 = vmatprep.subr.bf16.mxu0 %v10546_v12  ;;  %v10556_v20 = vld [vmem:[#allocation49_spill] sm:$0xff]  ;;  %v10557_v12 = vld [vmem:[#allocation50_spill] sm:$0xff] }
 0x7cb   :  { %6845 = vmatpush1.bf16.msra.mxu1 %v10547_v31  ;;  %6877 = vmatpush1.bf16.msra.mxu0 %v10548_v54  ;;  %v10558_v31 = vld [vmem:[#allocation51_spill] sm:$0xff]  ;;  %v10559_v54 = vld [vmem:[#allocation52_spill] sm:$0xff] }
 0x7cc   :  { %6847 = vmatprep.subr.bf16.mxu1 %v10549_v26  ;;  %6879 = vmatprep.subr.bf16.mxu0 %v10550_v6  ;;  %v10560_v26 = vld [vmem:[#allocation53_spill] sm:$0xff]  ;;  %v10561_v6 = vld [vmem:[#allocation54_spill] sm:$0xff] }
 0x7cf   :  { %6849 = vmatpush1.bf16.msra.mxu1 %v10551_v43  ;;  %6881 = vmatpush1.bf16.msra.mxu0 %v10552_v55  ;;  %v10562_v43 = vld [vmem:[#allocation55_spill] sm:$0xff]  ;;  %v10595_v55 = vld [vmem:[#allocation129_spill] sm:$0xff] }
 0x7d0   :  { %6851 = vmatprep.subr.bf16.mxu1 %v10553_v10  ;;  %6883 = vmatprep.subr.bf16.mxu0 %v10554_v21  ;;  %v10563_v10 = vld [vmem:[#allocation56_spill] sm:$0xff]  ;;  %v10564_v21 = vld [vmem:[#allocation57_spill] sm:$0xff] }
 0x7d3   :  { %6853 = vmatpush1.bf16.msra.mxu1 %v10555_v16  ;;  %6885 = vmatpush1.bf16.msra.mxu0 %v10556_v20  ;;  %v10565_v16 = vld [vmem:[#allocation58_spill] sm:$0xff]  ;;  %v10566_v20 = vld [vmem:[#allocation59_spill] sm:$0xff] }
 0x7d4   :  { %6855 = vmatprep.subr.bf16.mxu1 %v10557_v12  ;;  %6887 = vmatprep.subr.bf16.mxu0 %v10558_v31  ;;  %v10576_v31 = vld [vmem:[#allocation69_spill] sm:$0xff]  ;;  %v10577_v12 = vld [vmem:[#allocation70_spill] sm:$0xff] }
 0x7d7   :  { %6857 = vmatpush1.bf16.msra.mxu1 %v10559_v54  ;;  %6889 = vmatpush1.bf16.msra.mxu0 %v10560_v26  ;;  %v10567_v54 = vld [vmem:[#allocation60_spill] sm:$0xff]  ;;  %v10568_v26 = vld [vmem:[#allocation61_spill] sm:$0xff] }
 0x7d8   :  { %6891 = vmatprep.subr.bf16.mxu1 %v10561_v6  ;;  %6923 = vmatprep.subr.bf16.mxu0 %v10562_v43  ;;  %v10569_v6 = vld [vmem:[#allocation62_spill] sm:$0xff]  ;;  %v10570_v43 = vld [vmem:[#allocation63_spill] sm:$0xff] }
 0x7da   :  { %3504 = vmatmul.mubr.f32.vlgmr.msra.gmra.mrb[24].mxu1 %v3267_v11  ;;  %3575 = vmatmul.mubr.f32.vlgmr.msra.gmra.mrb[26].mxu0 %v3267_v11  ;;  %v10571_v11 = vld [vmem:[#allocation64_spill] sm:$0xff] }
 0x7db   :  { %6893 = vmatpush1.bf16.msra.mxu1 %v10563_v10  ;;  %6925 = vmatpush1.bf16.msra.mxu0 %v10564_v21  ;;  %v10572_v10 = vld [vmem:[#allocation65_spill] sm:$0xff]  ;;  %v10573_v21 = vld [vmem:[#allocation66_spill] sm:$0xff] }
 0x7dc   :  { %6895 = vmatprep.subr.bf16.mxu1 %v10565_v16  ;;  %6927 = vmatprep.subr.bf16.mxu0 %v10566_v20  ;;  %v10574_v16 = vld [vmem:[#allocation67_spill] sm:$0xff]  ;;  %v10575_v20 = vld [vmem:[#allocation68_spill] sm:$0xff] }
 0x7dd   :  { %3727 = vmatprep.mubr.f32.mxu1 %v10227_v40  ;;  %3798 = vmatprep.mubr.f32.mxu0 %v10227_v40 }
 0x7df   :  { %6897 = vmatpush1.bf16.msra.mxu1 %v10567_v54  ;;  %6929 = vmatpush1.bf16.msra.mxu0 %v10568_v26  ;;  %v10578_v54 = vld [vmem:[#allocation71_spill] sm:$0xff]  ;;  %v10579_v26 = vld [vmem:[#allocation72_spill] sm:$0xff] }
 0x7e0   :  { %6899 = vmatprep.subr.bf16.mxu1 %v10569_v6  ;;  %6931 = vmatprep.subr.bf16.mxu0 %v10570_v43  ;;  %v10580_v6 = vld [vmem:[#allocation73_spill] sm:$0xff]  ;;  %v10581_v43 = vld [vmem:[#allocation74_spill] sm:$0xff] }
 0x7e3   :  { %6901 = vmatpush1.bf16.msra.mxu1 %v10571_v11  ;;  %6933 = vmatpush1.bf16.msra.mxu0 %v10572_v10  ;;  %v10582_v11 = vld [vmem:[#allocation75_spill] sm:$0xff]  ;;  %v10583_v10 = vld [vmem:[#allocation76_spill] sm:$0xff] }
 0x7e4   :  { %6903 = vmatprep.subr.bf16.mxu1 %v10573_v21  ;;  %6935 = vmatprep.subr.bf16.mxu0 %v10574_v16  ;;  %v10584_v21 = vld [vmem:[#allocation77_spill] sm:$0xff]  ;;  %v10585_v16 = vld [vmem:[#allocation78_spill] sm:$0xff] }
 0x7e7   :  { %6905 = vmatpush1.bf16.msra.mxu1 %v10575_v20  ;;  %6937 = vmatpush1.bf16.msra.mxu0 %v10576_v31  ;;  %v10586_v20 = vld [vmem:[#allocation79_spill] sm:$0xff]  ;;  %v10587_v31 = vld [vmem:[#allocation80_spill] sm:$0xff] }
 0x7e8   :  { %6907 = vmatprep.subr.bf16.mxu1 %v10577_v12  ;;  %6939 = vmatprep.subr.bf16.mxu0 %v10578_v54  ;;  %v10588_v12 = vld [vmem:[#allocation81_spill] sm:$0xff]  ;;  %v10589_v54 = vld [vmem:[#allocation82_spill] sm:$0xff] }
 0x7eb   :  { %6909 = vmatpush1.bf16.msra.mxu1 %v10579_v26  ;;  %6941 = vmatpush1.bf16.msra.mxu0 %v10580_v6  ;;  %v10590_v26 = vld [vmem:[#allocation83_spill] sm:$0xff]  ;;  %v10591_v6 = vld [vmem:[#allocation84_spill] sm:$0xff] }
 0x7ec   :  { %6911 = vmatprep.subr.bf16.mxu1 %v10581_v43  ;;  %6943 = vmatprep.subr.bf16.mxu0 %v10582_v11  ;;  %v10592_v43 = vld [vmem:[#allocation85_spill] sm:$0xff]  ;;  %v10593_v11 = vld [vmem:[#allocation86_spill] sm:$0xff] }
 0x7ef   :  { %6913 = vmatpush1.bf16.msra.mxu1 %v10583_v10  ;;  %6945 = vmatpush1.bf16.msra.mxu0 %v10584_v21  ;;  %v10594_v10 = vld [vmem:[#allocation87_spill] sm:$0xff] }
 0x7f0   :  { %6915 = vmatprep.subr.bf16.mxu1 %v10585_v16  ;;  %6947 = vmatprep.subr.bf16.mxu0 %v10586_v20 }
 0x7f3   :  { %6917 = vmatpush1.bf16.msra.mxu1 %v10587_v31  ;;  %6949 = vmatpush1.bf16.msra.mxu0 %v10588_v12 }
 0x7f4   :  { %6919 = vmatprep.subr.bf16.mxu1 %v10589_v54  ;;  %6951 = vmatprep.subr.bf16.mxu0 %v10590_v26  ;;  %v10597_v26 = vld [vmem:[#allocation130_spill] sm:$0xff] }
 0x7f7   :  { %6921 = vmatpush1.bf16.msra.mxu1 %v10591_v6  ;;  %6953 = vmatpush1.bf16.msra.mxu0 %v10592_v43 }
 0x7f8   :  { %6955 = vmatprep.subr.bf16.mxu1 %v10593_v11  ;;  %6987 = vmatprep.subr.bf16.mxu0 %v10594_v10  ;;  %v10598_v10 = vld [vmem:[#allocation121_spill] sm:$0xff] }
 0x88d   :  { %v3335_v21 = vpop.f32.mrb[22].mxu1  ;;  %v3406_v16 = vpop.f32.mrb[24].mxu0 }
 0x88e   :  { %v3411_v20 = vadd.f32 %v3335_v21, %v10595_v55  ;;  %v3337_v15 = vpop.f32.mrb[23].mxu1  ;;  %v3408_v31 = vpop.f32.mrb[25].mxu0  ;;  %v3413_v6 = vadd.f32 %v3406_v16, %v10597_v26 }
 0x88f   :  { %v3412_v12 = vadd.f32 %v3337_v15, %v10596_v48  ;;  %v3414_v29 = vadd.f32 %v3408_v31, %v10598_v10 }
 0x890   :  { %v5687_v24 = vmul.f32 -1.442695, %v3411_v20 }
 0x891   :  { %v5688_v54 = vmul.f32 -1.442695, %v3412_v12  ;;  %v5689_v21 = vmul.f32 -1.442695, %v3414_v29 }
 0x892   :  { %7746 = vpow2.f32 %v5687_v24 }
 0x893   :  { %7748 = vpow2.f32 %v5688_v54 }
 0x894   :  { %7750 = vtanh.f32 %v3413_v6 }
 0x89c   :  { %v7747_v33 = vpop.eup %7746 }
 0x89d   :  { %v7749_v43 = vpop.eup %7748  ;;  %v3418_v0 = vadd.f32 1.0, %v7747_v33 }
 0x89e   :  { %v3424_v11 = vadd.f32 1.0, %v7749_v43  ;;  %v7751_v55 = vpop.eup %7750 }
 0x89f   :  { %7752 = vrcp.f32 %v3418_v0 }
 0x8a0   :  { %7754 = vrcp.f32 %v3424_v11 }
 0x8a1   :  { %7756 = vpow2.f32 %v5689_v21 }
 0x8a9   :  { %v7753_v61 = vpop.eup %7752 }
 0x8aa   :  { %v7755_v15 = vpop.eup %7754  ;;  %v3435_v20 = vmul.f32 %v7753_v61, %v7751_v55 }
 0x8ab   :  { %v3434_v24 = vmul.f32 %v7755_v15, %v9264_v47  ;;  %v7757_v55 = vpop.eup %7756 }
 0x8ac   :  { %v3431_v48 = vadd.f32 1.0, %v7757_v55 }
 0x8ad   :  { %v9404_v54 = vadd.f32 %v3435_v20, %v3434_v24  ;;  %v3505_v16 = vpop.f32.mrb[24].mxu1  ;;  %v3576_v12 = vpop.f32.mrb[26].mxu0 }
 0x8ae   :  { %v3585_v26 = vrot.slane %v3505_v16, 3  ;;  %v3589_v33 = vrot.slane %v3505_v16, 4  ;;  %v3507_v6 = vpop.f32.mrb[25].mxu1  ;;  %v3578_v43 = vpop.f32.mrb[27].mxu0  ;;  %v3587_v8 = vrot.slane %v3576_v12, 3 }
 0x8af   :  { %v3586_v0 = vrot.slane %v3507_v6, 3  ;;  %v3590_v11 = vrot.slane %v3507_v6, 4  ;;  %v3588_v10 = vrot.slane %v3578_v43, 3  ;;  %v3592_v16 = vrot.slane %v3578_v43, 4 }
 0x8b0   :  { %v3601_v31 = vadd.f32 %v3585_v26, %v10452_v1  ;;  %v3605_v29 = vadd.f32 %v3589_v33, %v10525_v25  ;;  %v3591_v6 = vrot.slane %v3576_v12, 4 }
 0x8b1   :  { %v3602_v21 = vadd.f32 %v3586_v0, %v8730_v45  ;;  %v3606_v61 = vadd.f32 %v3590_v11, %v10526_v38  ;;  %v3604_v26 = vadd.f32 %v3588_v10, %v10453_v5  ;;  %v3608_v33 = vadd.f32 %v3592_v16, %v10454_v36 }
 0x8b2   :  { %v5690_v47 = vmul.f32 -1.442695, %v3601_v31  ;;  %v5691_v15 = vmul.f32 -1.442695, %v3605_v29  ;;  %v3603_v0 = vadd.f32 %v3587_v8, %v10455_v46  ;;  %v3607_v11 = vadd.f32 %v3591_v6, %v10456_v32 }
 0x8b3   :  { %v5692_v20 = vmul.f32 -1.442695, %v3602_v21  ;;  %v5693_v24 = vmul.f32 -1.442695, %v3606_v61  ;;  %v5694_v31 = vmul.f32 -1.442695, %v3604_v26 }
 0x8b4   :  { %7758 = vpow2.f32 %v5690_v47  ;;  %v5695_v29 = vmul.f32 -1.442695, %v3608_v33 }
 0x8b5   :  { %7760 = vpow2.f32 %v5691_v15 }
 0x8b6   :  { %7762 = vpow2.f32 %v5692_v20 }
 0x8b7   :  { %7764 = vpow2.f32 %v5693_v24 }
 0x8b8   :  { %7766 = vrcp.f32 %v3431_v48 }
 0x8b9   :  { %7768 = vtanh.f32 %v9404_v54 }
 0x8ba   :  { %7770 = vtanh.f32 %v3603_v0 }
 0x8bb   :  { %7772 = vtanh.f32 %v3607_v11  ;;  %v10599_v11 = vld [vmem:[#allocation91_spill] sm:$0xff] }
 0x8bc   :  { %7774 = vpow2.f32 %v5694_v31 }
 0x8bd   :  { %7776 = vpow2.f32 %v5695_v29 }
 0x8be   :  { %v7759_v43 = vpop.eup %7758 }
 0x8bf   :  { %v7761_v21 = vpop.eup %7760  ;;  %v3615_v12 = vadd.f32 1.0, %v7759_v43 }
 0x8c0   :  { %v7763_v61 = vpop.eup %7762  ;;  %v3616_v55 = vadd.f32 1.0, %v7761_v21 }
 0x8c1   :  { %v7765_v10 = vpop.eup %7764  ;;  %7778 = vrcp.f32 %v3615_v12  ;;  %v3627_v48 = vadd.f32 1.0, %v7763_v61 }
 0x8c2   :  { %7780 = vrcp.f32 %v3616_v55  ;;  %v3628_v8 = vadd.f32 1.0, %v7765_v10  ;;  %v7767_v47 = vpop.eup %7766  ;;  %v3649_v55 = vrot.slane %v9300_v42, 7  ;;  %v3650_v10 = vrot.slane %v9304_v23, 7 }
 0x8c3   :  { %7782 = vrcp.f32 %v3627_v48  ;;  %v7769_v15 = vpop.eup %7768 }
 0x8c4   :  { %7784 = vrcp.f32 %v3628_v8  ;;  %v3438_v20 = vmul.f32 %v7769_v15, %v7767_v47  ;;  %v7771_v24 = vpop.eup %7770 }
 0x8c5   :  { %v7773_v6 = vpop.eup %7772 }
 0x8c6   :  { %3728 = vmatmul.mubr.f32.vlgmr.msra.gmra.mrb[26].mxu1 %v3438_v20  ;;  %v5166_v16 = vrot.slane %v3438_v20, %v8991_v28  ;;  %3799 = vmatmul.mubr.f32.vlgmr.msra.gmra.mrb[28].mxu0 %v3438_v20  ;;  %v7775_v26 = vpop.eup %7774 }
 0x8c7   :  { %6957 = vmatpush1.bf16.msra.mxu1 %v10527_v39  ;;  %6989 = vmatpush1.bf16.msra.mxu0 %v10528_v30  ;;  %v7777_v31 = vpop.eup %7776  ;;  %v3641_v48 = vadd.f32 1.0, %v7775_v26 }
 0x8c8   :  { %v5167_v33 = vcombine.high %v5166_v16, %v5166_v16  ;;  %v5174_v0 = vrot.slane %v5166_v16, %v8991_v28  ;;  %6959 = vmatprep.subr.bf16.mxu1 %v10529_v27  ;;  %6991 = vmatprep.subr.bf16.mxu0 %v10599_v11  ;;  %v3642_v15 = vadd.f32 1.0, %v7777_v31 }
 0x8c9   :  { %3875 = vmatprep.mubr.f32.mxu1 %v10227_v40  ;;  %3946 = vmatprep.mubr.f32.mxu0 %v10227_v40  ;;  %7786 = vrcp.f32 %v3641_v48  ;;  %v10602_v48 = vld [vmem:[#allocation23_spill] sm:$0xff] }
 0x8ca   :  { %v5181_v43 = vrot.slane %v5167_v33, %v8991_v28  ;;  %v5284_v21 = vrot.slane %v5174_v0, %v10387_v13  ;;  %7788 = vrcp.f32 %v3642_v15  ;;  %v10605_v15 = vld [vmem:[#allocation26_spill] sm:$0xff] }
 0x8cb   :  { %v7779_v29 = vpop.eup %7778  ;;  %6961 = vmatpush1.bf16.msra.mxu1 %v10388_v53  ;;  %6993 = vmatpush1.bf16.msra.mxu0 %v10389_v35 }
 0x8cc   :  { %v7781_v12 = vpop.eup %7780  ;;  %v3655_v61 = vmul.f32 %v7779_v29, %v7771_v24  ;;  %6963 = vmatprep.subr.bf16.mxu1 %v10390_v62  ;;  %6995 = vmatprep.subr.bf16.mxu0 %v10391_v34  ;;  %v9433_v20 = vsel %vm5330_vm6, %v9293_v49, %v5284_v21  ;;  %v5288_v42 = vrot.slane %v5181_v43, %v10387_v13 }
 0x8cd   :  { %v7783_v8 = vpop.eup %7782  ;;  %v3656_v47 = vmul.f32 %v7781_v12, %v7773_v6 }
 0x8ce   :  { %v7785_v24 = vpop.eup %7784  ;;  %v3653_v23 = vmul.f32 %v7783_v8, %v3649_v55  ;;  %v9438_v26 = vsel %vm5330_vm6, %v9298_v37, %v5288_v42  ;;  %v10600_v55 = vld [vmem:[#allocation117_spill] sm:$0xff]  ;;  %v10603_v8 = vld [vmem:[#allocation24_spill] sm:$0xff]  ;;  %v10606_v42 = vld [vmem:[#allocation27_spill] sm:$0xff] }
 0x8cf   :  { %v3654_v16 = vmul.f32 %v7785_v24, %v3650_v10  ;;  %6965 = vmatpush1.bf16.msra.mxu1 %v10392_v56  ;;  %6997 = vmatpush1.bf16.msra.mxu0 %v10393_v19  ;;  %v10601_v10 = vld [vmem:[#allocation22_spill] sm:$0xff]  ;;  %v10607_v24 = vld [vmem:[#allocation28_spill] sm:$0xff] }
 0x8d0   :  { %v9440_v33 = vadd.f32 %v3655_v61, %v3653_v23  ;;  %6967 = vmatprep.subr.bf16.mxu1 %v10394_v52  ;;  %6999 = vmatprep.subr.bf16.mxu0 %v10395_v44  ;;  %v10608_v23 = vld [vmem:[#allocation29_spill] sm:$0xff] }
 0x8d1   :  { %v9444_v6 = vadd.f32 %v3656_v47, %v3654_v16  ;;  %v10604_v47 = vld [vmem:[#allocation25_spill] sm:$0xff]  ;;  %v10609_v16 = vld [vmem:[#allocation30_spill] sm:$0xff] }
 0x8d2   :  { %7790 = vtanh.f32 %v9440_v33 }
 0x8d3   :  { %7792 = vtanh.f32 %v9444_v6  ;;  %6969 = vmatpush1.bf16.msra.mxu1 %v10396_v41  ;;  %7001 = vmatpush1.bf16.msra.mxu0 %v10397_v22  ;;  %v7787_v49 = vpop.eup %7786 }
 0x8d4   :  { %6971 = vmatprep.subr.bf16.mxu1 %v10398_v14  ;;  %7003 = vmatprep.subr.bf16.mxu0 %v10399_v58  ;;  %v7789_v37 = vpop.eup %7788 }
 0x8d7   :  { %6973 = vmatpush1.bf16.msra.mxu1 %v10461_v9  ;;  %7005 = vmatpush1.bf16.msra.mxu0 %v10462_v57 }
 0x8d8   :  { %6975 = vmatprep.subr.bf16.mxu1 %v10463_v51  ;;  %7007 = vmatprep.subr.bf16.mxu0 %v10464_v50 }
 0x8db   :  { %6977 = vmatpush1.bf16.msra.mxu1 %v10465_v2  ;;  %7009 = vmatpush1.bf16.msra.mxu0 %v10400_v60 }
 0x8dc   :  { %v7791_v0 = vpop.eup %7790  ;;  %6979 = vmatprep.subr.bf16.mxu1 %v10401_v3  ;;  %7011 = vmatprep.subr.bf16.mxu0 %v10402_v59 }
 0x8dd   :  { %v7793_v31 = vpop.eup %7792  ;;  %v3661_v29 = vmul.f32 %v7791_v0, %v7787_v49  ;;  %v10610_v49 = vld [vmem:[#allocation31_spill] sm:$0xff]  ;;  %v10612_v0 = vld [vmem:[#allocation33_spill] sm:$0xff] }
 0x8de   :  { %v3662_v43 = vmul.f32 %v7793_v31, %v7789_v37  ;;  %v10611_v37 = vld [vmem:[#allocation32_spill] sm:$0xff]  ;;  %v10613_v31 = vld [vmem:[#allocation34_spill] sm:$0xff] }
 0x8df   :  { %v3807_v21 = vrot.slane %v3661_v29, 5  ;;  %6981 = vmatpush1.bf16.msra.mxu1 %v10403_v63  ;;  %7013 = vmatpush1.bf16.msra.mxu0 %v10404_v18  ;;  %v10614_v29 = vld [vmem:[#allocation35_spill] sm:$0xff] }
 0x8e0   :  { %v3808_v12 = vrot.slane %v3662_v43, 4  ;;  %6983 = vmatprep.subr.bf16.mxu1 %v10340_v17  ;;  %7015 = vmatprep.subr.bf16.mxu0 %v10341_v7  ;;  %v10615_v43 = vld [vmem:[#allocation36_spill] sm:$0xff] }
 0x8e2   :  { %v3809_v61 = vsel %vm1082_vm2, %v3808_v12, %v3807_v21  ;;  %v10616_v21 = vld [vmem:[#allocation37_spill] sm:$0xff]  ;;  %v10617_v12 = vld [vmem:[#allocation38_spill] sm:$0xff] }
 0x8e3   :  { %6985 = vmatpush1.bf16.msra.mxu1 %v10342_v4  ;;  %7017 = vmatpush1.bf16.msra.mxu0 %v10600_v55 }
 0x8e4   :  { %7019 = vmatprep.subr.bf16.mxu1 %v10601_v10  ;;  %7051 = vmatprep.subr.bf16.mxu0 %v10602_v48 }
 0x8e6   :  { %3876 = vmatmul.mubr.f32.vlgmr.msra.gmra.mrb[26].mxu1 %v3809_v61  ;;  %3947 = vmatmul.mubr.f32.vlgmr.msra.gmra.mrb[28].mxu0 %v3809_v61 }
 0x8e7   :  { %7021 = vmatpush1.bf16.msra.mxu1 %v10603_v8  ;;  %7053 = vmatpush1.bf16.msra.mxu0 %v10604_v47 }
 0x8e8   :  { %7023 = vmatprep.subr.bf16.mxu1 %v10605_v15  ;;  %7055 = vmatprep.subr.bf16.mxu0 %v10606_v42  ;;  %v10668_v15 = vld [vmem:[#allocation120_spill] sm:$0xff] }
 0x8e9   :  { %4045 = vmatprep.mubr.f32.mxu1 %v10227_v40  ;;  %4116 = vmatprep.mubr.f32.mxu0 %v10227_v40 }
 0x8eb   :  { %7025 = vmatpush1.bf16.msra.mxu1 %v10607_v24  ;;  %7057 = vmatpush1.bf16.msra.mxu0 %v10608_v23  ;;  %v10618_v24 = vld [vmem:[#allocation39_spill] sm:$0xff]  ;;  %v10619_v23 = vld [vmem:[#allocation40_spill] sm:$0xff] }
 0x8ec   :  { %7027 = vmatprep.subr.bf16.mxu1 %v10609_v16  ;;  %7059 = vmatprep.subr.bf16.mxu0 %v10610_v49  ;;  %v10620_v16 = vld [vmem:[#allocation41_spill] sm:$0xff]  ;;  %v10621_v49 = vld [vmem:[#allocation42_spill] sm:$0xff] }
 0x8ef   :  { %7029 = vmatpush1.bf16.msra.mxu1 %v10611_v37  ;;  %7061 = vmatpush1.bf16.msra.mxu0 %v10612_v0  ;;  %v10622_v37 = vld [vmem:[#allocation43_spill] sm:$0xff]  ;;  %v10623_v0 = vld [vmem:[#allocation44_spill] sm:$0xff] }
 0x8f0   :  { %7031 = vmatprep.subr.bf16.mxu1 %v10613_v31  ;;  %7063 = vmatprep.subr.bf16.mxu0 %v10614_v29  ;;  %v10624_v31 = vld [vmem:[#allocation45_spill] sm:$0xff]  ;;  %v10625_v29 = vld [vmem:[#allocation46_spill] sm:$0xff] }
 0x8f3   :  { %7033 = vmatpush1.bf16.msra.mxu1 %v10615_v43  ;;  %7065 = vmatpush1.bf16.msra.mxu0 %v10616_v21  ;;  %v10626_v43 = vld [vmem:[#allocation47_spill] sm:$0xff]  ;;  %v10627_v21 = vld [vmem:[#allocation48_spill] sm:$0xff] }
 0x8f4   :  { %7035 = vmatprep.subr.bf16.mxu1 %v10617_v12  ;;  %7067 = vmatprep.subr.bf16.mxu0 %v10618_v24  ;;  %v10628_v12 = vld [vmem:[#allocation49_spill] sm:$0xff]  ;;  %v10629_v24 = vld [vmem:[#allocation50_spill] sm:$0xff] }
 0x8f7   :  { %7037 = vmatpush1.bf16.msra.mxu1 %v10619_v23  ;;  %7069 = vmatpush1.bf16.msra.mxu0 %v10620_v16  ;;  %v10630_v23 = vld [vmem:[#allocation51_spill] sm:$0xff]  ;;  %v10631_v16 = vld [vmem:[#allocation52_spill] sm:$0xff] }
 0x8f8   :  { %7039 = vmatprep.subr.bf16.mxu1 %v10621_v49  ;;  %7071 = vmatprep.subr.bf16.mxu0 %v10622_v37  ;;  %v10632_v49 = vld [vmem:[#allocation53_spill] sm:$0xff]  ;;  %v10633_v37 = vld [vmem:[#allocation54_spill] sm:$0xff] }
 0x8fb   :  { %7041 = vmatpush1.bf16.msra.mxu1 %v10623_v0  ;;  %7073 = vmatpush1.bf16.msra.mxu0 %v10624_v31  ;;  %v10634_v0 = vld [vmem:[#allocation55_spill] sm:$0xff]  ;;  %v10667_v31 = vld [vmem:[#allocation129_spill] sm:$0xff] }
 0x8fc   :  { %7043 = vmatprep.subr.bf16.mxu1 %v10625_v29  ;;  %7075 = vmatprep.subr.bf16.mxu0 %v10626_v43  ;;  %v10635_v29 = vld [vmem:[#allocation56_spill] sm:$0xff]  ;;  %v10636_v43 = vld [vmem:[#allocation57_spill] sm:$0xff] }
 0x8ff   :  { %7045 = vmatpush1.bf16.msra.mxu1 %v10627_v21  ;;  %7077 = vmatpush1.bf16.msra.mxu0 %v10628_v12  ;;  %v10637_v21 = vld [vmem:[#allocation58_spill] sm:$0xff]  ;;  %v10638_v12 = vld [vmem:[#allocation59_spill] sm:$0xff] }
 0x900   :  { %7047 = vmatprep.subr.bf16.mxu1 %v10629_v24  ;;  %7079 = vmatprep.subr.bf16.mxu0 %v10630_v23  ;;  %v10648_v23 = vld [vmem:[#allocation69_spill] sm:$0xff]  ;;  %v10649_v24 = vld [vmem:[#allocation70_spill] sm:$0xff] }
 0x903   :  { %7049 = vmatpush1.bf16.msra.mxu1 %v10631_v16  ;;  %7081 = vmatpush1.bf16.msra.mxu0 %v10632_v49  ;;  %v10639_v16 = vld [vmem:[#allocation60_spill] sm:$0xff]  ;;  %v10640_v49 = vld [vmem:[#allocation61_spill] sm:$0xff] }
 0x904   :  { %7083 = vmatprep.subr.bf16.mxu1 %v10633_v37  ;;  %7115 = vmatprep.subr.bf16.mxu0 %v10634_v0  ;;  %v10641_v37 = vld [vmem:[#allocation62_spill] sm:$0xff]  ;;  %v10642_v0 = vld [vmem:[#allocation63_spill] sm:$0xff] }
 0x906   :  { %4046 = vmatmul.mubr.f32.vlgmr.msra.gmra.mrb[28].mxu1 %v3809_v61  ;;  %4117 = vmatmul.mubr.f32.vlgmr.msra.gmra.mrb[30].mxu0 %v3809_v61  ;;  %v10643_v61 = vld [vmem:[#allocation64_spill] sm:$0xff] }
 0x907   :  { %7085 = vmatpush1.bf16.msra.mxu1 %v10635_v29  ;;  %7117 = vmatpush1.bf16.msra.mxu0 %v10636_v43  ;;  %v10644_v29 = vld [vmem:[#allocation65_spill] sm:$0xff]  ;;  %v10645_v43 = vld [vmem:[#allocation66_spill] sm:$0xff] }
 0x908   :  { %7087 = vmatprep.subr.bf16.mxu1 %v10637_v21  ;;  %7119 = vmatprep.subr.bf16.mxu0 %v10638_v12  ;;  %v10646_v21 = vld [vmem:[#allocation67_spill] sm:$0xff]  ;;  %v10647_v12 = vld [vmem:[#allocation68_spill] sm:$0xff] }
 0x909   :  { %4269 = vmatprep.mubr.f32.mxu1 %v10227_v40  ;;  %4340 = vmatprep.mubr.f32.mxu0 %v10227_v40 }
 0x90b   :  { %7089 = vmatpush1.bf16.msra.mxu1 %v10639_v16  ;;  %7121 = vmatpush1.bf16.msra.mxu0 %v10640_v49  ;;  %v10650_v16 = vld [vmem:[#allocation71_spill] sm:$0xff]  ;;  %v10651_v49 = vld [vmem:[#allocation72_spill] sm:$0xff] }
 0x90c   :  { %7091 = vmatprep.subr.bf16.mxu1 %v10641_v37  ;;  %7123 = vmatprep.subr.bf16.mxu0 %v10642_v0  ;;  %v10652_v37 = vld [vmem:[#allocation73_spill] sm:$0xff]  ;;  %v10653_v0 = vld [vmem:[#allocation74_spill] sm:$0xff] }
 0x90f   :  { %7093 = vmatpush1.bf16.msra.mxu1 %v10643_v61  ;;  %7125 = vmatpush1.bf16.msra.mxu0 %v10644_v29  ;;  %v10654_v61 = vld [vmem:[#allocation75_spill] sm:$0xff]  ;;  %v10655_v29 = vld [vmem:[#allocation76_spill] sm:$0xff] }
 0x910   :  { %7095 = vmatprep.subr.bf16.mxu1 %v10645_v43  ;;  %7127 = vmatprep.subr.bf16.mxu0 %v10646_v21  ;;  %v10656_v43 = vld [vmem:[#allocation77_spill] sm:$0xff]  ;;  %v10657_v21 = vld [vmem:[#allocation78_spill] sm:$0xff] }
 0x913   :  { %7097 = vmatpush1.bf16.msra.mxu1 %v10647_v12  ;;  %7129 = vmatpush1.bf16.msra.mxu0 %v10648_v23  ;;  %v10658_v12 = vld [vmem:[#allocation79_spill] sm:$0xff]  ;;  %v10659_v23 = vld [vmem:[#allocation80_spill] sm:$0xff] }
 0x914   :  { %7099 = vmatprep.subr.bf16.mxu1 %v10649_v24  ;;  %7131 = vmatprep.subr.bf16.mxu0 %v10650_v16  ;;  %v10660_v24 = vld [vmem:[#allocation81_spill] sm:$0xff]  ;;  %v10661_v16 = vld [vmem:[#allocation82_spill] sm:$0xff] }
 0x917   :  { %7101 = vmatpush1.bf16.msra.mxu1 %v10651_v49  ;;  %7133 = vmatpush1.bf16.msra.mxu0 %v10652_v37  ;;  %v10662_v49 = vld [vmem:[#allocation83_spill] sm:$0xff]  ;;  %v10663_v37 = vld [vmem:[#allocation84_spill] sm:$0xff] }
 0x918   :  { %7103 = vmatprep.subr.bf16.mxu1 %v10653_v0  ;;  %7135 = vmatprep.subr.bf16.mxu0 %v10654_v61  ;;  %v10664_v0 = vld [vmem:[#allocation85_spill] sm:$0xff]  ;;  %v10665_v61 = vld [vmem:[#allocation86_spill] sm:$0xff] }
 0x91b   :  { %7105 = vmatpush1.bf16.msra.mxu1 %v10655_v29  ;;  %7137 = vmatpush1.bf16.msra.mxu0 %v10656_v43  ;;  %v10666_v29 = vld [vmem:[#allocation87_spill] sm:$0xff] }
 0x91c   :  { %7107 = vmatprep.subr.bf16.mxu1 %v10657_v21  ;;  %7139 = vmatprep.subr.bf16.mxu0 %v10658_v12 }
 0x91f   :  { %7109 = vmatpush1.bf16.msra.mxu1 %v10659_v23  ;;  %7141 = vmatpush1.bf16.msra.mxu0 %v10660_v24 }
 0x920   :  { %7111 = vmatprep.subr.bf16.mxu1 %v10661_v16  ;;  %7143 = vmatprep.subr.bf16.mxu0 %v10662_v49  ;;  %v10669_v49 = vld [vmem:[#allocation130_spill] sm:$0xff] }
 0x923   :  { %7113 = vmatpush1.bf16.msra.mxu1 %v10663_v37  ;;  %7145 = vmatpush1.bf16.msra.mxu0 %v10664_v0 }
 0x924   :  { %7147 = vmatprep.subr.bf16.mxu1 %v10665_v61  ;;  %7179 = vmatprep.subr.bf16.mxu0 %v10666_v29  ;;  %v10670_v29 = vld [vmem:[#allocation121_spill] sm:$0xff] }
 0x9b9   :  { %v3877_v43 = vpop.f32.mrb[26].mxu1  ;;  %v3948_v21 = vpop.f32.mrb[28].mxu0 }
 0x9ba   :  { %v3953_v12 = vadd.f32 %v3877_v43, %v10667_v31  ;;  %v3879_v42 = vpop.f32.mrb[27].mxu1  ;;  %v3950_v23 = vpop.f32.mrb[29].mxu0  ;;  %v3955_v37 = vadd.f32 %v3948_v21, %v10669_v49 }
 0x9bb   :  { %v3954_v24 = vadd.f32 %v3879_v42, %v10668_v15  ;;  %v3956_v10 = vadd.f32 %v3950_v23, %v10670_v29 }
 0x9bc   :  { %v5696_v47 = vmul.f32 -1.442695, %v3953_v12 }
 0x9bd   :  { %v5697_v16 = vmul.f32 -1.442695, %v3954_v24  ;;  %v5698_v43 = vmul.f32 -1.442695, %v3956_v10 }
 0x9be   :  { %7794 = vpow2.f32 %v5696_v47 }
 0x9bf   :  { %7796 = vpow2.f32 %v5697_v16 }
 0x9c0   :  { %7798 = vtanh.f32 %v3955_v37 }
 0x9c8   :  { %v7795_v8 = vpop.eup %7794 }
 0x9c9   :  { %v7797_v0 = vpop.eup %7796  ;;  %v3960_v48 = vadd.f32 1.0, %v7795_v8 }
 0x9ca   :  { %v3966_v61 = vadd.f32 1.0, %v7797_v0  ;;  %v7799_v31 = vpop.eup %7798 }
 0x9cb   :  { %7800 = vrcp.f32 %v3960_v48 }
 0x9cc   :  { %7802 = vrcp.f32 %v3966_v61 }
 0x9cd   :  { %7804 = vpow2.f32 %v5698_v43 }
 0x9d5   :  { %v7801_v55 = vpop.eup %7800 }
 0x9d6   :  { %v7803_v42 = vpop.eup %7802  ;;  %v3977_v12 = vmul.f32 %v7801_v55, %v7799_v31 }
 0x9d7   :  { %v3976_v47 = vmul.f32 %v7803_v42, %v9404_v54  ;;  %v7805_v31 = vpop.eup %7804 }
 0x9d8   :  { %v3973_v15 = vadd.f32 1.0, %v7805_v31 }
 0x9d9   :  { %v9544_v24 = vadd.f32 %v3977_v12, %v3976_v47  ;;  %v4047_v16 = vpop.f32.mrb[28].mxu1  ;;  %v4118_v21 = vpop.f32.mrb[30].mxu0 }
 0x9da   :  { %v4127_v49 = vrot.slane %v4047_v16, 2  ;;  %v4131_v8 = vrot.slane %v4047_v16, 3  ;;  %v4049_v37 = vpop.f32.mrb[29].mxu1  ;;  %v4120_v0 = vpop.f32.mrb[31].mxu0  ;;  %v4129_v4 = vrot.slane %v4118_v21, 2 }
 0x9db   :  { %v4128_v48 = vrot.slane %v4049_v37, 2  ;;  %v4132_v61 = vrot.slane %v4049_v37, 3  ;;  %v4130_v29 = vrot.slane %v4120_v0, 2  ;;  %v4134_v16 = vrot.slane %v4120_v0, 3 }
 0x9dc   :  { %v4143_v23 = vadd.f32 %v4127_v49, %v10452_v1  ;;  %v4147_v10 = vadd.f32 %v4131_v8, %v10525_v25  ;;  %v4133_v37 = vrot.slane %v4118_v21, 3 }
 0x9dd   :  { %v4144_v43 = vadd.f32 %v4128_v48, %v8730_v45  ;;  %v4148_v55 = vadd.f32 %v4132_v61, %v10526_v38  ;;  %v4146_v49 = vadd.f32 %v4130_v29, %v10453_v5  ;;  %v4150_v8 = vadd.f32 %v4134_v16, %v10454_v36 }
 0x9de   :  { %v5699_v54 = vmul.f32 -1.442695, %v4143_v23  ;;  %v5700_v42 = vmul.f32 -1.442695, %v4147_v10  ;;  %v4145_v48 = vadd.f32 %v4129_v4, %v10455_v46  ;;  %v4149_v61 = vadd.f32 %v4133_v37, %v10456_v32 }
 0x9df   :  { %v5701_v12 = vmul.f32 -1.442695, %v4144_v43  ;;  %v5702_v47 = vmul.f32 -1.442695, %v4148_v55  ;;  %v5703_v23 = vmul.f32 -1.442695, %v4146_v49 }
 0x9e0   :  { %7806 = vpow2.f32 %v5699_v54  ;;  %v5704_v10 = vmul.f32 -1.442695, %v4150_v8 }
 0x9e1   :  { %7808 = vpow2.f32 %v5700_v42 }
 0x9e2   :  { %7810 = vpow2.f32 %v5701_v12 }
 0x9e3   :  { %7812 = vpow2.f32 %v5702_v47 }
 0x9e4   :  { %7814 = vrcp.f32 %v3973_v15 }
 0x9e5   :  { %7816 = vtanh.f32 %v9544_v24 }
 0x9e6   :  { %7818 = vtanh.f32 %v4145_v48 }
 0x9e7   :  { %7820 = vtanh.f32 %v4149_v61 }
 0x9e8   :  { %7822 = vpow2.f32 %v5703_v23 }
 0x9e9   :  { %7824 = vpow2.f32 %v5704_v10 }
 0x9ea   :  { %v7807_v0 = vpop.eup %7806 }
 0x9eb   :  { %v7809_v43 = vpop.eup %7808  ;;  %v4157_v21 = vadd.f32 1.0, %v7807_v0 }
 0x9ec   :  { %v7811_v55 = vpop.eup %7810  ;;  %v4158_v31 = vadd.f32 1.0, %v7809_v43 }
 0x9ed   :  { %v7813_v29 = vpop.eup %7812  ;;  %7826 = vrcp.f32 %v4157_v21  ;;  %v4169_v15 = vadd.f32 1.0, %v7811_v55  ;;  %v4191_v55 = vrot.slane %v9440_v33, 7 }
 0x9ee   :  { %7828 = vrcp.f32 %v4158_v31  ;;  %v4170_v4 = vadd.f32 1.0, %v7813_v29  ;;  %v7815_v54 = vpop.eup %7814  ;;  %v4192_v31 = vrot.slane %v9444_v6, 7 }
 0x9ef   :  { %7830 = vrcp.f32 %v4169_v15  ;;  %v7817_v42 = vpop.eup %7816 }
 0x9f0   :  { %7832 = vrcp.f32 %v4170_v4  ;;  %v3980_v12 = vmul.f32 %v7817_v42, %v7815_v54  ;;  %v7819_v47 = vpop.eup %7818 }
 0x9f1   :  { %v7821_v37 = vpop.eup %7820 }
 0x9f2   :  { %4270 = vmatmul.mubr.f32.vlgmr.msra.gmra.mrb[30].mxu1 %v3980_v12  ;;  %v5189_v16 = vrot.slane %v3980_v12, %v8991_v28  ;;  %4341 = vmatmul.mubr.f32.vlgmr.msra.gmra.mrb[32].mxu0 %v3980_v12  ;;  %v7823_v49 = vpop.eup %7822 }
 0x9f3   :  { %7149 = vmatpush1.bf16.msra.mxu1 %v10527_v39  ;;  %7181 = vmatpush1.bf16.msra.mxu0 %v10528_v30  ;;  %v7825_v61 = vpop.eup %7824  ;;  %v4183_v29 = vadd.f32 1.0, %v7823_v49 }
 0x9f4   :  { %v5190_v8 = vcombine.high %v5189_v16, %v5189_v16  ;;  %7151 = vmatprep.subr.bf16.mxu1 %v10529_v27  ;;  %7183 = vmatprep.subr.bf16.mxu0 %v10599_v11  ;;  %v5197_v48 = vrot.slane %v5189_v16, %v8991_v28  ;;  %v4184_v54 = vadd.f32 1.0, %v7825_v61 }
 0x9f5   :  { %4417 = vmatprep.mubr.f32.mxu1 %v10227_v40  ;;  %4488 = vmatprep.mubr.f32.mxu0 %v10227_v40  ;;  %7834 = vrcp.f32 %v4183_v29  ;;  %v10674_v29 = vld [vmem:[#allocation23_spill] sm:$0xff] }
 0x9f6   :  { %v5294_v10 = vrot.slane %v5197_v48, %v10387_v13  ;;  %v5204_v0 = vrot.slane %v5190_v8, %v8991_v28  ;;  %7836 = vrcp.f32 %v4184_v54  ;;  %v10677_v54 = vld [vmem:[#allocation26_spill] sm:$0xff] }
 0x9f7   :  { %v7827_v23 = vpop.eup %7826  ;;  %7153 = vmatpush1.bf16.msra.mxu1 %v10388_v53  ;;  %7185 = vmatpush1.bf16.msra.mxu0 %v10389_v35 }
 0x9f8   :  { %v7829_v43 = vpop.eup %7828  ;;  %v4197_v21 = vmul.f32 %v7827_v23, %v7819_v47  ;;  %7155 = vmatprep.subr.bf16.mxu1 %v10390_v62  ;;  %7187 = vmatprep.subr.bf16.mxu0 %v10391_v34  ;;  %v9573_v42 = vsel %vm5333_vm7, %v9433_v20, %v5294_v10  ;;  %v5298_v33 = vrot.slane %v5204_v0, %v10387_v13 }
 0x9f9   :  { %v7831_v15 = vpop.eup %7830  ;;  %v4198_v4 = vmul.f32 %v7829_v43, %v7821_v37 }
 0x9fa   :  { %v7833_v12 = vpop.eup %7832  ;;  %v4195_v6 = vmul.f32 %v7831_v15, %v4191_v55  ;;  %v9578_v16 = vsel %vm5333_vm7, %v9438_v26, %v5298_v33  ;;  %v10672_v55 = vld [vmem:[#allocation117_spill] sm:$0xff]  ;;  %v10675_v15 = vld [vmem:[#allocation24_spill] sm:$0xff]  ;;  %v10678_v33 = vld [vmem:[#allocation27_spill] sm:$0xff] }
 0x9fb   :  { %v4196_v47 = vmul.f32 %v7833_v12, %v4192_v31  ;;  %7157 = vmatpush1.bf16.msra.mxu1 %v10392_v56  ;;  %7189 = vmatpush1.bf16.msra.mxu0 %v10393_v19  ;;  %v10673_v31 = vld [vmem:[#allocation22_spill] sm:$0xff]  ;;  %v10679_v12 = vld [vmem:[#allocation28_spill] sm:$0xff] }
 0x9fc   :  { %v9580_v49 = vadd.f32 %v4197_v21, %v4195_v6  ;;  %7159 = vmatprep.subr.bf16.mxu1 %v10394_v52  ;;  %7191 = vmatprep.subr.bf16.mxu0 %v10395_v44  ;;  %v10671_v21 = vld [vmem:[#allocation116_spill] sm:$0xff]  ;;  %v10680_v6 = vld [vmem:[#allocation29_spill] sm:$0xff] }
 0x9fd   :  { %v9584_v37 = vadd.f32 %v4198_v4, %v4196_v47  ;;  %v10676_v4 = vld [vmem:[#allocation25_spill] sm:$0xff]  ;;  %v10681_v47 = vld [vmem:[#allocation30_spill] sm:$0xff] }
 0x9fe   :  { %7838 = vtanh.f32 %v9580_v49 }
 0x9ff   :  { %7840 = vtanh.f32 %v9584_v37  ;;  %7161 = vmatpush1.bf16.msra.mxu1 %v10396_v41  ;;  %7193 = vmatpush1.bf16.msra.mxu0 %v10397_v22  ;;  %v7835_v20 = vpop.eup %7834 }
 0xa00   :  { %7163 = vmatprep.subr.bf16.mxu1 %v10398_v14  ;;  %7195 = vmatprep.subr.bf16.mxu0 %v10399_v58  ;;  %v7837_v26 = vpop.eup %7836 }
 0xa03   :  { %7165 = vmatpush1.bf16.msra.mxu1 %v10461_v9  ;;  %7197 = vmatpush1.bf16.msra.mxu0 %v10462_v57 }
 0xa04   :  { %7167 = vmatprep.subr.bf16.mxu1 %v10463_v51  ;;  %7199 = vmatprep.subr.bf16.mxu0 %v10464_v50 }
 0xa07   :  { %7169 = vmatpush1.bf16.msra.mxu1 %v10465_v2  ;;  %7201 = vmatpush1.bf16.msra.mxu0 %v10400_v60 }
 0xa08   :  { %v7839_v8 = vpop.eup %7838  ;;  %7171 = vmatprep.subr.bf16.mxu1 %v10401_v3  ;;  %7203 = vmatprep.subr.bf16.mxu0 %v10402_v59 }
 0xa09   :  { %v7841_v48 = vpop.eup %7840  ;;  %v4203_v61 = vmul.f32 %v7839_v8, %v7835_v20  ;;  %v10682_v20 = vld [vmem:[#allocation31_spill] sm:$0xff]  ;;  %v10684_v8 = vld [vmem:[#allocation33_spill] sm:$0xff] }
 0xa0a   :  { %v4204_v23 = vmul.f32 %v7841_v48, %v7837_v26  ;;  %v10683_v26 = vld [vmem:[#allocation32_spill] sm:$0xff]  ;;  %v10685_v48 = vld [vmem:[#allocation34_spill] sm:$0xff] }
 0xa0b   :  { %v4349_v10 = vrot.slane %v4203_v61, 6  ;;  %7173 = vmatpush1.bf16.msra.mxu1 %v10403_v63  ;;  %7205 = vmatpush1.bf16.msra.mxu0 %v10404_v18  ;;  %v10686_v61 = vld [vmem:[#allocation35_spill] sm:$0xff] }
 0xa0c   :  { %v4350_v0 = vrot.slane %v4204_v23, 5  ;;  %7175 = vmatprep.subr.bf16.mxu1 %v10340_v17  ;;  %7207 = vmatprep.subr.bf16.mxu0 %v10341_v7  ;;  %v10687_v23 = vld [vmem:[#allocation36_spill] sm:$0xff] }
 0xa0e   :  { %v4351_v43 = vsel %vm1082_vm2, %v4350_v0, %v4349_v10  ;;  %v10688_v10 = vld [vmem:[#allocation37_spill] sm:$0xff]  ;;  %v10689_v0 = vld [vmem:[#allocation38_spill] sm:$0xff] }
 0xa0f   :  { %7177 = vmatpush1.bf16.msra.mxu1 %v10671_v21  ;;  %7209 = vmatpush1.bf16.msra.mxu0 %v10672_v55 }
 0xa10   :  { %7211 = vmatprep.subr.bf16.mxu1 %v10673_v31  ;;  %7243 = vmatprep.subr.bf16.mxu0 %v10674_v29  ;;  %v10690_v31 = vld [vmem:[#allocation39_spill] sm:$0xff]  ;;  %v10691_v29 = vld [vmem:[#allocation40_spill] sm:$0xff] }
 0xa12   :  { %4418 = vmatmul.mubr.f32.vlgmr.msra.gmra.mrb[30].mxu1 %v4351_v43  ;;  %4489 = vmatmul.mubr.f32.vlgmr.msra.gmra.mrb[32].mxu0 %v4351_v43 }
 0xa13   :  { %7213 = vmatpush1.bf16.msra.mxu1 %v10675_v15  ;;  %7245 = vmatpush1.bf16.msra.mxu0 %v10676_v4  ;;  %v10692_v15 = vld [vmem:[#allocation41_spill] sm:$0xff]  ;;  %v10693_v4 = vld [vmem:[#allocation42_spill] sm:$0xff] }
 0xa14   :  { %7215 = vmatprep.subr.bf16.mxu1 %v10677_v54  ;;  %7247 = vmatprep.subr.bf16.mxu0 %v10678_v33  ;;  %v10694_v54 = vld [vmem:[#allocation43_spill] sm:$0xff]  ;;  %v10695_v33 = vld [vmem:[#allocation44_spill] sm:$0xff] }
 0xa15   :  { %4587 = vmatprep.mubr.f32.mxu1 %v10227_v40  ;;  %4658 = vmatprep.mubr.f32.mxu0 %v10227_v40 }
 0xa17   :  { %7217 = vmatpush1.bf16.msra.mxu1 %v10679_v12  ;;  %7249 = vmatpush1.bf16.msra.mxu0 %v10680_v6  ;;  %v10696_v12 = vld [vmem:[#allocation45_spill] sm:$0xff]  ;;  %v10697_v6 = vld [vmem:[#allocation46_spill] sm:$0xff] }
 0xa18   :  { %7219 = vmatprep.subr.bf16.mxu1 %v10681_v47  ;;  %7251 = vmatprep.subr.bf16.mxu0 %v10682_v20  ;;  %v10698_v47 = vld [vmem:[#allocation47_spill] sm:$0xff]  ;;  %v10699_v20 = vld [vmem:[#allocation48_spill] sm:$0xff] }
 0xa1b   :  { %7221 = vmatpush1.bf16.msra.mxu1 %v10683_v26  ;;  %7253 = vmatpush1.bf16.msra.mxu0 %v10684_v8  ;;  %v10700_v26 = vld [vmem:[#allocation49_spill] sm:$0xff]  ;;  %v10701_v8 = vld [vmem:[#allocation50_spill] sm:$0xff] }
 0xa1c   :  { %7223 = vmatprep.subr.bf16.mxu1 %v10685_v48  ;;  %7255 = vmatprep.subr.bf16.mxu0 %v10686_v61  ;;  %v10702_v48 = vld [vmem:[#allocation51_spill] sm:$0xff]  ;;  %v10703_v61 = vld [vmem:[#allocation52_spill] sm:$0xff] }
 0xa1f   :  { %7225 = vmatpush1.bf16.msra.mxu1 %v10687_v23  ;;  %7257 = vmatpush1.bf16.msra.mxu0 %v10688_v10  ;;  %v10704_v23 = vld [vmem:[#allocation53_spill] sm:$0xff]  ;;  %v10705_v10 = vld [vmem:[#allocation54_spill] sm:$0xff] }
 0xa20   :  { %7227 = vmatprep.subr.bf16.mxu1 %v10689_v0  ;;  %7259 = vmatprep.subr.bf16.mxu0 %v10690_v31  ;;  %v10706_v0 = vld [vmem:[#allocation55_spill] sm:$0xff]  ;;  %v10707_v31 = vld [vmem:[#allocation56_spill] sm:$0xff] }
 0xa23   :  { %7229 = vmatpush1.bf16.msra.mxu1 %v10691_v29  ;;  %7261 = vmatpush1.bf16.msra.mxu0 %v10692_v15  ;;  %v10708_v29 = vld [vmem:[#allocation57_spill] sm:$0xff]  ;;  %v10709_v15 = vld [vmem:[#allocation58_spill] sm:$0xff] }
 0xa24   :  { %7231 = vmatprep.subr.bf16.mxu1 %v10693_v4  ;;  %7263 = vmatprep.subr.bf16.mxu0 %v10694_v54  ;;  %v10710_v4 = vld [vmem:[#allocation59_spill] sm:$0xff]  ;;  %v10711_v54 = vld [vmem:[#allocation60_spill] sm:$0xff] }
 0xa27   :  { %7233 = vmatpush1.bf16.msra.mxu1 %v10695_v33  ;;  %7265 = vmatpush1.bf16.msra.mxu0 %v10696_v12  ;;  %v10712_v33 = vld [vmem:[#allocation61_spill] sm:$0xff]  ;;  %v10713_v12 = vld [vmem:[#allocation62_spill] sm:$0xff] }
 0xa28   :  { %7235 = vmatprep.subr.bf16.mxu1 %v10697_v6  ;;  %7267 = vmatprep.subr.bf16.mxu0 %v10698_v47  ;;  %v10714_v6 = vld [vmem:[#allocation63_spill] sm:$0xff]  ;;  %v10716_v47 = vld [vmem:[#allocation65_spill] sm:$0xff] }
 0xa2b   :  { %7237 = vmatpush1.bf16.msra.mxu1 %v10699_v20  ;;  %7269 = vmatpush1.bf16.msra.mxu0 %v10700_v26  ;;  %v10717_v20 = vld [vmem:[#allocation66_spill] sm:$0xff]  ;;  %v10718_v26 = vld [vmem:[#allocation67_spill] sm:$0xff] }
 0xa2c   :  { %7239 = vmatprep.subr.bf16.mxu1 %v10701_v8  ;;  %7271 = vmatprep.subr.bf16.mxu0 %v10702_v48  ;;  %v10719_v8 = vld [vmem:[#allocation68_spill] sm:$0xff]  ;;  %v10720_v48 = vld [vmem:[#allocation69_spill] sm:$0xff] }
 0xa2f   :  { %7241 = vmatpush1.bf16.msra.mxu1 %v10703_v61  ;;  %7273 = vmatpush1.bf16.msra.mxu0 %v10704_v23  ;;  %v10721_v61 = vld [vmem:[#allocation70_spill] sm:$0xff]  ;;  %v10722_v23 = vld [vmem:[#allocation71_spill] sm:$0xff] }
 0xa30   :  { %7275 = vmatprep.subr.bf16.mxu1 %v10705_v10  ;;  %7307 = vmatprep.subr.bf16.mxu0 %v10706_v0  ;;  %v10723_v10 = vld [vmem:[#allocation72_spill] sm:$0xff]  ;;  %v10724_v0 = vld [vmem:[#allocation73_spill] sm:$0xff] }
 0xa32   :  { %4588 = vmatmul.mubr.f32.vlgmr.msra.gmra.mrb[32].mxu1 %v4351_v43  ;;  %4659 = vmatmul.mubr.f32.vlgmr.msra.gmra.mrb[34].mxu0 %v4351_v43  ;;  %v10715_v43 = vld [vmem:[#allocation64_spill] sm:$0xff] }
 0xa33   :  { %7277 = vmatpush1.bf16.msra.mxu1 %v10707_v31  ;;  %7309 = vmatpush1.bf16.msra.mxu0 %v10708_v29  ;;  %v10725_v31 = vld [vmem:[#allocation74_spill] sm:$0xff]  ;;  %v10726_v29 = vld [vmem:[#allocation75_spill] sm:$0xff] }
 0xa34   :  { %7279 = vmatprep.subr.bf16.mxu1 %v10709_v15  ;;  %7311 = vmatprep.subr.bf16.mxu0 %v10710_v4  ;;  %v10727_v15 = vld [vmem:[#allocation76_spill] sm:$0xff]  ;;  %v10728_v4 = vld [vmem:[#allocation77_spill] sm:$0xff] }
 0xa35   :  { %4811 = vmatprep.mubr.f32.mxu1 %v10227_v40  ;;  %4882 = vmatprep.mubr.f32.mxu0 %v10227_v40 }
 0xa37   :  { %7281 = vmatpush1.bf16.msra.mxu1 %v10711_v54  ;;  %7313 = vmatpush1.bf16.msra.mxu0 %v10712_v33  ;;  %v10729_v54 = vld [vmem:[#allocation78_spill] sm:$0xff]  ;;  %v10730_v33 = vld [vmem:[#allocation79_spill] sm:$0xff] }
 0xa38   :  { %7283 = vmatprep.subr.bf16.mxu1 %v10713_v12  ;;  %7315 = vmatprep.subr.bf16.mxu0 %v10714_v6  ;;  %v10731_v12 = vld [vmem:[#allocation80_spill] sm:$0xff]  ;;  %v10732_v6 = vld [vmem:[#allocation81_spill] sm:$0xff] }
 0xa3b   :  { %7285 = vmatpush1.bf16.msra.mxu1 %v10715_v43  ;;  %7317 = vmatpush1.bf16.msra.mxu0 %v10716_v47  ;;  %v10733_v43 = vld [vmem:[#allocation82_spill] sm:$0xff]  ;;  %v10734_v47 = vld [vmem:[#allocation83_spill] sm:$0xff] }
 0xa3c   :  { %7287 = vmatprep.subr.bf16.mxu1 %v10717_v20  ;;  %7319 = vmatprep.subr.bf16.mxu0 %v10718_v26  ;;  %v10735_v20 = vld [vmem:[#allocation84_spill] sm:$0xff]  ;;  %v10736_v26 = vld [vmem:[#allocation85_spill] sm:$0xff] }
 0xa3f   :  { %7289 = vmatpush1.bf16.msra.mxu1 %v10719_v8  ;;  %7321 = vmatpush1.bf16.msra.mxu0 %v10720_v48  ;;  %v10737_v8 = vld [vmem:[#allocation86_spill] sm:$0xff]  ;;  %v10738_v48 = vld [vmem:[#allocation87_spill] sm:$0xff] }
 0xa40   :  { %7291 = vmatprep.subr.bf16.mxu1 %v10721_v61  ;;  %7323 = vmatprep.subr.bf16.mxu0 %v10722_v23 }
 0xa43   :  { %7293 = vmatpush1.bf16.msra.mxu1 %v10723_v10  ;;  %7325 = vmatpush1.bf16.msra.mxu0 %v10724_v0  ;;  %v10739_v10 = vld [vmem:[#allocation129_spill] sm:$0xff] }
 0xa44   :  { %7295 = vmatprep.subr.bf16.mxu1 %v10725_v31  ;;  %7327 = vmatprep.subr.bf16.mxu0 %v10726_v29 }
 0xa47   :  { %7297 = vmatpush1.bf16.msra.mxu1 %v10727_v15  ;;  %7329 = vmatpush1.bf16.msra.mxu0 %v10728_v4  ;;  %v10740_v15 = vld [vmem:[#allocation120_spill] sm:$0xff] }
 0xa48   :  { %7299 = vmatprep.subr.bf16.mxu1 %v10729_v54  ;;  %7331 = vmatprep.subr.bf16.mxu0 %v10730_v33 }
 0xa4b   :  { %7301 = vmatpush1.bf16.msra.mxu1 %v10731_v12  ;;  %7333 = vmatpush1.bf16.msra.mxu0 %v10732_v6  ;;  %v10741_v12 = vld [vmem:[#allocation130_spill] sm:$0xff] }
 0xa4c   :  { %7303 = vmatprep.subr.bf16.mxu1 %v10733_v43  ;;  %7335 = vmatprep.subr.bf16.mxu0 %v10734_v47 }
 0xa4f   :  { %7305 = vmatpush1.bf16.msra.mxu1 %v10735_v20  ;;  %7337 = vmatpush1.bf16.msra.mxu0 %v10736_v26 }
 0xa50   :  { %7339 = vmatprep.subr.bf16.mxu1 %v10737_v8  ;;  %7371 = vmatprep.subr.bf16.mxu0 %v10738_v48  ;;  %v10742_v8 = vld [vmem:[#allocation121_spill] sm:$0xff] }
 0xae5   :  { %v4419_v61 = vpop.f32.mrb[30].mxu1  ;;  %v4490_v23 = vpop.f32.mrb[32].mxu0 }
 0xae6   :  { %v4495_v0 = vadd.f32 %v4419_v61, %v10739_v10  ;;  %v4421_v31 = vpop.f32.mrb[31].mxu1  ;;  %v4492_v29 = vpop.f32.mrb[33].mxu0  ;;  %v4497_v6 = vadd.f32 %v4490_v23, %v10741_v12 }
 0xae7   :  { %v4496_v4 = vadd.f32 %v4421_v31, %v10740_v15  ;;  %v4498_v48 = vadd.f32 %v4492_v29, %v10742_v8 }
 0xae8   :  { %v5705_v54 = vmul.f32 -1.442695, %v4495_v0 }
 0xae9   :  { %v5706_v33 = vmul.f32 -1.442695, %v4496_v4  ;;  %v5707_v61 = vmul.f32 -1.442695, %v4498_v48 }
 0xaea   :  { %7842 = vpow2.f32 %v5705_v54 }
 0xaeb   :  { %7844 = vpow2.f32 %v5706_v33 }
 0xaec   :  { %7846 = vtanh.f32 %v4497_v6 }
 0xaf4   :  { %v7843_v43 = vpop.eup %7842 }
 0xaf5   :  { %v7845_v47 = vpop.eup %7844  ;;  %v4502_v20 = vadd.f32 1.0, %v7843_v43 }
 0xaf6   :  { %v4508_v26 = vadd.f32 1.0, %v7845_v47  ;;  %v7847_v10 = vpop.eup %7846 }
 0xaf7   :  { %7848 = vrcp.f32 %v4502_v20 }
 0xaf8   :  { %7850 = vrcp.f32 %v4508_v26 }
 0xaf9   :  { %7852 = vpow2.f32 %v5707_v61 }
 0xb01   :  { %v7849_v55 = vpop.eup %7848 }
 0xb02   :  { %v7851_v31 = vpop.eup %7850  ;;  %v4519_v0 = vmul.f32 %v7849_v55, %v7847_v10 }
 0xb03   :  { %v4518_v4 = vmul.f32 %v7851_v31, %v9544_v24  ;;  %v7853_v10 = vpop.eup %7852 }
 0xb04   :  { %v4515_v15 = vadd.f32 1.0, %v7853_v10 }
 0xb05   :  { %v9684_v54 = vadd.f32 %v4519_v0, %v4518_v4  ;;  %v4589_v23 = vpop.f32.mrb[32].mxu1  ;;  %v4660_v33 = vpop.f32.mrb[34].mxu0 }
 0xb06   :  { %v4669_v12 = vrot.slane %v4589_v23, 1  ;;  %v4673_v43 = vrot.slane %v4589_v23, 2  ;;  %v4591_v6 = vpop.f32.mrb[33].mxu1  ;;  %v4662_v47 = vpop.f32.mrb[35].mxu0  ;;  %v4671_v21 = vrot.slane %v4660_v33, 1 }
 0xb07   :  { %v4670_v20 = vrot.slane %v4591_v6, 1  ;;  %v4674_v26 = vrot.slane %v4591_v6, 2  ;;  %v4672_v8 = vrot.slane %v4662_v47, 1  ;;  %v4676_v23 = vrot.slane %v4662_v47, 2 }
 0xb08   :  { %v4685_v29 = vadd.f32 %v4669_v12, %v10452_v1  ;;  %v4689_v48 = vadd.f32 %v4673_v43, %v10525_v25  ;;  %v4675_v6 = vrot.slane %v4660_v33, 2 }
 0xb09   :  { %v4686_v61 = vadd.f32 %v4670_v20, %v8730_v45  ;;  %v4690_v55 = vadd.f32 %v4674_v26, %v10526_v38  ;;  %v4688_v1 = vadd.f32 %v4672_v8, %v10453_v5  ;;  %v4692_v45 = vadd.f32 %v4676_v23, %v10454_v36 }
 0xb0a   :  { %v5708_v24 = vmul.f32 -1.442695, %v4685_v29  ;;  %v5709_v31 = vmul.f32 -1.442695, %v4689_v48  ;;  %v4687_v38 = vadd.f32 %v4671_v21, %v10455_v46  ;;  %v4691_v25 = vadd.f32 %v4675_v6, %v10456_v32 }
 0xb0b   :  { %v5710_v0 = vmul.f32 -1.442695, %v4686_v61  ;;  %v5711_v4 = vmul.f32 -1.442695, %v4690_v55  ;;  %v5712_v12 = vmul.f32 -1.442695, %v4688_v1 }
 0xb0c   :  { %7854 = vpow2.f32 %v5708_v24  ;;  %v5713_v43 = vmul.f32 -1.442695, %v4692_v45  ;;  %v4733_v6 = vrot.slane %v9580_v49, 7 }
 0xb0d   :  { %7856 = vpow2.f32 %v5709_v31 }
 0xb0e   :  { %7858 = vpow2.f32 %v5710_v0 }
 0xb0f   :  { %7860 = vpow2.f32 %v5711_v4 }
 0xb10   :  { %7862 = vrcp.f32 %v4515_v15 }
 0xb11   :  { %7864 = vtanh.f32 %v9684_v54 }
 0xb12   :  { %7866 = vtanh.f32 %v4687_v38 }
 0xb13   :  { %7868 = vtanh.f32 %v4691_v25 }
 0xb14   :  { %7870 = vpow2.f32 %v5712_v12 }
 0xb15   :  { %7872 = vpow2.f32 %v5713_v43  ;;  %v5350_v43 = vld [vmem:[#allocation11 + $0x40] sm:$0xff] }
 0xb16   :  { %v7855_v47 = vpop.eup %7854 }
 0xb17   :  { %v7857_v20 = vpop.eup %7856  ;;  %v4699_v33 = vadd.f32 1.0, %v7855_v47  ;;  %v5351_v47 = vld [vmem:[#allocation11 + $0x48] sm:$0xff] }
 0xb18   :  { %v7859_v26 = vpop.eup %7858  ;;  %v4700_v29 = vadd.f32 1.0, %v7857_v20  ;;  %v7418_v20 = vpack.c.bf16 %v5351_v47, %v5350_v43 }
 0xb19   :  { %v7861_v5 = vpop.eup %7860  ;;  %7874 = vrcp.f32 %v4699_v33  ;;  %v4711_v36 = vadd.f32 1.0, %v7859_v26  ;;  %v5352_v33 = vld [vmem:[#allocation11 + $0x50] sm:$0xff]  ;;  %v5353_v26 = vld [vmem:[#allocation11 + $0x58] sm:$0xff] }
 0xb1a   :  { %7876 = vrcp.f32 %v4700_v29  ;;  %v4712_v46 = vadd.f32 1.0, %v7861_v5  ;;  %v7863_v21 = vpop.eup %7862  ;;  %v7422_v29 = vpack.c.bf16 %v5353_v26, %v5352_v33  ;;  %v5354_v5 = vld [vmem:[#allocation11 + $0x60] sm:$0xff] }
 0xb1b   :  { %7878 = vrcp.f32 %v4711_v36  ;;  %v7865_v32 = vpop.eup %7864  ;;  %v5355_v36 = vld [vmem:[#allocation11 + $0x68] sm:$0xff] }
 0xb1c   :  { %7880 = vrcp.f32 %v4712_v46  ;;  %v4522_v15 = vmul.f32 %v7865_v32, %v7863_v21  ;;  %v7867_v8 = vpop.eup %7866  ;;  %v7426_v46 = vpack.c.bf16 %v5355_v36, %v5354_v5  ;;  %v5356_v21 = vld [vmem:[#allocation11 + $0x70] sm:$0xff]  ;;  %v5357_v32 = vld [vmem:[#allocation11 + $0x78] sm:$0xff] }
 0xb1d   :  { %v7869_v61 = vpop.eup %7868 }
 0xb1e   :  { %4812 = vmatmul.mubr.f32.vlgmr.msra.gmra.mrb[34].mxu1 %v4522_v15  ;;  %v5212_v48 = vrot.slane %v4522_v15, %v8991_v28  ;;  %4883 = vmatmul.mubr.f32.vlgmr.msra.gmra.mrb[36].mxu0 %v4522_v15  ;;  %v7871_v55 = vpop.eup %7870  ;;  %v7430_v15 = vpack.c.bf16 %v5357_v32, %v5356_v21 }
 0xb1f   :  { %7341 = vmatpush1.bf16.msra.mxu1 %v10527_v39  ;;  %7373 = vmatpush1.bf16.msra.mxu0 %v10528_v30  ;;  %v7873_v31 = vpop.eup %7872 }
 0xb20   :  { %v5213_v10 = vcombine.high %v5212_v48, %v5212_v48  ;;  %7343 = vmatprep.subr.bf16.mxu1 %v10529_v27  ;;  %7375 = vmatprep.subr.bf16.mxu0 %v10599_v11  ;;  %v5220_v24 = vrot.slane %v5212_v48, %v8991_v28  ;;  %v4734_v27 = vrot.slane %v9584_v37, 7  ;;  %v4725_v11 = vadd.f32 1.0, %v7871_v55  ;;  %v5447_v48 = vld [vmem:[%s9891_s16 + $0x8] sm:$0xff] }
 0xb21   :  { %4959 = vmatprep.mubr.f32.mxu1 %v10227_v40  ;;  %5030 = vmatprep.mubr.f32.mxu0 %v10227_v40  ;;  %v4726_v40 = vadd.f32 1.0, %v7873_v31  ;;  %v5450_v31 = vld [vmem:[%s9891_s16 + $0x20] sm:$0xff] }
 0xb22   :  { %v5304_v4 = vrot.slane %v5220_v24, %v10387_v13  ;;  %v5227_v39 = vrot.slane %v5213_v10, %v8991_v28  ;;  %7882 = vrcp.f32 %v4725_v11  ;;  %v5449_v10 = vld [vmem:[%s9891_s16 + $0x18] sm:$0xff] }
 0xb23   :  { %v7875_v0 = vpop.eup %7874  ;;  %7345 = vmatpush1.bf16.msra.mxu1 %v10388_v53  ;;  %7377 = vmatpush1.bf16.msra.mxu0 %v10389_v35  ;;  %7884 = vrcp.f32 %v4726_v40 }
 0xb24   :  { %v7877_v30 = vpop.eup %7876  ;;  %v4739_v23 = vmul.f32 %v7875_v0, %v7867_v8  ;;  %7347 = vmatprep.subr.bf16.mxu1 %v10390_v62  ;;  %7379 = vmatprep.subr.bf16.mxu0 %v10391_v34  ;;  %v9713_v38 = vsel %vm5336_vm8, %v9573_v42, %v5304_v4  ;;  %v5308_v49 = vrot.slane %v5227_v39, %v10387_v13  ;;  %v5349_v42 = vld [vmem:[#allocation11 + $0x38] sm:$0xff]  ;;  %v5446_v8 = vld [vmem:[%s9891_s16] sm:$0xff] }
 0xb25   :  { %v7879_v1 = vpop.eup %7878  ;;  %v4740_v45 = vmul.f32 %v7877_v30, %v7869_v61  ;;  %v5448_v61 = vld [vmem:[%s9891_s16 + $0x10] sm:$0xff]  ;;  %v7434_v55 = vpack.c.bf16 %v5447_v48, %v5446_v8  ;;  %v5451_v0 = vld [vmem:[%s9891_s16 + $0x28] sm:$0xff]  ;;  %v5453_v30 = vld [vmem:[%s9891_s16 + $0x38] sm:$0xff] }
 0xb26   :  { %v7881_v25 = vpop.eup %7880  ;;  %v4737_v37 = vmul.f32 %v7879_v1, %v4733_v6  ;;  %v9718_v53 = vsel %vm5336_vm8, %v9578_v16, %v5308_v49  ;;  %v7438_v24 = vpack.c.bf16 %v5449_v10, %v5448_v61  ;;  %v7442_v4 = vpack.c.bf16 %v5451_v0, %v5450_v31  ;;  %v5452_v39 = vld [vmem:[%s9891_s16 + $0x30] sm:$0xff]  ;;  %v5454_v6 = vld [vmem:[%s9891_s16 + $0x40] sm:$0xff] }
 0xb27   :  { %v4738_v12 = vmul.f32 %v7881_v25, %v4734_v27  ;;  %7349 = vmatpush1.bf16.msra.mxu1 %v10392_v56  ;;  %7381 = vmatpush1.bf16.msra.mxu0 %v10393_v19  ;;  %v5455_v27 = vld [vmem:[%s9891_s16 + $0x48] sm:$0xff]  ;;  %v5456_v1 = vld [vmem:[%s9891_s16 + $0x50] sm:$0xff] }
 0xb28   :  { %v9720_v35 = vadd.f32 %v4739_v23, %v4737_v37  ;;  %7351 = vmatprep.subr.bf16.mxu1 %v10394_v52  ;;  %7383 = vmatprep.subr.bf16.mxu0 %v10395_v44  ;;  %v7446_v23 = vpack.c.bf16 %v5453_v30, %v5452_v39  ;;  %v7450_v11 = vpack.c.bf16 %v5455_v27, %v5454_v6  ;;  %v10745_v37 = vld [vmem:[#allocation129_spill] sm:$0xff] }
 0xb29   :  { %v9724_v62 = vadd.f32 %v4740_v45, %v4738_v12  ;;  %v5457_v45 = vld [vmem:[%s9891_s16 + $0x58] sm:$0xff] }
 0xb2a   :  { %7886 = vtanh.f32 %v9720_v35  ;;  %v7454_v40 = vpack.c.bf16 %v5457_v45, %v5456_v1  ;;  %v5580_v36 = vrot.slane %v9720_v35, 7 }
 0xb2b   :  { %7888 = vtanh.f32 %v9724_v62  ;;  %7353 = vmatpush1.bf16.msra.mxu1 %v10396_v41  ;;  %7385 = vmatpush1.bf16.msra.mxu0 %v10397_v22  ;;  %v5581_v21 = vrot.slane %v9724_v62, 7 }
 0xb2c   :  { %7355 = vmatprep.subr.bf16.mxu1 %v10398_v14  ;;  %7387 = vmatprep.subr.bf16.mxu0 %v10399_v58  ;;  %v7883_v34 = vpop.eup %7882  ;;  %v10743_v58 = vld [vmem:[#allocation116_spill] sm:$0xff] }
 0xb2d   :  { %v7885_v56 = vpop.eup %7884 }
 0xb2f   :  { %7357 = vmatpush1.bf16.msra.mxu1 %v10461_v9  ;;  %7389 = vmatpush1.bf16.msra.mxu0 %v10462_v57  ;;  %v5344_v9 = vld [vmem:[#allocation11 + $0x10] sm:$0xff]  ;;  %v5345_v57 = vld [vmem:[#allocation11 + $0x18] sm:$0xff] }
 0xb30   :  { %7359 = vmatprep.subr.bf16.mxu1 %v10463_v51  ;;  %7391 = vmatprep.subr.bf16.mxu0 %v10464_v50  ;;  %v5347_v51 = vld [vmem:[#allocation11 + $0x28] sm:$0xff] }
 0xb33   :  { %7361 = vmatpush1.bf16.msra.mxu1 %v10465_v2  ;;  %7393 = vmatpush1.bf16.msra.mxu0 %v10400_v60  ;;  %v10744_v60 = vld [vmem:[#allocation117_spill] sm:$0xff]  ;;  %v5348_v2 = vld [vmem:[#allocation11 + $0x30] sm:$0xff] }
 0xb34   :  { %v7887_v19 = vpop.eup %7886  ;;  %7363 = vmatprep.subr.bf16.mxu1 %v10401_v3  ;;  %7395 = vmatprep.subr.bf16.mxu0 %v10402_v59  ;;  %v7414_v16 = vpack.c.bf16 %v5349_v42, %v5348_v2 }
 0xb35   :  { %v7889_v52 = vpop.eup %7888  ;;  %v9742_v44 = vmul.f32 %v7887_v19, %v7883_v34  ;;  %v10746_v19 = vld [vmem:[#allocation120_spill] sm:$0xff] }
 0xb36   :  { %v9744_v41 = vmul.f32 %v7889_v52, %v7885_v56 }
 0xb37   :  { %7365 = vmatpush1.bf16.msra.mxu1 %v10403_v63  ;;  %7397 = vmatpush1.bf16.msra.mxu0 %v10404_v18  ;;  %v4891_v22 = vrot.slane %v9742_v44, 7  ;;  %v5342_v63 = vld [vmem:[#allocation11] sm:$0xff]  ;;  %v5343_v18 = vld [vmem:[#allocation11 + $0x8] sm:$0xff] }
 0xb38   :  { %v4892_v14 = vrot.slane %v9744_v41, 6  ;;  %7367 = vmatprep.subr.bf16.mxu1 %v10340_v17  ;;  %7399 = vmatprep.subr.bf16.mxu0 %v10341_v7  ;;  %v7402_v59 = vpack.c.bf16 %v5343_v18, %v5342_v63  ;;  %v7406_v17 = vpack.c.bf16 %v5345_v57, %v5344_v9  ;;  %v5346_v7 = vld [vmem:[#allocation11 + $0x20] sm:$0xff]  ;;  %v10748_v18 = vld [vmem:[#allocation130_spill] sm:$0xff]  ;;  %v5547_v31 = vrot.slane %v9744_v41, 7 }
 0xb39   :  { %v7410_v50 = vpack.c.bf16 %v5347_v51, %v5346_v7  ;;  %v5460_v44 = vld [vmem:[%s9891_s16 + $0x70] sm:$0xff] }
 0xb3a   :  { %v4893_v3 = vsel %vm1082_vm2, %v4892_v14, %v4891_v22 }
 0xb3b   :  { %7369 = vmatpush1.bf16.msra.mxu1 %v10743_v58  ;;  %7401 = vmatpush1.bf16.msra.mxu0 %v10744_v60  ;;  %v10747_v60 = vld [vmem:[#allocation121_spill] sm:$0xff] }
 0xb3c   :  { %7403 = vmatprep.subr.bf16.mxu1 %v7402_v59  ;;  %7435 = vmatprep.subr.bf16.mxu0 %v7434_v55 }
 0xb3e   :  { %4960 = vmatmul.mubr.f32.vlgmr.msra.gmra.mrb[34].mxu1 %v4893_v3  ;;  %5031 = vmatmul.mubr.f32.vlgmr.msra.gmra.mrb[36].mxu0 %v4893_v3 }
 0xb3f   :  { %7405 = vmatpush3.bf16.msra.mxu1 %v7402_v59  ;;  %7437 = vmatpush3.bf16.msra.mxu0 %v7434_v55 }
 0xb40   :  { %7407 = vmatprep.subr.bf16.mxu1 %v7406_v17  ;;  %7439 = vmatprep.subr.bf16.mxu0 %v7438_v24 }
 0xb43   :  { %7409 = vmatpush3.bf16.msra.mxu1 %v7406_v17  ;;  %7441 = vmatpush3.bf16.msra.mxu0 %v7438_v24 }
 0xb44   :  { %7411 = vmatprep.subr.bf16.mxu1 %v7410_v50  ;;  %7443 = vmatprep.subr.bf16.mxu0 %v7442_v4 }
 0xb47   :  { %7413 = vmatpush3.bf16.msra.mxu1 %v7410_v50  ;;  %7445 = vmatpush3.bf16.msra.mxu0 %v7442_v4 }
 0xb48   :  { %7415 = vmatprep.subr.bf16.mxu1 %v7414_v16  ;;  %7447 = vmatprep.subr.bf16.mxu0 %v7446_v23 }
 0xb4b   :  { %7417 = vmatpush3.bf16.msra.mxu1 %v7414_v16  ;;  %7449 = vmatpush3.bf16.msra.mxu0 %v7446_v23 }
 0xb4c   :  { %7419 = vmatprep.subr.bf16.mxu1 %v7418_v20  ;;  %7451 = vmatprep.subr.bf16.mxu0 %v7450_v11 }
 0xb4f   :  { %7421 = vmatpush3.bf16.msra.mxu1 %v7418_v20  ;;  %7453 = vmatpush3.bf16.msra.mxu0 %v7450_v11 }
 0xb50   :  { %7423 = vmatprep.subr.bf16.mxu1 %v7422_v29  ;;  %7455 = vmatprep.subr.bf16.mxu0 %v7454_v40 }
 0xb53   :  { %7425 = vmatpush3.bf16.msra.mxu1 %v7422_v29  ;;  %7457 = vmatpush3.bf16.msra.mxu0 %v7454_v40 }
 0xb54   :  { %7427 = vmatprep.subr.bf16.mxu1 %v7426_v46 }
 0xb57   :  { %7429 = vmatpush3.bf16.msra.mxu1 %v7426_v46 }
 0xb58   :  { %7431 = vmatprep.subr.bf16.mxu1 %v7430_v15 }
 0xb5b   :  { %7433 = vmatpush3.bf16.msra.mxu1 %v7430_v15 }
 0xc11   :  { %v4961_v49 = vpop.f32.mrb[34].mxu1  ;;  %v5032_v25 = vpop.f32.mrb[36].mxu0 }
 0xc12   :  { %v5037_v12 = vadd.f32 %v4961_v49, %v10745_v37  ;;  %v4963_v34 = vpop.f32.mrb[35].mxu1  ;;  %v5034_v56 = vpop.f32.mrb[37].mxu0  ;;  %v5039_v59 = vadd.f32 %v5032_v25, %v10748_v18 }
 0xc13   :  { %v5038_v52 = vadd.f32 %v4963_v34, %v10746_v19  ;;  %v5040_v3 = vadd.f32 %v5034_v56, %v10747_v60 }
 0xc14   :  { %v5714_v14 = vmul.f32 -1.442695, %v5037_v12 }
 0xc15   :  { %v5715_v58 = vmul.f32 -1.442695, %v5038_v52  ;;  %v5716_v63 = vmul.f32 -1.442695, %v5040_v3 }
 0xc16   :  { %7890 = vpow2.f32 %v5714_v14 }
 0xc17   :  { %7892 = vpow2.f32 %v5715_v58 }
 0xc18   :  { %7894 = vpow2.f32 %v5716_v63 }
 0xc19   :  { %7896 = vtanh.f32 %v5039_v59 }
 0xc20   :  { %v7891_v9 = vpop.eup %7890 }
 0xc21   :  { %v7893_v57 = vpop.eup %7892  ;;  %v5044_v17 = vadd.f32 1.0, %v7891_v9 }
 0xc22   :  { %v5050_v7 = vadd.f32 1.0, %v7893_v57  ;;  %v7895_v51 = vpop.eup %7894 }
 0xc23   :  { %7898 = vrcp.f32 %v5044_v17  ;;  %v7897_v50 = vpop.eup %7896  ;;  %v5057_v43 = vadd.f32 1.0, %v7895_v51 }
 0xc24   :  { %7900 = vrcp.f32 %v5050_v7 }
 0xc25   :  { %7902 = vrcp.f32 %v5057_v43 }
 0xc2d   :  { %v7899_v2 = vpop.eup %7898 }
 0xc2e   :  { %v7901_v42 = vpop.eup %7900  ;;  %v5061_v16 = vmul.f32 %v7899_v2, %v7897_v50 }
 0xc2f   :  { %v5060_v47 = vmul.f32 %v7901_v42, %v9684_v54  ;;  %v7903_v8 = vpop.eup %7902 }
 0xc31   :  { %v5062_v20 = vadd.f32 %v5061_v16, %v5060_v47 }
 0xc33   :  { %7904 = vtanh.f32 %v5062_v20  ;;  %v5562_v33 = vrot.slane %v5062_v20, %v8991_v28 }
 0xc35   :  { %v5563_v26 = vcombine.high %v5562_v33, %v5562_v33  ;;  %v5570_v29 = vrot.slane %v5562_v33, %v8991_v28 }
 0xc37   :  { %v5577_v5 = vrot.slane %v5563_v26, %v8991_v28  ;;  %v5587_v46 = vrot.slane %v5570_v29, %v10387_v13 }
 0xc39   :  { %v5591_v32 = vrot.slane %v5577_v5, %v10387_v13  ;;  %v5594_v54 = vsel %vm5321_vm3, %v5580_v36, %v5587_v46 }
 0xc3a   :  { %5596 = vst.msk [vmem:[#allocation14] sm:$0x3] %vm5552_vm9, %v5594_v54 }
 0xc3b   :  { %v5595_v15 = vsel %vm5321_vm3, %v5581_v21, %v5591_v32 }
 0xc3c   :  { %5597 = vst.msk [vmem:[#allocation14 + $0x2] sm:$0x3] %vm5552_vm9, %v5595_v15 }
 0xc3d   :  { %v7905_v48 = vpop.eup %7904 }
 0xc3e   :  { %v5064_v61 = vmul.f32 %v7905_v48, %v7903_v8 }
 0xc40   :  { %v5235_v55 = vrot.slane %v5064_v61, %v8991_v28 }
 0xc42   :  { %v5243_v35 = vrot.slane %v5235_v55, %v8991_v28  ;;  %v5236_v10 = vcombine.high %v5235_v55, %v5235_v55 }
 0xc44   :  { %v5314_v62 = vrot.slane %v5243_v35, %v10387_v13  ;;  %v5250_v24 = vrot.slane %v5236_v10, %v8991_v28  ;;  %v5458_v28 = vld [vmem:[%s9891_s16 + $0x60] sm:$0xff] }
 0xc46   :  { %v5340_v0 = vsel %vm5339_vm10, %v9713_v38, %v5314_v62  ;;  %v5318_v4 = vrot.slane %v5250_v24, %v10387_v13  ;;  %v5550_v39 = vsel %vm5321_vm3, %v4891_v22, %v5314_v62  ;;  %v5459_v13 = vld [vmem:[%s9891_s16 + $0x68] sm:$0xff]  ;;  %v5717_v22 = vld [vmem:[%s9890_s15] ss:$0 sm:$0xff] }
 0xc47   :  { %5804 = vmatprep.mubr.f32.mxu1 %v5340_v0  ;;  %5553 = vst.msk [vmem:[#allocation13] sm:$0x3] %vm5552_vm9, %v5550_v39  ;;  %v7458_v38 = vpack.c.bf16 %v5459_v13, %v5458_v28 }
 0xc48   :  { %v5341_v30 = vsel %vm5339_vm10, %v9718_v53, %v5318_v4  ;;  %v5551_v23 = vsel %vm5321_vm3, %v5547_v31, %v5318_v4  ;;  %v5461_v53 = vld [vmem:[%s9891_s16 + $0x78] sm:$0xff]  ;;  %s8109_s16 = smov [#allocation13]  }
 0xc49   :  { %5805 = vmatmul.mubr.f32.vlgmr.msra.gmra.mrb[36].mxu1 %v5341_v30  ;;  %5554 = vst.msk [vmem:[#allocation13 + $0x2] sm:$0x3] %vm5552_vm9, %v5551_v23  ;;  %7459 = vmatprep.subr.bf16.mxu0 %v7458_v38  ;;  %v7462_v41 = vpack.c.bf16 %v5461_v53, %v5460_v44  ;;  %s5605_s25 = sshll.u32 %s8109_s16, 4  ;;  %s5606_s25 = int_to_ptr.vmem [resolvable:$true] %s5605_s25 }
 0xc4a   :  { %7461 = vmatpush3.bf16.msra.mxu0 %v7458_v38  ;;  %s8038_s7 = scalar_lea.vmem %s5606_s25, 64  ;;  %p8043_p7 = scmp.lt.s32.totalorder %s5606_s25, %s5606_s25 }
 0xc4b   :  { %7463 = vmatprep.subr.bf16.mxu0 %v7462_v41  ;;  %p8039_p6 = scmp.ne.s32.totalorder %s5606_s25, %s8038_s7  ;;  %p8044_p8 = scmp.lt.s32.totalorder %s8038_s7, %s8038_s7 }
 0xc4d   :  { %p8045_p9 = por %p8044_p8, %p8043_p7 }
 0xc4e   :  { %7465 = vmatpush3.bf16.msra.mxu0 %v7462_v41 }
 0xc4f   :  { %p8046_p10 = pnand %p8045_p9, %p8039_p6 }
 0xd1c   :  { %v5806_v6 = vpop.f32.mrb[36].mxu1 }
 0xd1d   :  { %v5437_v27 = vadd.f32 %v5806_v6, %v5717_v22  ;;  %v5431_v11 = vpop.f32.mrb[37].mxu1 }
 0xd1e   :  { %v5432_v1 = vadd.f32 %v5717_v22, %v5431_v11 }
 0xd1f   :  { %v5443_v45 = vmul.f32 0.1, %v5437_v27  ;;  %vm5441_vm11 = vcmp.gt.f32.partialorder %v5437_v27, 0.0 }
 0xd20   :  { %v5442_v40 = vmul.f32 0.1, %v5432_v1  ;;  %vm5440_vm12 = vcmp.gt.f32.partialorder %v5432_v1, 0.0 }
 0xd21   :  { %v5445_v25 = vsel %vm5441_vm11, %v5437_v27, %v5443_v45 }
 0xd22   :  { %v5444_v49 = vsel %vm5440_vm12, %v5432_v1, %v5442_v40 }
 0xd23   :  { %5839 = vmatprep.mubr.f32.mxu0 %v5444_v49 }
 0xd24   :  { %5840 = vmatmul.mubr.f32.vlgmr.msra.gmra.mrb[38].mxu0 %v5445_v25 }
 0xd25   :  { %8049 = shalt.err (!%p8046_p10)
}
 0xd26   :  { %s8050_s12 = scalar_lea.hbm %s9894_s19, 64 }
 0xd27   :  { %p8051_p11 = scmp.ne.s32.totalorder %s9894_s19, %s8050_s12  ;;  %p8054_p12 = scmp.lt.u32.totalorder %s8050_s12, %s9894_s19 }
 0xd29   :  { %p8056_p13 = pnand %p8054_p12, %p8051_p11 }
 0xd2b   :  { %8059 = shalt.err (!%p8056_p13)
}
 0xd2c   :  { %s8111_s10 = smov 2   ;;  %s8060_s9 = scalar_lea.vmem %s5618_s26, 64 }
 0xd2d   :  { %5611 = dma.vmem_to_hbm [thread:$0]  %s5606_s25, 64, %s9894_s19, [#allocation4], %s10154_s24, %s10154_s24, %s8111_s10  }
 0xd2e   :  { %p8061_p0 = scmp.ne.s32.totalorder %s5618_s26, %s8060_s9  ;;  %p8065_p1 = scmp.lt.s32.totalorder %s5618_s26, %s5618_s26 }
 0xd2f   :  { %p8066_p2 = scmp.lt.s32.totalorder %s8060_s9, %s8060_s9 }
 0xd31   :  { %p8067_p3 = por %p8066_p2, %p8065_p1 }
 0xd33   :  { %p8068_p4 = pnand %p8067_p3, %p8061_p0 }
 0xd35   :  { %8071 = shalt.err (!%p8068_p4)
}
 0xd36   :  { %s8072_s14 = scalar_lea.hbm %s9895_s20, 64 }
 0xd37   :  { %p8073_p5 = scmp.ne.s32.totalorder %s9895_s20, %s8072_s14  ;;  %p8076_p6 = scmp.lt.u32.totalorder %s8072_s14, %s9895_s20 }
 0xd39   :  { %p8078_p7 = pnand %p8076_p6, %p8073_p5 }
 0xd3b   :  { %8081 = shalt.err (!%p8078_p7)
}
 0xd3c   :  { %5623 = dma.vmem_to_hbm [thread:$0]  %s5618_s26, 64, %s9895_s20, [#allocation15], %s10154_s24, %s10154_s24, %s8111_s10   ;;  %vm5544_vm13 = vcmask 48128  }
 0xd3d   :  { %v5718_v37 = vld [vmem:[%s9892_s17] ss:$0 sm:$0xff] }
 0xdf7   :  { %v5841_v12 = vpop.f32.mrb[38].mxu0 }
 0xdf8   :  { %v5541_v34 = vadd.f32 %v5841_v12, %v5718_v37  ;;  %v5535_v56 = vpop.f32.mrb[39].mxu0 }
 0xdf9   :  { %v5536_v19 = vadd.f32 %v5718_v37, %v5535_v56 }
 0xdfa   :  { %5546 = vst.msk [vmem:[%s9893_s18 + $0x8] sm:$0xff] %vm5544_vm13, %v5541_v34 }
 0xdfb   :  { %5545 = vst.msk [vmem:[%s9893_s18] sm:$0xff] %vm5544_vm13, %v5536_v19 }
 0xdfc   :  { %8090 = dma.done.wait [#allocation4], 64  }
 0xdfd   :  { %8091 = vsyncadd [#allocation4], 4294967232 }
 0xdfe   :  { %8092 = dma.done.wait [#allocation15], 64  }
 0xdff   :  { %8093 = vsyncadd [#allocation15], 4294967232 }
 0xe00   :  { %5632 = vsyncpa [#allocation3], 1 }
 0xe01   :  { %5633 = vsyncpa [#allocation6], 1 }
 0xe02   :  { %5634 = vsyncpa [#allocation9], 1 }
 0xe03   :  { %5635 = vsyncpa [#allocation12], 1 }
 0xe04   :  { %5636 = vsyncpa [#allocation4], 1 }
 0xe05   :  { %5637 = vsyncpa [#allocation15], 1 }

</bundles_post_ra>
